<compile_context>
chip_gen: v6e
topology: v6e:2x2x1
jax: 0.10.0
libtpu: 0.0.40
codegen_flags: <defaults>
</compile_context>

<pallas_src>
import jax
import jax.numpy as jnp
from jax.experimental import pallas as pl
from jax.experimental.pallas import tpu as pltpu

EPS = 1e-5  # PyTorch InstanceNorm2d default (affine=False, biased variance)


def _instance_norm_f32(v, n_pixels):
    """Per-channel instance norm over axis 0 of an (H*W, C) f32 tensor.

    Single sweep (sum and sum-of-squares, E[x^2] - E[x]^2) in f32.  With the
    conv bias removed the per-channel mean stays small relative to the std,
    so the one-pass form is numerically safe here.
    """
    inv_n = 1.0 / float(n_pixels)
    mean = jnp.sum(v, axis=0, keepdims=True) * inv_n
    mean_sq = jnp.sum(v * v, axis=0, keepdims=True) * inv_n
    var = mean_sq - mean * mean
    return (v - mean) * jax.lax.rsqrt(var + EPS)


def residual_block_kernel(x_ref, w1_ref, w2_ref, o_ref):
    # x_ref : (1, H, W, C)  NHWC input (conv1 input AND residual source)
    # w*_ref: (3, 3C, C)    3x3 conv weights; axis 0 = ky, rows = kx*C + c_in
    # o_ref : (1, H, W, C)
    # Requires H >= 2 and W >= 2 (reflection pad of 1), like the PyTorch module.
    H, W, C = x_ref.shape[1], x_ref.shape[2], x_ref.shape[3]
    n_pix = H * W

    # W-direction reflection masks: built once, reused by both convs.
    col = jax.lax.broadcasted_iota(jnp.int32, (H, W, C), 1)
    is_first_col = col == 0
    is_last_col = col == W - 1

    def conv3x3_reflect(src_hwc, w_ref):
        # src_hwc: (H, W, C).  Returns un-normalized, bias-free conv output
        # as an (H*W, C) f32 tensor (bias is cancelled by the following IN).
        # --- ReflectionPad(1) along W as kx-shifted slabs (XLU rolls) -------
        roll_r = pltpu.roll(src_hwc, shift=1, axis=1)      # [:, j] = src[:, j-1]
        roll_l = pltpu.roll(src_hwc, shift=W - 1, axis=1)  # [:, j] = src[:, j+1]
        # kx=0 tap reads padded col j   -> src[:, j-1], reflected to src[:, 1]   at j=0
        slab_kx0 = jnp.where(is_first_col, roll_l, roll_r)
        # kx=2 tap reads padded col j+2 -> src[:, j+1], reflected to src[:, W-2] at j=W-1
        slab_kx2 = jnp.where(is_last_col, roll_r, roll_l)
        # Lane-concat to K = 3C; cast to the MXU operand dtype (= weight dtype).
        xc = jnp.concatenate([slab_kx0, src_hwc, slab_kx2], axis=-1)
        xc_flat = xc.astype(w_ref.dtype).reshape(n_pix, 3 * C)

        # --- 3 MXU matmuls on the SAME operand; the ky shift is applied to ---
        # --- the (H*W, C) outputs (W-row block shift + reflected edge row). --
        y0 = jnp.dot(xc_flat, w_ref[0], preferred_element_type=jnp.float32)
        acc = jnp.dot(xc_flat, w_ref[1], preferred_element_type=jnp.float32)
        y2 = jnp.dot(xc_flat, w_ref[2], preferred_element_type=jnp.float32)
        # ky=0: out row i takes src row i-1; row 0 reflects to src row 1.
        acc = acc + jnp.concatenate([y0[W:2 * W], y0[:n_pix - W]], axis=0)
        # ky=2: out row i takes src row i+1; row H-1 reflects to src row H-2.
        acc = acc + jnp.concatenate(
            [y2[W:], y2[n_pix - 2 * W:n_pix - W]], axis=0)
        return acc  # (H*W, C) f32

    x = x_ref[0]                                     # (H, W, C), native dtype

    h = conv3x3_reflect(x, w1_ref)                   # conv1 (bias-free), f32 acc
    h = _instance_norm_f32(h, n_pix)                 # InstanceNorm2d #1
    h = jnp.maximum(h, 0.0)                          # ReLU (f32)

    g = conv3x3_reflect(h.reshape(H, W, C), w2_ref)  # conv2 (bias-free)
    g = _instance_norm_f32(g, n_pix)                 # InstanceNorm2d #2

    out = x.reshape(n_pix, C).astype(jnp.float32) + g    # residual add (f32)
    o_ref[...] = out.reshape(1, H, W, C).astype(o_ref.dtype)


def _vmem_limit_bytes(H, W, C, in_bytes, w_bytes, out_bytes):
    """Per-grid-step working-set estimate with headroom, capped below the
    physical per-core VMEM (never request all of v7x's 64 MiB)."""
    n_pix = H * W
    io = 2 * n_pix * C * (in_bytes + out_bytes)        # double-buffered I/O blocks
    wts = 2 * 2 * 9 * C * C * w_bytes                  # 2 weight tensors, 2 buffers
    conv = (n_pix * 3 * C * w_bytes                    # xc slab (K = 3C operand)
            + 4 * n_pix * C * in_bytes                 # roll / slab transients
            + 4 * n_pix * C * 4)                       # f32 acc / y / shifted / h
    est = int(1.4 * (io + wts + conv))                 # compiler-scratch headroom
    try:
        phys = int(pltpu.get_tpu_info().vmem_capacity_bytes)
    except Exception:
        phys = 64 * 1024 * 1024                        # conservative (v7x-sized)
    cap = int(0.85 * phys)
    return min(max(est, 32 * 1024 * 1024), cap)


def residual_block_nhwc(x, w1, b1, w2, b2, *, mxu_dtype=None):
    """x: (B, H, W, C) NHWC; w*: (C_out, C_in, 3, 3) PyTorch layout; b*: (C,).

    The conv biases are accepted for API parity but are NOT used: each conv is
    immediately followed by InstanceNorm2d(affine=False), which subtracts the
    per-channel mean, so a per-channel constant bias cancels exactly.

    mxu_dtype: optional dtype for the MXU operands (e.g. jnp.bfloat16).  The
    weights are cast here and the conv operand is cast in-kernel; accumulation,
    instance norm, ReLU and the residual add stay f32.
    """
    del b1, b2  # mathematically cancelled by the following InstanceNorm
    B, H, W, C = x.shape
    assert H >= 2 and W >= 2, "ReflectionPad2d(1) needs H >= 2 and W >= 2"
    op_dtype = jnp.dtype(mxu_dtype) if mxu_dtype is not None else x.dtype

    # (C_out, C_in, kH, kW) -> (kH, kW, C_in, C_out) -> (3, 3C, C)
    # (rows ordered kx-major / c_in-minor, matching the in-kernel lane concat)
    w1t = jnp.transpose(w1, (2, 3, 1, 0)).reshape(3, 3 * C, C).astype(op_dtype)
    w2t = jnp.transpose(w2, (2, 3, 1, 0)).reshape(3, 3 * C, C).astype(op_dtype)

    vmem_limit = _vmem_limit_bytes(
        H, W, C,
        in_bytes=x.dtype.itemsize,
        w_bytes=op_dtype.itemsize,
        out_bytes=x.dtype.itemsize)

    return pl.pallas_call(
        residual_block_kernel,
        out_shape=jax.ShapeDtypeStruct((B, H, W, C), x.dtype),
        grid_spec=pltpu.PrefetchScalarGridSpec(
            num_scalar_prefetch=0,
            grid=(B,),
            in_specs=[
                pl.BlockSpec((1, H, W, C), lambda b: (b, 0, 0, 0)),
                # Grid-invariant weights: constant index_map -> fetched once.
                pl.BlockSpec((3, 3 * C, C), lambda b: (0, 0, 0)),
                pl.BlockSpec((3, 3 * C, C), lambda b: (0, 0, 0)),
            ],
            out_specs=pl.BlockSpec((1, H, W, C), lambda b: (b, 0, 0, 0)),
        ),
        compiler_params=pltpu.CompilerParams(
            dimension_semantics=("parallel",),
            vmem_limit_bytes=vmem_limit,
        ),
    )(x, w1t, w2t)


def residual_block(x_nchw, w1, b1, w2, b2, *, mxu_dtype=None):
    """PyTorch-layout wrapper: x (B, C, H, W) -> (B, C, H, W).

    The transposes are boundary glue to match the PyTorch reference; production
    models should stay NHWC end-to-end and call residual_block_nhwc directly.
    """
    x = jnp.transpose(x_nchw, (0, 2, 3, 1))
    out = residual_block_nhwc(x, w1, b1, w2, b2, mxu_dtype=mxu_dtype)
    return jnp.transpose(out, (0, 3, 1, 2))


def residual_block_reference(x, w1, b1, w2, b2):
    """Pure-JAX reference mirroring the PyTorch module (NCHW, biases included)."""
    def conv(h, w, b):
        hp = jnp.pad(h, ((0, 0), (0, 0), (1, 1), (1, 1)), mode="reflect")
        y = jax.lax.conv_general_dilated(
            hp, w, window_strides=(1, 1), padding="VALID",
            dimension_numbers=("NCHW", "OIHW", "NCHW"))
        return y + b.reshape(1, -1, 1, 1)

    def inorm(h):
        m = jnp.mean(h, axis=(2, 3), keepdims=True)
        v = jnp.mean((h - m) ** 2, axis=(2, 3), keepdims=True)
        return (h - m) * jax.lax.rsqrt(v + EPS)

    h = jax.nn.relu(inorm(conv(x, w1, b1)))
    h = inorm(conv(h, w2, b2))
    return x + h


if __name__ == "__main__":
    B, C, H, W = 2, 4, 16, 16
    key = jax.random.PRNGKey(0)
    kx, kw1, kb1, kw2, kb2 = jax.random.split(key, 5)

    x = jax.random.normal(kx, (B, C, H, W), dtype=jnp.float32)

    # Deterministic parameter init (PyTorch-style uniform bound = 1/sqrt(fan_in))
    fan_in = C * 3 * 3
    bound = 1.0 / (fan_in ** 0.5)
    w1 = jax.random.uniform(kw1, (C, C, 3, 3), jnp.float32, -bound, bound)
    b1 = jax.random.uniform(kb1, (C,), jnp.float32, -bound, bound)
    w2 = jax.random.uniform(kw2, (C, C, 3, 3), jnp.float32, -bound, bound)
    b2 = jax.random.uniform(kb2, (C,), jnp.float32, -bound, bound)

    ref = jax.block_until_ready(residual_block_reference(x, w1, b1, w2, b2))

    # f32 MXU-operand path: tight check against the bias-including reference
    # (also demonstrates that dropping the biases before InstanceNorm is exact).
    out = jax.block_until_ready(residual_block(x, w1, b1, w2, b2))
    assert out.shape == (B, C, H, W)
    err_f32 = jnp.max(jnp.abs(out - ref))
    assert jnp.allclose(out, ref, atol=1e-4, rtol=1e-4), (
        f"f32 max abs err = {err_f32}")

    # bf16 MXU-operand path (v5e/v6e/v7x MXU throughput): loose sanity check.
    out_bf16 = jax.block_until_ready(
        residual_block(x, w1, b1, w2, b2, mxu_dtype=jnp.bfloat16))
    err_bf16 = jnp.max(jnp.abs(out_bf16 - ref))
    assert bool(jnp.isfinite(err_bf16)) and float(err_bf16) < 0.25, (
        f"bf16 max abs err = {err_bf16}")

    print("KERNEL_OK")
</pallas_src>

<mosaic_0001>
module attributes {stable_mosaic.version = 11 : i64} {
  func.func @residual_block_kernel(%arg0: i32, %arg1: memref<1x16x16x4xf32, #tpu.memory_space<vmem>>, %arg2: memref<3x12x4xf32, #tpu.memory_space<vmem>>, %arg3: memref<3x12x4xf32, #tpu.memory_space<vmem>>, %arg4: memref<1x16x16x4xf32, #tpu.memory_space<vmem>>) attributes {dimension_semantics = [#tpu.dimension_semantics<parallel>], iteration_bounds = array<i64: 2>, scalar_prefetch = 0 : i64, scratch_operands = 0 : i64, tpu.core_type = #tpu.core_type<tc>, window_params = [{transform_indices = @transform_0, window_bounds = array<i64: 1, 16, 16, 4>}, {pipeline_mode = #tpu.pipeline_mode<synchronous>, transform_indices = @transform_1, window_bounds = array<i64: 3, 12, 4>}, {pipeline_mode = #tpu.pipeline_mode<synchronous>, transform_indices = @transform_2, window_bounds = array<i64: 3, 12, 4>}, {transform_indices = @transform_3, window_bounds = array<i64: 1, 16, 16, 4>}]} {
    %0 = tpu.iota {dimensions = array<i32: 1>} : vector<16x16x4xi32>
    %c0_i32 = arith.constant 0 : i32
    %1 = vector.broadcast %c0_i32 : i32 to vector<16x16x4xi32>
    %2 = arith.cmpi eq, %0, %1 : vector<16x16x4xi32>
    %c15_i32 = arith.constant 15 : i32
    %3 = vector.broadcast %c15_i32 : i32 to vector<16x16x4xi32>
    %4 = arith.cmpi eq, %0, %3 : vector<16x16x4xi32>
    %c0 = arith.constant 0 : index
    %c0_0 = arith.constant 0 : index
    %c0_1 = arith.constant 0 : index
    %c0_2 = arith.constant 0 : index
    %5 = vector.load %arg1[%c0, %c0_0, %c0_1, %c0_2] : memref<1x16x16x4xf32, #tpu.memory_space<vmem>>, vector<1x16x16x4xf32>
    %6 = vector.shape_cast %5 : vector<1x16x16x4xf32> to vector<16x16x4xf32>
    %c1_i32 = arith.constant 1 : i32
    %7 = tpu.dynamic_rotate %6 by %c1_i32 dim 1 : vector<16x16x4xf32>, i32 -> vector<16x16x4xf32>
    %c15_i32_3 = arith.constant 15 : i32
    %8 = tpu.dynamic_rotate %6 by %c15_i32_3 dim 1 : vector<16x16x4xf32>, i32 -> vector<16x16x4xf32>
    %9 = arith.select %2, %8, %7 : vector<16x16x4xi1>, vector<16x16x4xf32>
    %10 = arith.select %4, %7, %8 : vector<16x16x4xi1>, vector<16x16x4xf32>
    %11 = tpu.concatenate %9, %6, %10 in 2 : vector<16x16x4xf32>, vector<16x16x4xf32>, vector<16x16x4xf32> -> vector<16x16x12xf32>
    %12 = vector.shape_cast %11 : vector<16x16x12xf32> to vector<256x12xf32>
    %c0_4 = arith.constant 0 : index
    %c0_5 = arith.constant 0 : index
    %c0_6 = arith.constant 0 : index
    %13 = vector.load %arg2[%c0_4, %c0_5, %c0_6] : memref<3x12x4xf32, #tpu.memory_space<vmem>>, vector<1x12x4xf32>
    %14 = vector.shape_cast %13 : vector<1x12x4xf32> to vector<12x4xf32>
    %cst = arith.constant dense<0.000000e+00> : vector<256x4xf32>
    %15 = tpu.matmul %12, %14, %cst {dimension_numbers = #tpu.dot_dimension_numbers<[1], [0], [0], [1], [0, 0, 1, 1], [], []>} : vector<256x12xf32>, vector<12x4xf32>, vector<256x4xf32> -> vector<256x4xf32>
    %c1 = arith.constant 1 : index
    %c0_7 = arith.constant 0 : index
    %c0_8 = arith.constant 0 : index
    %16 = vector.load %arg2[%c1, %c0_7, %c0_8] : memref<3x12x4xf32, #tpu.memory_space<vmem>>, vector<1x12x4xf32>
    %17 = vector.shape_cast %16 : vector<1x12x4xf32> to vector<12x4xf32>
    %cst_9 = arith.constant dense<0.000000e+00> : vector<256x4xf32>
    %18 = tpu.matmul %12, %17, %cst_9 {dimension_numbers = #tpu.dot_dimension_numbers<[1], [0], [0], [1], [0, 0, 1, 1], [], []>} : vector<256x12xf32>, vector<12x4xf32>, vector<256x4xf32> -> vector<256x4xf32>
    %c2 = arith.constant 2 : index
    %c0_10 = arith.constant 0 : index
    %c0_11 = arith.constant 0 : index
    %19 = vector.load %arg2[%c2, %c0_10, %c0_11] : memref<3x12x4xf32, #tpu.memory_space<vmem>>, vector<1x12x4xf32>
    %20 = vector.shape_cast %19 : vector<1x12x4xf32> to vector<12x4xf32>
    %cst_12 = arith.constant dense<0.000000e+00> : vector<256x4xf32>
    %21 = tpu.matmul %12, %20, %cst_12 {dimension_numbers = #tpu.dot_dimension_numbers<[1], [0], [0], [1], [0, 0, 1, 1], [], []>} : vector<256x12xf32>, vector<12x4xf32>, vector<256x4xf32> -> vector<256x4xf32>
    %22 = vector.extract_strided_slice %15 {offsets = [16, 0], sizes = [16, 4], strides = [1, 1]} : vector<256x4xf32> to vector<16x4xf32>
    %23 = vector.extract_strided_slice %15 {offsets = [0, 0], sizes = [240, 4], strides = [1, 1]} : vector<256x4xf32> to vector<240x4xf32>
    %24 = tpu.concatenate %22, %23 in 0 : vector<16x4xf32>, vector<240x4xf32> -> vector<256x4xf32>
    %25 = arith.addf %18, %24 : vector<256x4xf32>
    %26 = vector.extract_strided_slice %21 {offsets = [16, 0], sizes = [240, 4], strides = [1, 1]} : vector<256x4xf32> to vector<240x4xf32>
    %27 = vector.extract_strided_slice %21 {offsets = [224, 0], sizes = [16, 4], strides = [1, 1]} : vector<256x4xf32> to vector<16x4xf32>
    %28 = tpu.concatenate %26, %27 in 0 : vector<240x4xf32>, vector<16x4xf32> -> vector<256x4xf32>
    %29 = arith.addf %25, %28 : vector<256x4xf32>
    %cst_13 = arith.constant dense<0.000000e+00> : vector<4xf32>
    %30 = vector.multi_reduction <add>, %29, %cst_13 [0] : vector<256x4xf32> to vector<4xf32>
    %31 = vector.shape_cast %30 : vector<4xf32> to vector<1x4xf32>
    %cst_14 = arith.constant 3.906250e-03 : f32
    %32 = vector.broadcast %cst_14 : f32 to vector<1x4xf32>
    %33 = arith.mulf %31, %32 : vector<1x4xf32>
    %34 = arith.mulf %29, %29 : vector<256x4xf32>
    %cst_15 = arith.constant dense<0.000000e+00> : vector<4xf32>
    %35 = vector.multi_reduction <add>, %34, %cst_15 [0] : vector<256x4xf32> to vector<4xf32>
    %36 = vector.shape_cast %35 : vector<4xf32> to vector<1x4xf32>
    %cst_16 = arith.constant 3.906250e-03 : f32
    %37 = vector.broadcast %cst_16 : f32 to vector<1x4xf32>
    %38 = arith.mulf %36, %37 : vector<1x4xf32>
    %39 = arith.mulf %33, %33 : vector<1x4xf32>
    %40 = arith.subf %38, %39 : vector<1x4xf32>
    %41 = vector.broadcast %33 : vector<1x4xf32> to vector<256x4xf32>
    %42 = arith.subf %29, %41 : vector<256x4xf32>
    %cst_17 = arith.constant 9.99999974E-6 : f32
    %43 = vector.broadcast %cst_17 : f32 to vector<1x4xf32>
    %44 = arith.addf %40, %43 : vector<1x4xf32>
    %45 = math.rsqrt %44 : vector<1x4xf32>
    %46 = vector.broadcast %45 : vector<1x4xf32> to vector<256x4xf32>
    %47 = arith.mulf %42, %46 : vector<256x4xf32>
    %cst_18 = arith.constant 0.000000e+00 : f32
    %48 = vector.broadcast %cst_18 : f32 to vector<256x4xf32>
    %49 = arith.maximumf %47, %48 : vector<256x4xf32>
    %50 = vector.shape_cast %49 : vector<256x4xf32> to vector<16x16x4xf32>
    %c1_i32_19 = arith.constant 1 : i32
    %51 = tpu.dynamic_rotate %50 by %c1_i32_19 dim 1 : vector<16x16x4xf32>, i32 -> vector<16x16x4xf32>
    %c15_i32_20 = arith.constant 15 : i32
    %52 = tpu.dynamic_rotate %50 by %c15_i32_20 dim 1 : vector<16x16x4xf32>, i32 -> vector<16x16x4xf32>
    %53 = arith.select %2, %52, %51 : vector<16x16x4xi1>, vector<16x16x4xf32>
    %54 = arith.select %4, %51, %52 : vector<16x16x4xi1>, vector<16x16x4xf32>
    %55 = tpu.concatenate %53, %50, %54 in 2 : vector<16x16x4xf32>, vector<16x16x4xf32>, vector<16x16x4xf32> -> vector<16x16x12xf32>
    %56 = vector.shape_cast %55 : vector<16x16x12xf32> to vector<256x12xf32>
    %c0_21 = arith.constant 0 : index
    %c0_22 = arith.constant 0 : index
    %c0_23 = arith.constant 0 : index
    %57 = vector.load %arg3[%c0_21, %c0_22, %c0_23] : memref<3x12x4xf32, #tpu.memory_space<vmem>>, vector<1x12x4xf32>
    %58 = vector.shape_cast %57 : vector<1x12x4xf32> to vector<12x4xf32>
    %cst_24 = arith.constant dense<0.000000e+00> : vector<256x4xf32>
    %59 = tpu.matmul %56, %58, %cst_24 {dimension_numbers = #tpu.dot_dimension_numbers<[1], [0], [0], [1], [0, 0, 1, 1], [], []>} : vector<256x12xf32>, vector<12x4xf32>, vector<256x4xf32> -> vector<256x4xf32>
    %c1_25 = arith.constant 1 : index
    %c0_26 = arith.constant 0 : index
    %c0_27 = arith.constant 0 : index
    %60 = vector.load %arg3[%c1_25, %c0_26, %c0_27] : memref<3x12x4xf32, #tpu.memory_space<vmem>>, vector<1x12x4xf32>
    %61 = vector.shape_cast %60 : vector<1x12x4xf32> to vector<12x4xf32>
    %cst_28 = arith.constant dense<0.000000e+00> : vector<256x4xf32>
    %62 = tpu.matmul %56, %61, %cst_28 {dimension_numbers = #tpu.dot_dimension_numbers<[1], [0], [0], [1], [0, 0, 1, 1], [], []>} : vector<256x12xf32>, vector<12x4xf32>, vector<256x4xf32> -> vector<256x4xf32>
    %c2_29 = arith.constant 2 : index
    %c0_30 = arith.constant 0 : index
    %c0_31 = arith.constant 0 : index
    %63 = vector.load %arg3[%c2_29, %c0_30, %c0_31] : memref<3x12x4xf32, #tpu.memory_space<vmem>>, vector<1x12x4xf32>
    %64 = vector.shape_cast %63 : vector<1x12x4xf32> to vector<12x4xf32>
    %cst_32 = arith.constant dense<0.000000e+00> : vector<256x4xf32>
    %65 = tpu.matmul %56, %64, %cst_32 {dimension_numbers = #tpu.dot_dimension_numbers<[1], [0], [0], [1], [0, 0, 1, 1], [], []>} : vector<256x12xf32>, vector<12x4xf32>, vector<256x4xf32> -> vector<256x4xf32>
    %66 = vector.extract_strided_slice %59 {offsets = [16, 0], sizes = [16, 4], strides = [1, 1]} : vector<256x4xf32> to vector<16x4xf32>
    %67 = vector.extract_strided_slice %59 {offsets = [0, 0], sizes = [240, 4], strides = [1, 1]} : vector<256x4xf32> to vector<240x4xf32>
    %68 = tpu.concatenate %66, %67 in 0 : vector<16x4xf32>, vector<240x4xf32> -> vector<256x4xf32>
    %69 = arith.addf %62, %68 : vector<256x4xf32>
    %70 = vector.extract_strided_slice %65 {offsets = [16, 0], sizes = [240, 4], strides = [1, 1]} : vector<256x4xf32> to vector<240x4xf32>
    %71 = vector.extract_strided_slice %65 {offsets = [224, 0], sizes = [16, 4], strides = [1, 1]} : vector<256x4xf32> to vector<16x4xf32>
    %72 = tpu.concatenate %70, %71 in 0 : vector<240x4xf32>, vector<16x4xf32> -> vector<256x4xf32>
    %73 = arith.addf %69, %72 : vector<256x4xf32>
    %cst_33 = arith.constant dense<0.000000e+00> : vector<4xf32>
    %74 = vector.multi_reduction <add>, %73, %cst_33 [0] : vector<256x4xf32> to vector<4xf32>
    %75 = vector.shape_cast %74 : vector<4xf32> to vector<1x4xf32>
    %cst_34 = arith.constant 3.906250e-03 : f32
    %76 = vector.broadcast %cst_34 : f32 to vector<1x4xf32>
    %77 = arith.mulf %75, %76 : vector<1x4xf32>
    %78 = arith.mulf %73, %73 : vector<256x4xf32>
    %cst_35 = arith.constant dense<0.000000e+00> : vector<4xf32>
    %79 = vector.multi_reduction <add>, %78, %cst_35 [0] : vector<256x4xf32> to vector<4xf32>
    %80 = vector.shape_cast %79 : vector<4xf32> to vector<1x4xf32>
    %cst_36 = arith.constant 3.906250e-03 : f32
    %81 = vector.broadcast %cst_36 : f32 to vector<1x4xf32>
    %82 = arith.mulf %80, %81 : vector<1x4xf32>
    %83 = arith.mulf %77, %77 : vector<1x4xf32>
    %84 = arith.subf %82, %83 : vector<1x4xf32>
    %85 = vector.broadcast %77 : vector<1x4xf32> to vector<256x4xf32>
    %86 = arith.subf %73, %85 : vector<256x4xf32>
    %cst_37 = arith.constant 9.99999974E-6 : f32
    %87 = vector.broadcast %cst_37 : f32 to vector<1x4xf32>
    %88 = arith.addf %84, %87 : vector<1x4xf32>
    %89 = math.rsqrt %88 : vector<1x4xf32>
    %90 = vector.broadcast %89 : vector<1x4xf32> to vector<256x4xf32>
    %91 = arith.mulf %86, %90 : vector<256x4xf32>
    %92 = vector.shape_cast %6 : vector<16x16x4xf32> to vector<256x4xf32>
    %93 = arith.addf %92, %91 : vector<256x4xf32>
    %94 = vector.shape_cast %93 : vector<256x4xf32> to vector<1x16x16x4xf32>
    %c0_38 = arith.constant 0 : index
    %c0_39 = arith.constant 0 : index
    %c0_40 = arith.constant 0 : index
    %c0_41 = arith.constant 0 : index
    %95 = vector.load %arg4[%c0_38, %c0_39, %c0_40, %c0_41] : memref<1x16x16x4xf32, #tpu.memory_space<vmem>>, vector<1x16x16x4xf32>
    tpu.vector_store %arg4[%c0_38, %c0_39, %c0_40, %c0_41], %94 {strides = array<i32>} : memref<1x16x16x4xf32, #tpu.memory_space<vmem>>, vector<1x16x16x4xf32>,
    return
  }
  func.func @transform_0(%arg0: i32) -> (i32, i32, i32, i32) {
    %c0_i32 = arith.constant 0 : i32
    %c0_i32_0 = arith.constant 0 : i32
    %c0_i32_1 = arith.constant 0 : i32
    %c0_i32_2 = arith.constant 0 : i32
    return %arg0, %c0_i32, %c0_i32_0, %c0_i32_1 : i32, i32, i32, i32
  }
  func.func @transform_1(%arg0: i32) -> (i32, i32, i32) {
    %c0_i32 = arith.constant 0 : i32
    %c0_i32_0 = arith.constant 0 : i32
    %c0_i32_1 = arith.constant 0 : i32
    %c0_i32_2 = arith.constant 0 : i32
    return %c0_i32, %c0_i32_0, %c0_i32_1 : i32, i32, i32
  }
  func.func @transform_2(%arg0: i32) -> (i32, i32, i32) {
    %c0_i32 = arith.constant 0 : i32
    %c0_i32_0 = arith.constant 0 : i32
    %c0_i32_1 = arith.constant 0 : i32
    %c0_i32_2 = arith.constant 0 : i32
    return %c0_i32, %c0_i32_0, %c0_i32_1 : i32, i32, i32
  }
  func.func @transform_3(%arg0: i32) -> (i32, i32, i32, i32) {
    %c0_i32 = arith.constant 0 : i32
    %c0_i32_0 = arith.constant 0 : i32
    %c0_i32_1 = arith.constant 0 : i32
    %c0_i32_2 = arith.constant 0 : i32
    return %arg0, %c0_i32, %c0_i32_0, %c0_i32_1 : i32, i32, i32, i32
  }
}

</mosaic_0001>

<bundles_post_ra>
// kernel: tpu_custom_call.1
= control target key start
LH: loop header
LB: loop body
LE: loop exit
PB: predicated region body
PF: predicated region fallthrough
CT: control target
= control target key end

     0   :  { %s4314_s12 = smov 0   ;;  %s7338_s0 = inlined_call_operand.vmem [shape: f32[2,16,16,4], index: 0, kind: input, shape index: {}]   ;;  %s7339_s1 = inlined_call_operand.vmem [shape: f32[3,12,4], index: 1, kind: input, shape index: {}]   ;;  %s7340_s2 = inlined_call_operand.vmem [shape: f32[3,12,4], index: 2, kind: input, shape index: {}]   ;;  %s7341_s3 = inlined_call_operand.vmem [shape: f32[2,16,16,4], index: 3, kind: output, shape index: {}]  }
   0x1 LB: > { %s3503_s13 = sadd.s32 4294967295, %s4290_s12   ;;  %p3507_p0 = scmp.ge.s32.totalorder %s4290_s12, 1  ;;  %s4290_s12 = sphi %s4314_s12, %s13_s12  }
   0x2   : > { %p137_p1 = scmp.lt.s32.totalorder %s4290_s12, 3 }
   0x4   : > { %p138_p2 = pnand %p3507_p0, %p137_p1 }
   0x6   : > { %141 = sbr.rel (%p138_p2) target bundleno = 1134 (0x46e), region = 32 }
   0xb   : > { %p161_p3 = scmp.lt.s32.totalorder %s3503_s13, 1  ;;  %v171_v0 = vlaneseq  ;;  %v727_v1 = vld [vmem:[%s7339_s1 + $0x8] sm:$0xf]  ;;  %vm825_vm0 = vcmask 1043456   ;;  %v726_v3 = vld [vmem:[%s7339_s1] sm:$0xff]  ;;  %s4292_s26 = smov 4  }
   0xc   : > { %3926 = vmatprep.subr.msk.mxu0 %vm825_vm0, %v727_v1  ;;  %v3548_v2 = vld [vmem:[%s7339_s1 + $0x28] sm:$0xf]  ;;  %v3547_v5 = vld [vmem:[%s7339_s1 + $0x20] sm:$0xff]  ;;  %s4293_s27 = smov 8   ;;  %vm660_vm5 = vcmask 31744   ;;  %vm693_vm6 = vcmask 64512  }
   0xd   : > { %s7495_s13 = smov (!%p161_p3, %s3503_s13), 1  ;;  %v4334_v4 = vshrl.u32 %v171_v0, 7  ;;  %3978 = vmatprep.subr.msk.mxu1 %vm825_vm0, %v3548_v2  ;;  %3927 = vmatpush3.msk.msra.mxu0 %vm825_vm0, %v727_v1  ;;  %vm728_vm7 = vcmask 97280  }
   0xe   : > { %3979 = vmatpush3.msk.msra.mxu1 %vm825_vm0, %v3548_v2  ;;  %3928 = vmatprep.subr.mxu0 %v726_v3  ;;  %s3720_s22 = sshll.u32 %s7495_s13, 8 }
   0xf   : > { %v4344_v6 = vadd.s32 8, %v4334_v4  ;;  %3980 = vmatprep.subr.mxu1 %v3547_v5  ;;  %3929 = vmatpush3.msra.mxu0 %v726_v3  ;;  %s4351_s25 = scalar_lea.vmem %s7338_s0, %s3720_s22  ;;  %vm242_vm1 = vcmp.lt.s32.totalorder %v4334_v4, 1  ;;  %vm307_vm2 = vcmp.lt.s32.totalorder %v4334_v4, 7  ;;  %vm174_vm4 = vcmp.eq.s32.totalorder %v4334_v4, 0  ;;  %s7217_s21 = scalar_lea.vmem %s7341_s3, %s3720_s22 }
  0x10   : > { %3981 = vmatpush3.msra.mxu1 %v3547_v5  ;;  %v4354_v7 = vld [vmem:[%s4351_s25 + $0x18] sm:$0xff]  ;;  %v4357_v8 = vld [vmem:[%s4351_s25] sm:$0xff]  ;;  %v4360_v9 = vld [vmem:[%s4351_s25 + $0x8] sm:$0xff] }
  0x11   : > { %442 = vrot.lane.b32.xlu1 %v4354_v7, %s4292_s26  ;;  %436 = vrot.lane.b32.xlu0 %v4357_v8, %s4292_s26  ;;  %v210_v10 = vrot.slane %v4357_v8, 7  ;;  %v226_v11 = vrot.slane %v4360_v9, 7  ;;  %v275_v12 = vrot.slane %v4357_v8, 1  ;;  %v4372_v13 = vld [vmem:[%s4351_s25 + $0x10] sm:$0xff]  ;;  %v227_v14 = vrot.slane %v4354_v7, 7  ;;  %v182_v25 = vld [vmem:[%s4351_s25 + $0x20] sm:$0xff] }
  0x12   : > { %v291_v15 = vrot.slane %v4360_v9, 1  ;;  %vm177_vm3 = vcmp.eq.s32.totalorder %v4344_v6, 15  ;;  %v211_v16 = vrot.slane %v4372_v13, 7  ;;  %v276_v18 = vrot.slane %v4372_v13, 1  ;;  %v183_v26 = vld [vmem:[%s4351_s25 + $0x28] sm:$0xff]  ;;  %v184_v35 = vld [vmem:[%s4351_s25 + $0x30] sm:$0xff] }
  0x13   : > { %v4380_v17 = vsel %vm242_vm1, %v210_v10, %v226_v11  ;;  %v292_v19 = vrot.slane %v4354_v7, 1  ;;  %v212_v29 = vrot.slane %v182_v25, 7  ;;  %v228_v30 = vrot.slane %v183_v26, 7  ;;  %v185_v36 = vld [vmem:[%s4351_s25 + $0x38] sm:$0xff]  ;;  %v186_v43 = vld [vmem:[%s4351_s25 + $0x40] sm:$0xff]  ;;  %v187_v44 = vld [vmem:[%s4351_s25 + $0x48] sm:$0xff] }
  0x14   : > { %v308_v20 = vsel %vm307_vm2, %v275_v12, %v291_v15  ;;  %v324_v21 = vsel %vm307_vm2, %v291_v15, %v275_v12  ;;  %v4400_v23 = vsel %vm242_vm1, %v211_v16, %v227_v14  ;;  %v277_v31 = vrot.slane %v182_v25, 1  ;;  %v188_v53 = vld [vmem:[%s4351_s25 + $0x50] sm:$0xff]  ;;  %v189_v54 = vld [vmem:[%s4351_s25 + $0x58] sm:$0xff]  ;;  %v190_v56 = vld [vmem:[%s4351_s25 + $0x60] sm:$0xff] }
  0x15   : > { %438 = vrot.lane.b32.xlu0 %v4360_v9, %s4292_s26  ;;  %564 = vrot.lane.b32.xlu1 %v308_v20, %s4293_s27  ;;  %v373_v22 = vsel %vm177_vm3, %v4380_v17, %v324_v21  ;;  %v325_v24 = vsel %vm307_vm2, %v292_v19, %v276_v18  ;;  %v309_v27 = vsel %vm307_vm2, %v276_v18, %v292_v19  ;;  %v293_v32 = vrot.slane %v183_v26, 1  ;;  %v191_v57 = vld [vmem:[%s4351_s25 + $0x68] sm:$0xff]  ;;  %v193_v18 = vld [vmem:[%s4351_s25 + $0x78] sm:$0xff] }
  0x16   : > { %v375_v28 = vsel %vm177_vm3, %v4400_v23, %v325_v24  ;;  %v4418_v33 = vsel %vm242_vm1, %v212_v29, %v228_v30  ;;  %v213_v39 = vrot.slane %v184_v35, 7  ;;  %v229_v40 = vrot.slane %v185_v36, 7 }
  0x17   : > { %v326_v34 = vsel %vm307_vm2, %v293_v32, %v277_v31  ;;  %v310_v37 = vsel %vm307_vm2, %v277_v31, %v293_v32  ;;  %v278_v41 = vrot.slane %v184_v35, 1  ;;  %v294_v42 = vrot.slane %v185_v36, 1 }
  0x18   : > { %v377_v38 = vsel %vm177_vm3, %v4418_v33, %v326_v34  ;;  %v4437_v45 = vsel %vm242_vm1, %v213_v39, %v229_v40  ;;  %v214_v47 = vrot.slane %v186_v43, 7  ;;  %v230_v48 = vrot.slane %v187_v44, 7 }
  0x19   : > { %440 = vrot.lane.b32.xlu0 %v4372_v13, %s4292_s26  ;;  %566 = vrot.lane.b32.xlu1 %v373_v22, %s4293_s27  ;;  %v327_v46 = vsel %vm307_vm2, %v294_v42, %v278_v41  ;;  %v311_v49 = vsel %vm307_vm2, %v278_v41, %v294_v42  ;;  %v279_v51 = vrot.slane %v186_v43, 1  ;;  %v295_v52 = vrot.slane %v187_v44, 1 }
  0x1a   : > { %v379_v50 = vsel %vm177_vm3, %v4437_v45, %v327_v46  ;;  %v259_v55 = vsel %vm242_vm1, %v226_v11, %v210_v10  ;;  %v4463_v59 = vsel %vm242_vm1, %v214_v47, %v230_v48  ;;  %v215_v61 = vrot.slane %v188_v53, 7 }
  0x1b   : > { %v4459_v58 = vsel %vm174_vm4, %v308_v20, %v259_v55  ;;  %v328_v60 = vsel %vm307_vm2, %v295_v52, %v279_v51  ;;  %v280_v62 = vrot.slane %v188_v53, 1  ;;  %v296_v63 = vrot.slane %v189_v54, 1 }
  0x1c   : > { %v260_v0 = vsel %vm242_vm1, %v227_v14, %v211_v16  ;;  %v281_v1 = vrot.slane %v190_v56, 1  ;;  %v297_v2 = vrot.slane %v191_v57, 1  ;;  %v261_v5 = vsel %vm242_vm1, %v228_v30, %v212_v29  ;;  %v192_v16 = vld [vmem:[%s4351_s25 + $0x70] sm:$0xff] }
  0x1d   : > { %568 = vrot.lane.b32.xlu0 %v309_v27, %s4293_s27  ;;  %570 = vrot.lane.b32.xlu1 %v375_v28, %s4293_s27  ;;  %v4475_v3 = vsel %vm174_vm4, %v309_v27, %v260_v0  ;;  %v312_v7 = vsel %vm307_vm2, %v279_v51, %v295_v52  ;;  %v381_v8 = vsel %vm177_vm3, %v4463_v59, %v328_v60  ;;  %v231_v9 = vrot.slane %v189_v54, 7  ;;  %v197_v51 = vld [vmem:[%s4351_s25 + $0x98] sm:$0xff] }
  0x1e   : > { %v216_v10 = vrot.slane %v190_v56, 7  ;;  %v232_v11 = vrot.slane %v191_v57, 7  ;;  %v4488_v12 = vsel %vm174_vm4, %v310_v37, %v261_v5  ;;  %v262_v13 = vsel %vm242_vm1, %v229_v40, %v213_v39 }
  0x1f   : > { %v263_v14 = vsel %vm242_vm1, %v230_v48, %v214_v47  ;;  %v313_v15 = vsel %vm307_vm2, %v280_v62, %v296_v63  ;;  %v4500_v19 = vsel %vm174_vm4, %v311_v49, %v262_v13  ;;  %v264_v21 = vsel %vm242_vm1, %v231_v9, %v215_v61 }
  0x20   : > { %v4504_v20 = vsel %vm174_vm4, %v312_v7, %v263_v14  ;;  %v314_v22 = vsel %vm307_vm2, %v281_v1, %v297_v2  ;;  %v4512_v24 = vsel %vm174_vm4, %v313_v15, %v264_v21  ;;  %v282_v27 = vrot.slane %v192_v16, 1  ;;  %v201_v21 = vld [vmem:[%s4351_s25 + $0xb8] sm:$0xff] }
  0x21   : > { %444 = vrot.lane.b32.xlu0 %v182_v25, %s4292_s26  ;;  %446 = vrot.lane.b32.xlu1 %v183_v26, %s4292_s26  ;;  %v265_v25 = vsel %vm242_vm1, %v232_v11, %v216_v10  ;;  %v298_v28 = vrot.slane %v193_v18, 1  ;;  %v4524_v29 = vsel %vm242_vm1, %v215_v61, %v231_v9  ;;  %v329_v30 = vsel %vm307_vm2, %v296_v63, %v280_v62 }
  0x22   : > { %v4520_v26 = vsel %vm174_vm4, %v314_v22, %v265_v25  ;;  %v217_v31 = vrot.slane %v192_v16, 7  ;;  %v233_v32 = vrot.slane %v193_v18, 7  ;;  %v383_v34 = vsel %vm177_vm3, %v4524_v29, %v329_v30 }
  0x23   : > { %v4547_v42 = vsel %vm242_vm1, %v216_v10, %v232_v11  ;;  %v300_v55 = vrot.slane %v197_v51, 1  ;;  %v235_v61 = vrot.slane %v197_v51, 7 }
  0x25   : > { %572 = vrot.lane.b32.xlu0 %v310_v37, %s4293_s27  ;;  %574 = vrot.lane.b32.xlu1 %v377_v38, %s4293_s27  ;;  %v194_v37 = vld [vmem:[%s4351_s25 + $0x80] sm:$0xff]  ;;  %v195_v38 = vld [vmem:[%s4351_s25 + $0x88] sm:$0xff] }
  0x26   : > { %v283_v40 = vrot.slane %v194_v37, 1  ;;  %v299_v41 = vrot.slane %v195_v38, 1  ;;  %v234_v46 = vrot.slane %v195_v38, 7 }
  0x28   : > { %v316_v48 = vsel %vm307_vm2, %v283_v40, %v299_v41  ;;  %v332_v10 = vsel %vm307_vm2, %v299_v41, %v283_v40 }
  0x29   : > { %448 = vrot.lane.b32.xlu0 %v184_v35, %s4292_s26  ;;  %450 = vrot.lane.b32.xlu1 %v185_v36, %s4292_s26  ;;  %v315_v35 = vsel %vm307_vm2, %v282_v27, %v298_v28  ;;  %v266_v36 = vsel %vm242_vm1, %v233_v32, %v217_v31 }
  0x2a   : > { %v4541_v39 = vsel %vm174_vm4, %v315_v35, %v266_v36 }
  0x2d   : > { %576 = vrot.lane.b32.xlu0 %v311_v49, %s4293_s27  ;;  %578 = vrot.lane.b32.xlu1 %v379_v50, %s4293_s27  ;;  %v196_v50 = vld [vmem:[%s4351_s25 + $0x90] sm:$0xff] }
  0x2e   : > { %v219_v60 = vrot.slane %v196_v50, 7 }
  0x30   : > { %v268_v0 = vsel %vm242_vm1, %v235_v61, %v219_v60 }
  0x31   : > { %452 = vrot.lane.b32.xlu0 %v186_v43, %s4292_s26  ;;  %454 = vrot.lane.b32.xlu1 %v187_v44, %s4292_s26  ;;  %v330_v43 = vsel %vm307_vm2, %v297_v2, %v281_v1  ;;  %v218_v44 = vrot.slane %v194_v37, 7  ;;  %v198_v1 = vld [vmem:[%s4351_s25 + $0xa0] sm:$0xff]  ;;  %v199_v2 = vld [vmem:[%s4351_s25 + $0xa8] sm:$0xff] }
  0x32   : > { %v385_v47 = vsel %vm177_vm3, %v4547_v42, %v330_v43  ;;  %v220_v11 = vrot.slane %v198_v1, 7  ;;  %v236_v13 = vrot.slane %v199_v2, 7 }
  0x33   : > { %v267_v49 = vsel %vm242_vm1, %v234_v46, %v218_v44  ;;  %v4600_v9 = vsel %vm242_vm1, %v218_v44, %v234_v46 }
  0x34   : > { %v4564_v52 = vsel %vm174_vm4, %v316_v48, %v267_v49  ;;  %v389_v14 = vsel %vm177_vm3, %v4600_v9, %v332_v10  ;;  %v4646_v44 = vsel %vm242_vm1, %v220_v11, %v236_v13 }
  0x35   : > { %580 = vrot.lane.b32.xlu0 %v312_v7, %s4293_s27  ;;  %582 = vrot.lane.b32.xlu1 %v381_v8, %s4293_s27  ;;  %v285_v7 = vrot.slane %v198_v1, 1  ;;  %v301_v8 = vrot.slane %v199_v2, 1 }
  0x37   : > { %v334_v46 = vsel %vm307_vm2, %v301_v8, %v285_v7 }
  0x38   : > { %v393_v49 = vsel %vm177_vm3, %v4646_v44, %v334_v46 }
  0x39   : > { %456 = vrot.lane.b32.xlu0 %v188_v53, %s4292_s26  ;;  %458 = vrot.lane.b32.xlu1 %v189_v54, %s4292_s26  ;;  %v4569_v53 = vld [vmem:[%s7339_s1 + $0x18] sm:$0xf]  ;;  %v284_v54 = vrot.slane %v196_v50, 1 }
  0x3a   : > { %4030 = vmatprep.subr.msk.mxu0 %vm825_vm0, %v4569_v53 }
  0x3b   : > { %v317_v63 = vsel %vm307_vm2, %v284_v54, %v300_v55  ;;  %v333_v30 = vsel %vm307_vm2, %v300_v55, %v284_v54  ;;  %v204_v54 = vld [vmem:[%s4351_s25 + $0xd0] sm:$0xff]  ;;  %v205_v55 = vld [vmem:[%s4351_s25 + $0xd8] sm:$0xff] }
  0x3c   : > { %v4594_v5 = vsel %vm174_vm4, %v317_v63, %v268_v0  ;;  %v223_v0 = vrot.slane %v204_v54, 7 }
  0x3d   : > { %584 = vrot.lane.b32.xlu0 %v313_v15, %s4293_s27  ;;  %586 = vrot.lane.b32.xlu1 %v383_v34, %s4293_s27  ;;  %v318_v15 = vsel %vm307_vm2, %v285_v7, %v301_v8 }
  0x41   : > { %460 = vrot.lane.b32.xlu0 %v190_v56, %s4292_s26  ;;  %462 = vrot.lane.b32.xlu1 %v191_v57, %s4292_s26  ;;  %v4577_v56 = vsel %vm242_vm1, %v217_v31, %v233_v32  ;;  %v331_v57 = vsel %vm307_vm2, %v298_v28, %v282_v27  ;;  %v302_v27 = vrot.slane %v201_v21, 1  ;;  %v4623_v28 = vsel %vm242_vm1, %v219_v60, %v235_v61 }
  0x42   : > { %v387_v62 = vsel %vm177_vm3, %v4577_v56, %v331_v57  ;;  %v237_v32 = vrot.slane %v201_v21, 7  ;;  %v391_v34 = vsel %vm177_vm3, %v4623_v28, %v333_v30  ;;  %v288_v60 = vrot.slane %v204_v54, 1 }
  0x43   : > { %v304_v61 = vrot.slane %v205_v55, 1 }
  0x45   : > { %588 = vrot.lane.b32.xlu0 %v314_v22, %s4293_s27  ;;  %590 = vrot.lane.b32.xlu1 %v385_v47, %s4293_s27  ;;  %v321_v7 = vsel %vm307_vm2, %v288_v60, %v304_v61 }
  0x49   : > { %464 = vrot.lane.b32.xlu0 %v192_v16, %s4292_s26  ;;  %466 = vrot.lane.b32.xlu1 %v193_v18, %s4292_s26  ;;  %v269_v16 = vsel %vm242_vm1, %v236_v13, %v220_v11  ;;  %v200_v18 = vld [vmem:[%s4351_s25 + $0xb0] sm:$0xff] }
  0x4a   : > { %v4617_v22 = vsel %vm174_vm4, %v318_v15, %v269_v16  ;;  %v286_v25 = vrot.slane %v200_v18, 1  ;;  %v221_v31 = vrot.slane %v200_v18, 7  ;;  %v337_v16 = vsel %vm307_vm2, %v304_v61, %v288_v60 }
  0x4c   : > { %v270_v36 = vsel %vm242_vm1, %v237_v32, %v221_v31 }
  0x4d   : > { %592 = vrot.lane.b32.xlu0 %v315_v35, %s4293_s27  ;;  %594 = vrot.lane.b32.xlu1 %v387_v62, %s4293_s27  ;;  %v319_v35 = vsel %vm307_vm2, %v286_v25, %v302_v27  ;;  %v4669_v62 = vsel %vm242_vm1, %v221_v31, %v237_v32 }
  0x4e   : > { %v4640_v40 = vsel %vm174_vm4, %v319_v35, %v270_v36  ;;  %v4739_v36 = vld [vmem:[%s4351_s25 + $0xf0] sm:$0xff] }
  0x51   : > { %468 = vrot.lane.b32.xlu0 %v194_v37, %s4292_s26  ;;  %470 = vrot.lane.b32.xlu1 %v195_v38, %s4292_s26  ;;  %v202_v37 = vld [vmem:[%s4351_s25 + $0xc0] sm:$0xff]  ;;  %v203_v38 = vld [vmem:[%s4351_s25 + $0xc8] sm:$0xff] }
  0x52   : > { %v287_v41 = vrot.slane %v202_v37, 1  ;;  %v303_v43 = vrot.slane %v203_v38, 1  ;;  %v222_v47 = vrot.slane %v202_v37, 7 }
  0x54   : > { %v336_v13 = vsel %vm307_vm2, %v303_v43, %v287_v41 }
  0x55   : > { %596 = vrot.lane.b32.xlu0 %v316_v48, %s4293_s27  ;;  %598 = vrot.lane.b32.xlu1 %v389_v14, %s4293_s27  ;;  %v238_v48 = vrot.slane %v203_v38, 7 }
  0x57   : > { %v4690_v11 = vsel %vm242_vm1, %v222_v47, %v238_v48 }
  0x58   : > { %v397_v14 = vsel %vm177_vm3, %v4690_v11, %v336_v13  ;;  %v3545_v13 = vld [vmem:[%s7339_s1 + $0x10] sm:$0xff] }
  0x59   : > { %472 = vrot.lane.b32.xlu0 %v196_v50, %s4292_s26  ;;  %474 = vrot.lane.b32.xlu1 %v197_v51, %s4292_s26  ;;  %v320_v50 = vsel %vm307_vm2, %v287_v41, %v303_v43  ;;  %v271_v51 = vsel %vm242_vm1, %v238_v48, %v222_v47  ;;  %v225_v47 = vrot.slane %v4739_v36, 7 }
  0x5a   : > { %v4663_v57 = vsel %vm174_vm4, %v320_v50, %v271_v51 }
  0x5d   : > { %600 = vrot.lane.b32.xlu0 %v317_v63, %s4293_s27  ;;  %602 = vrot.lane.b32.xlu1 %v391_v34, %s4293_s27  ;;  %v335_v63 = vsel %vm307_vm2, %v302_v27, %v286_v25 }
  0x61   : > { %476 = vrot.lane.b32.xlu0 %v198_v1, %s4292_s26  ;;  %478 = vrot.lane.b32.xlu1 %v199_v2, %s4292_s26  ;;  %v239_v1 = vrot.slane %v205_v55, 7  ;;  %v395_v2 = vsel %vm177_vm3, %v4669_v62, %v335_v63 }
  0x63   : > { %v272_v8 = vsel %vm242_vm1, %v239_v1, %v223_v0 }
  0x64   : > { %v4684_v10 = vsel %vm174_vm4, %v321_v7, %v272_v8 }
  0x65   : > { %604 = vrot.lane.b32.xlu0 %v318_v15, %s4293_s27  ;;  %606 = vrot.lane.b32.xlu1 %v393_v49, %s4293_s27  ;;  %v4703_v15 = vsel %vm242_vm1, %v223_v0, %v239_v1  ;;  %v290_v49 = vrot.slane %v4739_v36, 1 }
  0x66   : > { %v399_v25 = vsel %vm177_vm3, %v4703_v15, %v337_v16 }
  0x69   : > { %480 = vrot.lane.b32.xlu0 %v200_v18, %s4292_s26  ;;  %482 = vrot.lane.b32.xlu1 %v201_v21, %s4292_s26  ;;  %v4708_v18 = vld [vmem:[%s4351_s25 + $0xe0] sm:$0xff]  ;;  %v4711_v21 = vld [vmem:[%s4351_s25 + $0xe8] sm:$0xff] }
  0x6a   : > { %v224_v27 = vrot.slane %v4708_v18, 7  ;;  %v240_v30 = vrot.slane %v4711_v21, 7  ;;  %v289_v31 = vrot.slane %v4708_v18, 1  ;;  %v305_v32 = vrot.slane %v4711_v21, 1 }
  0x6c   : > { %v4730_v34 = vsel %vm242_vm1, %v224_v27, %v240_v30 }
  0x6d   : > { %608 = vrot.lane.b32.xlu0 %v319_v35, %s4293_s27  ;;  %610 = vrot.lane.b32.xlu1 %v395_v2, %s4293_s27  ;;  %v338_v35 = vsel %vm307_vm2, %v305_v32, %v289_v31 }
  0x6e   : > { %v401_v41 = vsel %vm177_vm3, %v4730_v34, %v338_v35 }
  0x71   : > { %484 = vrot.lane.b32.xlu0 %v202_v37, %s4292_s26  ;;  %486 = vrot.lane.b32.xlu1 %v203_v38, %s4292_s26  ;;  %v4742_v37 = vld [vmem:[%s4351_s25 + $0xf8] sm:$0xff]  ;;  %v4746_v38 = vsel %vm307_vm2, %v289_v31, %v305_v32 }
  0x72   : > { %v241_v48 = vrot.slane %v4742_v37, 7 }
  0x74   : > { %v4769_v61 = vsel %vm242_vm1, %v225_v47, %v241_v48 }
  0x75   : > { %612 = vrot.lane.b32.xlu0 %v320_v50, %s4293_s27  ;;  %614 = vrot.lane.b32.xlu1 %v397_v14, %s4293_s27  ;;  %v306_v50 = vrot.slane %v4742_v37, 1 }
  0x77   : > { %v339_v63 = vsel %vm307_vm2, %v306_v50, %v290_v49 }
  0x79   : > { %488 = vrot.lane.b32.xlu0 %v204_v54, %s4292_s26  ;;  %490 = vrot.lane.b32.xlu1 %v205_v55, %s4292_s26 }
  0x7d   : > { %616 = vrot.lane.b32.xlu0 %v321_v7, %s4293_s27  ;;  %618 = vrot.lane.b32.xlu1 %v399_v25, %s4293_s27  ;;  %v403_v7 = vsel %vm177_vm3, %v4769_v61, %v339_v63 }
  0x81   : > { %492 = vrot.lane.b32.xlu0 %v4708_v18, %s4292_s26  ;;  %494 = vrot.lane.b32.xlu1 %v4711_v21, %s4292_s26 }
  0x83   : > { %v443_v43 = vpop.permute.xlu1 %442  ;;  %v437_v46 = vpop.permute.xlu0 %436 }
  0x84   : > { %v661_v51 = vsel %vm660_vm5, %v4459_v58, %v437_v46  ;;  %v4783_v58 = vsel %vm307_vm2, %v290_v49, %v306_v50 }
  0x85   : > { %620 = vrot.lane.b32.xlu0 %v4746_v38, %s4293_s27  ;;  %622 = vrot.lane.b32.xlu1 %v401_v41, %s4293_s27 }
  0x87   : > { %v439_v54 = vpop.permute.xlu0 %438  ;;  %v565_v55 = vpop.permute.xlu1 %564 }
  0x88   : > { %v4761_v60 = vsel %vm693_vm6, %v661_v51, %v565_v55  ;;  %v662_v0 = vsel %vm660_vm5, %v4380_v17, %v439_v54  ;;  %v664_v17 = vsel %vm660_vm5, %v4400_v23, %v443_v43 }
  0x89   : > { %496 = vrot.lane.b32.xlu0 %v4739_v36, %s4292_s26  ;;  %3930 = vmatprep.mubr.msk.f32.mxu0 %vm728_vm7, %v4761_v60 }
  0x8a   : > { %3982 = vmatprep.mubr.msk.f32.mxu1 %vm728_vm7, %v4761_v60  ;;  %498 = vrot.lane.b32.xlu1 %v4742_v37, %s4292_s26 }
  0x8b   : > { %v441_v1 = vpop.permute.xlu0 %440  ;;  %v567_v2 = vpop.permute.xlu1 %566 }
  0x8c   : > { %v4791_v8 = vsel %vm693_vm6, %v662_v0, %v567_v2  ;;  %v663_v14 = vsel %vm660_vm5, %v4475_v3, %v441_v1 }
  0x8d   : > { %624 = vrot.lane.b32.xlu0 %v4783_v58, %s4293_s27  ;;  %3931 = vmatmul.mubr.msk.f32.vlgmr.msra.gmra.mxu0 %vm728_vm7, %v4791_v8 }
  0x8e   : > { %626 = vrot.lane.b32.xlu1 %v403_v7, %s4293_s27  ;;  %3983 = vmatmul.mubr.msk.f32.vlgmr.msra.gmra.mxu1 %vm728_vm7, %v4791_v8 }
  0x8f   : > { %v569_v16 = vpop.permute.xlu0 %568  ;;  %v571_v25 = vpop.permute.xlu1 %570  ;;  %4031 = vmatpush3.msk.msra.mxu0 %vm825_vm0, %v4569_v53 }
  0x90   : > { %v4810_v31 = vsel %vm693_vm6, %v663_v14, %v569_v16  ;;  %v4813_v32 = vsel %vm693_vm6, %v664_v17, %v571_v25  ;;  %4032 = vmatprep.subr.mxu0 %v3545_v13 }
  0x91   : > { %3933 = vmatprep.mubr.msk.f32.mxu0 %vm728_vm7, %v4810_v31  ;;  %3985 = vmatprep.mubr.msk.f32.mxu1 %vm728_vm7, %v4810_v31 }
  0x92   : > { %3934 = vmatmul.mubr.msk.f32.gmra.mxu0 %vm728_vm7, %v4813_v32  ;;  %3986 = vmatmul.mubr.msk.f32.gmra.mxu1 %vm728_vm7, %v4813_v32 }
  0x93   : > { %v445_v23 = vpop.permute.xlu0 %444  ;;  %v447_v3 = vpop.permute.xlu1 %446  ;;  %4033 = vmatpush3.msra.mxu0 %v3545_v13 }
  0x94   : > { %v665_v53 = vsel %vm660_vm5, %v4488_v12, %v445_v23  ;;  %v666_v35 = vsel %vm660_vm5, %v4418_v33, %v447_v3 }
  0x97   : > { %v573_v41 = vpop.permute.xlu0 %572  ;;  %v575_v43 = vpop.permute.xlu1 %574 }
  0x98   : > { %v4828_v46 = vsel %vm693_vm6, %v665_v53, %v573_v41  ;;  %v4831_v49 = vsel %vm693_vm6, %v666_v35, %v575_v43 }
  0x99   : > { %3936 = vmatprep.mubr.msk.f32.mxu0 %vm728_vm7, %v4828_v46  ;;  %3988 = vmatprep.mubr.msk.f32.mxu1 %vm728_vm7, %v4828_v46 }
  0x9a   : > { %3937 = vmatmul.mubr.msk.f32.gmra.mxu0 %vm728_vm7, %v4831_v49  ;;  %3989 = vmatmul.mubr.msk.f32.gmra.mxu1 %vm728_vm7, %v4831_v49 }
  0x9b   : > { %v449_v33 = vpop.permute.xlu0 %448  ;;  %v451_v12 = vpop.permute.xlu1 %450 }
  0x9c   : > { %v667_v50 = vsel %vm660_vm5, %v4500_v19, %v449_v33  ;;  %v668_v51 = vsel %vm660_vm5, %v4437_v45, %v451_v12 }
  0x9f   : > { %v577_v54 = vpop.permute.xlu0 %576  ;;  %v579_v55 = vpop.permute.xlu1 %578 }
  0xa0   : > { %v4846_v63 = vsel %vm693_vm6, %v667_v50, %v577_v54  ;;  %v4849_v0 = vsel %vm693_vm6, %v668_v51, %v579_v55 }
  0xa1   : > { %3939 = vmatprep.mubr.msk.f32.mxu0 %vm728_vm7, %v4846_v63  ;;  %3991 = vmatprep.mubr.msk.f32.mxu1 %vm728_vm7, %v4846_v63 }
  0xa2   : > { %3940 = vmatmul.mubr.msk.f32.gmra.mxu0 %vm728_vm7, %v4849_v0  ;;  %3992 = vmatmul.mubr.msk.f32.gmra.mxu1 %vm728_vm7, %v4849_v0 }
  0xa3   : > { %v453_v45 = vpop.permute.xlu0 %452  ;;  %v455_v19 = vpop.permute.xlu1 %454 }
  0xa4   : > { %v669_v1 = vsel %vm660_vm5, %v4504_v20, %v453_v45  ;;  %v670_v2 = vsel %vm660_vm5, %v4463_v59, %v455_v19 }
  0xa7   : > { %v581_v7 = vpop.permute.xlu0 %580  ;;  %v583_v13 = vpop.permute.xlu1 %582 }
  0xa8   : > { %v4864_v17 = vsel %vm693_vm6, %v669_v1, %v581_v7  ;;  %v4867_v14 = vsel %vm693_vm6, %v670_v2, %v583_v13 }
  0xa9   : > { %3942 = vmatprep.mubr.msk.f32.mxu0 %vm728_vm7, %v4864_v17  ;;  %3994 = vmatprep.mubr.msk.f32.mxu1 %vm728_vm7, %v4864_v17 }
  0xaa   : > { %3943 = vmatmul.mubr.msk.f32.gmra.mxu0 %vm728_vm7, %v4867_v14  ;;  %3995 = vmatmul.mubr.msk.f32.gmra.mxu1 %vm728_vm7, %v4867_v14 }
  0xab   : > { %v457_v59 = vpop.permute.xlu0 %456  ;;  %v459_v20 = vpop.permute.xlu1 %458 }
  0xac   : > { %v671_v16 = vsel %vm660_vm5, %v4512_v24, %v457_v59  ;;  %v672_v25 = vsel %vm660_vm5, %v4524_v29, %v459_v20 }
  0xaf   : > { %v585_v23 = vpop.permute.xlu0 %584  ;;  %v587_v3 = vpop.permute.xlu1 %586 }
  0xb0   : > { %v4882_v53 = vsel %vm693_vm6, %v671_v16, %v585_v23  ;;  %v4885_v35 = vsel %vm693_vm6, %v672_v25, %v587_v3 }
  0xb1   : > { %3945 = vmatprep.mubr.msk.f32.mxu0 %vm728_vm7, %v4882_v53  ;;  %3997 = vmatprep.mubr.msk.f32.mxu1 %vm728_vm7, %v4882_v53 }
  0xb2   : > { %3946 = vmatmul.mubr.msk.f32.gmra.mxu0 %vm728_vm7, %v4885_v35  ;;  %3998 = vmatmul.mubr.msk.f32.gmra.mxu1 %vm728_vm7, %v4885_v35 }
  0xb3   : > { %v461_v24 = vpop.permute.xlu0 %460  ;;  %v463_v29 = vpop.permute.xlu1 %462 }
  0xb4   : > { %v673_v41 = vsel %vm660_vm5, %v4520_v26, %v461_v24  ;;  %v674_v43 = vsel %vm660_vm5, %v4547_v42, %v463_v29 }
  0xb7   : > { %v589_v33 = vpop.permute.xlu0 %588  ;;  %v591_v12 = vpop.permute.xlu1 %590 }
  0xb8   : > { %v4900_v50 = vsel %vm693_vm6, %v673_v41, %v589_v33  ;;  %v4903_v51 = vsel %vm693_vm6, %v674_v43, %v591_v12 }
  0xb9   : > { %3948 = vmatprep.mubr.msk.f32.mxu0 %vm728_vm7, %v4900_v50  ;;  %4000 = vmatprep.mubr.msk.f32.mxu1 %vm728_vm7, %v4900_v50 }
  0xba   : > { %3949 = vmatmul.mubr.msk.f32.gmra.mxu0 %vm728_vm7, %v4903_v51  ;;  %4001 = vmatmul.mubr.msk.f32.gmra.mxu1 %vm728_vm7, %v4903_v51 }
  0xbb   : > { %v465_v26 = vpop.permute.xlu0 %464  ;;  %v467_v42 = vpop.permute.xlu1 %466 }
  0xbc   : > { %v675_v54 = vsel %vm660_vm5, %v4541_v39, %v465_v26  ;;  %v676_v55 = vsel %vm660_vm5, %v4577_v56, %v467_v42 }
  0xbf   : > { %v593_v45 = vpop.permute.xlu0 %592  ;;  %v595_v19 = vpop.permute.xlu1 %594 }
  0xc0   : > { %v4918_v1 = vsel %vm693_vm6, %v675_v54, %v593_v45  ;;  %v4921_v2 = vsel %vm693_vm6, %v676_v55, %v595_v19 }
  0xc1   : > { %3951 = vmatprep.mubr.msk.f32.mxu0 %vm728_vm7, %v4918_v1  ;;  %4003 = vmatprep.mubr.msk.f32.mxu1 %vm728_vm7, %v4918_v1 }
  0xc2   : > { %3952 = vmatmul.mubr.msk.f32.gmra.mxu0 %vm728_vm7, %v4921_v2  ;;  %4004 = vmatmul.mubr.msk.f32.gmra.mxu1 %vm728_vm7, %v4921_v2 }
  0xc3   : > { %v469_v39 = vpop.permute.xlu0 %468  ;;  %v471_v56 = vpop.permute.xlu1 %470 }
  0xc4   : > { %v677_v7 = vsel %vm660_vm5, %v4564_v52, %v469_v39  ;;  %v678_v13 = vsel %vm660_vm5, %v4600_v9, %v471_v56 }
  0xc7   : > { %v597_v59 = vpop.permute.xlu0 %596  ;;  %v599_v20 = vpop.permute.xlu1 %598 }
  0xc8   : > { %v4936_v16 = vsel %vm693_vm6, %v677_v7, %v597_v59  ;;  %v4939_v25 = vsel %vm693_vm6, %v678_v13, %v599_v20 }
  0xc9   : > { %3954 = vmatprep.mubr.msk.f32.mxu0 %vm728_vm7, %v4936_v16  ;;  %4006 = vmatprep.mubr.msk.f32.mxu1 %vm728_vm7, %v4936_v16 }
  0xca   : > { %3955 = vmatmul.mubr.msk.f32.gmra.mxu0 %vm728_vm7, %v4939_v25  ;;  %4007 = vmatmul.mubr.msk.f32.gmra.mxu1 %vm728_vm7, %v4939_v25 }
  0xcb   : > { %v473_v52 = vpop.permute.xlu0 %472  ;;  %v475_v9 = vpop.permute.xlu1 %474 }
  0xcc   : > { %v679_v23 = vsel %vm660_vm5, %v4594_v5, %v473_v52  ;;  %v680_v3 = vsel %vm660_vm5, %v4623_v28, %v475_v9 }
  0xcf   : > { %v601_v24 = vpop.permute.xlu0 %600  ;;  %v603_v29 = vpop.permute.xlu1 %602 }
  0xd0   : > { %v4954_v41 = vsel %vm693_vm6, %v679_v23, %v601_v24  ;;  %v4957_v43 = vsel %vm693_vm6, %v680_v3, %v603_v29 }
  0xd1   : > { %3957 = vmatprep.mubr.msk.f32.mxu0 %vm728_vm7, %v4954_v41  ;;  %4009 = vmatprep.mubr.msk.f32.mxu1 %vm728_vm7, %v4954_v41 }
  0xd2   : > { %3958 = vmatmul.mubr.msk.f32.gmra.mxu0 %vm728_vm7, %v4957_v43  ;;  %4010 = vmatmul.mubr.msk.f32.gmra.mxu1 %vm728_vm7, %v4957_v43 }
  0xd3   : > { %v477_v5 = vpop.permute.xlu0 %476  ;;  %v479_v28 = vpop.permute.xlu1 %478 }
  0xd4   : > { %v681_v33 = vsel %vm660_vm5, %v4617_v22, %v477_v5  ;;  %v682_v12 = vsel %vm660_vm5, %v4646_v44, %v479_v28 }
  0xd7   : > { %v605_v26 = vpop.permute.xlu0 %604  ;;  %v607_v42 = vpop.permute.xlu1 %606 }
  0xd8   : > { %v4972_v54 = vsel %vm693_vm6, %v681_v33, %v605_v26  ;;  %v4975_v55 = vsel %vm693_vm6, %v682_v12, %v607_v42 }
  0xd9   : > { %3960 = vmatprep.mubr.msk.f32.mxu0 %vm728_vm7, %v4972_v54  ;;  %4012 = vmatprep.mubr.msk.f32.mxu1 %vm728_vm7, %v4972_v54 }
  0xda   : > { %3961 = vmatmul.mubr.msk.f32.gmra.mxu0 %vm728_vm7, %v4975_v55  ;;  %4013 = vmatmul.mubr.msk.f32.gmra.mxu1 %vm728_vm7, %v4975_v55 }
  0xdb   : > { %v481_v22 = vpop.permute.xlu0 %480  ;;  %v483_v44 = vpop.permute.xlu1 %482 }
  0xdc   : > { %v683_v45 = vsel %vm660_vm5, %v4640_v40, %v481_v22  ;;  %v684_v19 = vsel %vm660_vm5, %v4669_v62, %v483_v44 }
  0xdf   : > { %v609_v39 = vpop.permute.xlu0 %608  ;;  %v611_v56 = vpop.permute.xlu1 %610 }
  0xe0   : > { %v4990_v7 = vsel %vm693_vm6, %v683_v45, %v609_v39  ;;  %v4993_v13 = vsel %vm693_vm6, %v684_v19, %v611_v56 }
  0xe1   : > { %3963 = vmatprep.mubr.msk.f32.mxu0 %vm728_vm7, %v4990_v7  ;;  %4015 = vmatprep.mubr.msk.f32.mxu1 %vm728_vm7, %v4990_v7 }
  0xe2   : > { %3964 = vmatmul.mubr.msk.f32.gmra.mxu0 %vm728_vm7, %v4993_v13  ;;  %4016 = vmatmul.mubr.msk.f32.gmra.mxu1 %vm728_vm7, %v4993_v13 }
  0xe3   : > { %v485_v40 = vpop.permute.xlu0 %484  ;;  %v487_v62 = vpop.permute.xlu1 %486 }
  0xe4   : > { %v685_v59 = vsel %vm660_vm5, %v4663_v57, %v485_v40  ;;  %v686_v20 = vsel %vm660_vm5, %v4690_v11, %v487_v62 }
  0xe7   : > { %v613_v52 = vpop.permute.xlu0 %612  ;;  %v615_v9 = vpop.permute.xlu1 %614 }
  0xe8   : > { %v5008_v23 = vsel %vm693_vm6, %v685_v59, %v613_v52  ;;  %v5011_v3 = vsel %vm693_vm6, %v686_v20, %v615_v9 }
  0xe9   : > { %3966 = vmatprep.mubr.msk.f32.mxu0 %vm728_vm7, %v5008_v23  ;;  %4018 = vmatprep.mubr.msk.f32.mxu1 %vm728_vm7, %v5008_v23 }
  0xea   : > { %3967 = vmatmul.mubr.msk.f32.gmra.mxu0 %vm728_vm7, %v5011_v3  ;;  %4019 = vmatmul.mubr.msk.f32.gmra.mxu1 %vm728_vm7, %v5011_v3 }
  0xeb   : > { %v489_v57 = vpop.permute.xlu0 %488  ;;  %v491_v11 = vpop.permute.xlu1 %490 }
  0xec   : > { %v687_v24 = vsel %vm660_vm5, %v4684_v10, %v489_v57  ;;  %v688_v29 = vsel %vm660_vm5, %v4703_v15, %v491_v11  ;;  %v273_v10 = vsel %vm242_vm1, %v240_v30, %v224_v27  ;;  %v274_v30 = vsel %vm242_vm1, %v241_v48, %v225_v47 }
  0xed   : > { %v368_v42 = vsel %vm174_vm4, %v4746_v38, %v273_v10  ;;  %v370_v38 = vsel %vm174_vm4, %v4783_v58, %v274_v30 }
  0xef   : > { %v617_v5 = vpop.permute.xlu0 %616  ;;  %v619_v28 = vpop.permute.xlu1 %618 }
  0xf0   : > { %v720_v33 = vsel %vm693_vm6, %v687_v24, %v617_v5  ;;  %v721_v12 = vsel %vm693_vm6, %v688_v29, %v619_v28 }
  0xf1   : > { %3969 = vmatprep.mubr.msk.f32.mxu0 %vm728_vm7, %v720_v33  ;;  %4021 = vmatprep.mubr.msk.f32.mxu1 %vm728_vm7, %v720_v33 }
  0xf2   : > { %3970 = vmatmul.mubr.msk.f32.gmra.mxu0 %vm728_vm7, %v721_v12  ;;  %4022 = vmatmul.mubr.msk.f32.gmra.mxu1 %vm728_vm7, %v721_v12 }
  0xf3   : > { %v493_v15 = vpop.permute.xlu0 %492  ;;  %v495_v26 = vpop.permute.xlu1 %494 }
  0xf4   : > { %v689_v22 = vsel %vm660_vm5, %v368_v42, %v493_v15  ;;  %v690_v18 = vsel %vm660_vm5, %v4730_v34, %v495_v26 }
  0xf7   : > { %v621_v44 = vpop.permute.xlu0 %620  ;;  %v623_v21 = vpop.permute.xlu1 %622 }
  0xf8   : > { %v722_v45 = vsel %vm693_vm6, %v689_v22, %v621_v44  ;;  %v723_v27 = vsel %vm693_vm6, %v690_v18, %v623_v21 }
  0xf9   : > { %3972 = vmatprep.mubr.msk.f32.mxu0 %vm728_vm7, %v722_v45  ;;  %4024 = vmatprep.mubr.msk.f32.mxu1 %vm728_vm7, %v722_v45 }
  0xfa   : > { %3973 = vmatmul.mubr.msk.f32.gmra.mxu0 %vm728_vm7, %v723_v27  ;;  %4025 = vmatmul.mubr.msk.f32.gmra.mxu1 %vm728_vm7, %v723_v27 }
  0xfb   : > { %v497_v34 = vpop.permute.xlu0 %496 }
  0xfc   : > { %v499_v19 = vpop.permute.xlu1 %498  ;;  %v691_v39 = vsel %vm660_vm5, %v370_v38, %v497_v34 }
  0xfd   : > { %v692_v36 = vsel %vm660_vm5, %v4769_v61, %v499_v19 }
  0xff   : > { %v625_v56 = vpop.permute.xlu0 %624 }
 0x100   : > { %v724_v37 = vsel %vm693_vm6, %v691_v39, %v625_v56  ;;  %v627_v40 = vpop.permute.xlu1 %626 }
 0x101   : > { %v725_v47 = vsel %vm693_vm6, %v692_v36, %v627_v40  ;;  %3975 = vmatprep.mubr.msk.f32.mxu0 %vm728_vm7, %v724_v37  ;;  %4027 = vmatprep.mubr.msk.f32.mxu1 %vm728_vm7, %v724_v37 }
 0x102   : > { %3976 = vmatmul.mubr.msk.f32.gmra.mxu0 %vm728_vm7, %v725_v47  ;;  %4028 = vmatmul.mubr.msk.f32.gmra.mxu1 %vm728_vm7, %v725_v47 }
 0x103   : > { %4034 = vmatprep.mubr.msk.f32.mxu0 %vm728_vm7, %v4761_v60 }
 0x106   : > { %4035 = vmatmul.mubr.msk.f32.vlgmr.msra.gmra.mxu0 %vm728_vm7, %v4791_v8 }
 0x107   : > { %4037 = vmatprep.mubr.msk.f32.mxu0 %vm728_vm7, %v4810_v31 }
 0x10a   : > { %4038 = vmatmul.mubr.msk.f32.gmra.mxu0 %vm728_vm7, %v4813_v32 }
 0x10b   : > { %4040 = vmatprep.mubr.msk.f32.mxu0 %vm728_vm7, %v4828_v46 }
 0x10e   : > { %4041 = vmatmul.mubr.msk.f32.gmra.mxu0 %vm728_vm7, %v4831_v49 }
 0x10f   : > { %4043 = vmatprep.mubr.msk.f32.mxu0 %vm728_vm7, %v4846_v63 }
 0x112   : > { %4044 = vmatmul.mubr.msk.f32.gmra.mxu0 %vm728_vm7, %v4849_v0 }
 0x113   : > { %4046 = vmatprep.mubr.msk.f32.mxu0 %vm728_vm7, %v4864_v17 }
 0x116   : > { %4047 = vmatmul.mubr.msk.f32.gmra.mxu0 %vm728_vm7, %v4867_v14 }
 0x117   : > { %4049 = vmatprep.mubr.msk.f32.mxu0 %vm728_vm7, %v4882_v53 }
 0x11a   : > { %4050 = vmatmul.mubr.msk.f32.gmra.mxu0 %vm728_vm7, %v4885_v35 }
 0x11b   : > { %4052 = vmatprep.mubr.msk.f32.mxu0 %vm728_vm7, %v4900_v50 }
 0x11e   : > { %4053 = vmatmul.mubr.msk.f32.gmra.mxu0 %vm728_vm7, %v4903_v51 }
 0x11f   : > { %4055 = vmatprep.mubr.msk.f32.mxu0 %vm728_vm7, %v4918_v1 }
 0x122   : > { %4056 = vmatmul.mubr.msk.f32.gmra.mxu0 %vm728_vm7, %v4921_v2 }
 0x123   : > { %4058 = vmatprep.mubr.msk.f32.mxu0 %vm728_vm7, %v4936_v16 }
 0x126   : > { %4059 = vmatmul.mubr.msk.f32.gmra.mxu0 %vm728_vm7, %v4939_v25 }
 0x127   : > { %4061 = vmatprep.mubr.msk.f32.mxu0 %vm728_vm7, %v4954_v41 }
 0x12a   : > { %4062 = vmatmul.mubr.msk.f32.gmra.mxu0 %vm728_vm7, %v4957_v43 }
 0x12b   : > { %4064 = vmatprep.mubr.msk.f32.mxu0 %vm728_vm7, %v4972_v54 }
 0x12e   : > { %4065 = vmatmul.mubr.msk.f32.gmra.mxu0 %vm728_vm7, %v4975_v55 }
 0x12f   : > { %4067 = vmatprep.mubr.msk.f32.mxu0 %vm728_vm7, %v4990_v7 }
 0x132   : > { %4068 = vmatmul.mubr.msk.f32.gmra.mxu0 %vm728_vm7, %v4993_v13 }
 0x133   : > { %4070 = vmatprep.mubr.msk.f32.mxu0 %vm728_vm7, %v5008_v23 }
 0x136   : > { %4071 = vmatmul.mubr.msk.f32.gmra.mxu0 %vm728_vm7, %v5011_v3 }
 0x137   : > { %4073 = vmatprep.mubr.msk.f32.mxu0 %vm728_vm7, %v720_v33 }
 0x13a   : > { %4074 = vmatmul.mubr.msk.f32.gmra.mxu0 %vm728_vm7, %v721_v12 }
 0x13b   : > { %4076 = vmatprep.mubr.msk.f32.mxu0 %vm728_vm7, %v722_v45 }
 0x13e   : > { %4077 = vmatmul.mubr.msk.f32.gmra.mxu0 %vm728_vm7, %v723_v27 }
 0x13f   : > { %4079 = vmatprep.mubr.msk.f32.mxu0 %vm728_vm7, %v724_v37 }
 0x142   : > { %4080 = vmatmul.mubr.msk.f32.gmra.mxu0 %vm728_vm7, %v725_v47 }
 0x14d   : > { %v3932_v61 = vpop.f32.mrf.mxu0 }
 0x14e   : > { %v3984_v48 = vpop.f32.mrf.mxu1 }
 0x14f   : > { %v895_v58 = vpop.f32.mrf.mxu0 }
 0x150   : > { %v1127_v60 = vpop.f32.mrf.mxu1 }
 0x152   : > { %v3935_v8 = vpop.f32.mrf.mxu0  ;;  %v3987_v55 = vpop.f32.mrf.mxu1 }
 0x154   : > { %v5125_v31 = vpop.f32.mrf.mxu0  ;;  %v1135_v13 = vpop.f32.mrf.mxu1 }
 0x15a   : > { %v5127_v32 = vpop.f32.mrf.mxu0  ;;  %v3990_v59 = vpop.f32.mrf.mxu1 }
 0x15c   : > { %v5129_v46 = vpop.f32.mrf.mxu0  ;;  %v1145_v52 = vpop.f32.mrf.mxu1 }
 0x162   : > { %v5131_v49 = vpop.f32.mrf.mxu0  ;;  %v3993_v23 = vpop.f32.mrf.mxu1 }
 0x164   : > { %v5133_v63 = vpop.f32.mrf.mxu0  ;;  %v1155_v57 = vpop.f32.mrf.mxu1 }
 0x16a   : > { %v5135_v0 = vpop.f32.mrf.mxu0  ;;  %v3996_v24 = vpop.f32.mrf.mxu1 }
 0x16c   : > { %v5137_v17 = vpop.f32.mrf.mxu0  ;;  %v1165_v5 = vpop.f32.mrf.mxu1 }
 0x172   : > { %v5139_v14 = vpop.f32.mrf.mxu0  ;;  %v5179_v33 = vpop.f32.mrf.mxu1 }
 0x174   : > { %v5141_v53 = vpop.f32.mrf.mxu0  ;;  %v5181_v15 = vpop.f32.mrf.mxu1 }
 0x17a   : > { %v5143_v35 = vpop.f32.mrf.mxu0  ;;  %v5183_v22 = vpop.f32.mrf.mxu1 }
 0x17c   : > { %v5145_v50 = vpop.f32.mrf.mxu0  ;;  %v5190_v34 = vpop.f32.mrf.mxu1 }
 0x182   : > { %v5147_v51 = vpop.f32.mrf.mxu0  ;;  %v5196_v56 = vpop.f32.mrf.mxu1 }
 0x184   : > { %v5149_v1 = vpop.f32.mrf.mxu0 }
 0x18a   : > { %v5151_v2 = vpop.f32.mrf.mxu0 }
 0x18c   : > { %v5153_v16 = vpop.f32.mrf.mxu0 }
 0x192   : > { %v5155_v25 = vpop.f32.mrf.mxu0 }
 0x194   : > { %v5157_v41 = vpop.f32.mrf.mxu0 }
 0x19a   : > { %v5159_v43 = vpop.f32.mrf.mxu0 }
 0x19c   : > { %v5161_v54 = vpop.f32.mrf.mxu0 }
 0x1a2   : > { %v5163_v7 = vpop.f32.mrf.mxu0 }
 0x1a4   : > { %v5165_v62 = vpop.f32.mrf.mxu0 }
 0x1aa   : > { %v5167_v20 = vpop.f32.mrf.mxu0 }
 0x1ac   : > { %v5169_v9 = vpop.f32.mrf.mxu0 }
 0x1b2   : > { %v5171_v3 = vpop.f32.mrf.mxu0 }
 0x1b4   : > { %v5173_v11 = vpop.f32.mrf.mxu0 }
 0x1ba   : > { %v5175_v29 = vpop.f32.mrf.mxu0 }
 0x1bc   : > { %v5177_v28 = vpop.f32.mrf.mxu0 }
 0x1c2   : > { %v3977_v12 = vpop.f32.mrf.mxu0 }
 0x1c4   : > { %v1045_v10 = vpop.f32.mrf.mxu0 }
 0x1c6   : > { %v4036_v26 = vpop.f32.mrf.mxu0 }
 0x1c7   : > { %v1359_v42 = vadd.f32 %v4036_v26, %v3935_v8  ;;  %v5210_v26 = vpop.f32.mrf.mxu1 }
 0x1c8   : > { %v1353_v18 = vpop.f32.mrf.mxu0 }
 0x1c9   : > { %v1354_v44 = vadd.f32 %v1353_v18, %v5125_v31  ;;  %v5186_v21 = vadd.f32 %v3987_v55, %v1359_v42 }
 0x1ca   : > { %v4039_v45 = vpop.f32.mrf.mxu0 }
 0x1cb   : > { %v5188_v27 = vadd.f32 %v1354_v44, %v1135_v13  ;;  %v1369_v30 = vadd.f32 %v4039_v45, %v3932_v61  ;;  %v1615_v36 = vmul.f32 %v5186_v21, %v5186_v21  ;;  %v1545_v60 = vsel %vm660_vm5, %v5186_v21, 0.0 }
 0x1cc   : > { %v1363_v38 = vpop.f32.mrf.mxu0 }
 0x1cd   : > { %v1614_v19 = vmul.f32 %v5188_v27, %v5188_v27  ;;  %v5194_v39 = vadd.f32 %v3990_v59, %v1369_v30  ;;  %v1544_v37 = vsel %vm660_vm5, %v5188_v27, 0.0  ;;  %v1364_v40 = vadd.f32 %v1363_v38, %v895_v58  ;;  %v5221_v38 = vpop.f32.mrf.mxu1 }
 0x1ce   : > { %v4042_v47 = vpop.f32.mrf.mxu0  ;;  %v1546_v59 = vadd.f32 %v1545_v60, %v1544_v37  ;;  %v1647_v58 = vsel %vm660_vm5, %v1615_v36, 0.0 }
 0x1cf   : > { %v1379_v48 = vadd.f32 %v4042_v47, %v3935_v8  ;;  %v1646_v61 = vsel %vm660_vm5, %v1614_v19, 0.0  ;;  %v5205_v55 = vadd.f32 %v1364_v40, %v1145_v52  ;;  %v1617_v12 = vmul.f32 %v5194_v39, %v5194_v39 }
 0x1d0   : > { %v1373_v13 = vpop.f32.mrf.mxu0  ;;  %v1648_v44 = vadd.f32 %v1647_v58, %v1646_v61  ;;  %v5238_v58 = vpop.f32.mrf.mxu1 }
 0x1d1   : > { %v1374_v10 = vadd.f32 %v1373_v13, %v5125_v31  ;;  %v1547_v8 = vsel %vm660_vm5, %v5205_v55, 0.0  ;;  %v1616_v42 = vmul.f32 %v5205_v55, %v5205_v55  ;;  %v5217_v18 = vadd.f32 %v3993_v23, %v1379_v48 }
 0x1d2   : > { %v4045_v52 = vpop.f32.mrf.mxu0  ;;  %v1548_v45 = vadd.f32 %v1547_v8, %v1546_v59  ;;  %v1549_v31 = vsel %vm660_vm5, %v5194_v39, 0.0  ;;  %v1651_v40 = vsel %vm660_vm5, %v1617_v12, 0.0 }
 0x1d3   : > { %v5219_v30 = vadd.f32 %v1374_v10, %v1155_v57  ;;  %v1649_v19 = vsel %vm660_vm5, %v1616_v42, 0.0  ;;  %v1389_v36 = vadd.f32 %v4045_v52, %v5127_v32  ;;  %v1619_v57 = vmul.f32 %v5217_v18, %v5217_v18 }
 0x1d4   : > { %v1383_v37 = vpop.f32.mrf.mxu0  ;;  %v1650_v47 = vadd.f32 %v1649_v19, %v1648_v44  ;;  %v1550_v23 = vadd.f32 %v1549_v31, %v1548_v45  ;;  %v1553_v8 = vsel %vm660_vm5, %v5217_v18, 0.0  ;;  %v5248_v19 = vpop.f32.mrf.mxu1 }
 0x1d5   : > { %v1551_v48 = vsel %vm660_vm5, %v5219_v30, 0.0  ;;  %v1618_v60 = vmul.f32 %v5219_v30, %v5219_v30  ;;  %v5234_v61 = vadd.f32 %v3996_v24, %v1389_v36  ;;  %v1384_v13 = vadd.f32 %v1383_v37, %v5129_v46 }
 0x1d6   : > { %v4048_v59 = vpop.f32.mrf.mxu0  ;;  %v1552_v32 = vadd.f32 %v1551_v48, %v1550_v23  ;;  %v1652_v10 = vadd.f32 %v1651_v40, %v1650_v47 }
 0x1d7   : > { %v1399_v12 = vadd.f32 %v4048_v59, %v5131_v49  ;;  %v1653_v42 = vsel %vm660_vm5, %v1618_v60, 0.0  ;;  %v5243_v52 = vadd.f32 %v1384_v13, %v1165_v5  ;;  %v1621_v24 = vmul.f32 %v5234_v61, %v5234_v61 }
 0x1d8   : > { %v1393_v44 = vpop.f32.mrf.mxu0  ;;  %v1654_v45 = vadd.f32 %v1653_v42, %v1652_v10  ;;  %v1554_v46 = vadd.f32 %v1553_v8, %v1552_v32  ;;  %v1655_v49 = vsel %vm660_vm5, %v1619_v57, 0.0  ;;  %v1557_v48 = vsel %vm660_vm5, %v5234_v61, 0.0 }
 0x1d9   : > { %v1394_v31 = vadd.f32 %v1393_v44, %v5133_v63  ;;  %v1555_v36 = vsel %vm660_vm5, %v5243_v52, 0.0  ;;  %v1620_v37 = vmul.f32 %v5243_v52, %v5243_v52  ;;  %v5256_v5 = vadd.f32 %v5179_v33, %v1399_v12  ;;  %v1215_v12 = vpop.f32.mrf.mxu1 }
 0x1da   : > { %v4051_v40 = vpop.f32.mrf.mxu0  ;;  %v1556_v47 = vadd.f32 %v1555_v36, %v1554_v46  ;;  %v1656_v23 = vadd.f32 %v1655_v49, %v1654_v45  ;;  %v1659_v59 = vsel %vm660_vm5, %v1621_v24, 0.0 }
 0x1db   : > { %v1657_v63 = vsel %vm660_vm5, %v1620_v37, 0.0  ;;  %v5262_v60 = vadd.f32 %v1394_v31, %v5181_v15  ;;  %v1409_v57 = vadd.f32 %v4051_v40, %v5135_v0  ;;  %v1623_v8 = vmul.f32 %v5256_v5, %v5256_v5  ;;  %v4014_v31 = vpop.f32.mrf.mxu1 }
 0x1dc   : > { %v1403_v13 = vpop.f32.mrf.mxu0  ;;  %v1658_v32 = vadd.f32 %v1657_v63, %v1656_v23  ;;  %v1558_v10 = vadd.f32 %v1557_v48, %v1556_v47  ;;  %v1561_v49 = vsel %vm660_vm5, %v5256_v5, 0.0 }
 0x1dd   : > { %v1404_v33 = vadd.f32 %v1403_v13, %v5137_v17  ;;  %v1559_v42 = vsel %vm660_vm5, %v5262_v60, 0.0  ;;  %v1622_v15 = vmul.f32 %v5262_v60, %v5262_v60  ;;  %v5274_v44 = vadd.f32 %v5183_v22, %v1409_v57 }
 0x1de   : > { %v4054_v0 = vpop.f32.mrf.mxu0  ;;  %v1560_v45 = vadd.f32 %v1559_v42, %v1558_v10  ;;  %v1660_v24 = vadd.f32 %v1659_v59, %v1658_v32 }
 0x1df   : > { %v5277_v46 = vadd.f32 %v1404_v33, %v5190_v34  ;;  %v1419_v17 = vadd.f32 %v4054_v0, %v5139_v14  ;;  %v1661_v36 = vsel %vm660_vm5, %v1622_v15, 0.0  ;;  %v1663_v34 = vsel %vm660_vm5, %v1623_v8, 0.0  ;;  %v1225_v33 = vpop.f32.mrf.mxu1 }
 0x1e0   : > { %v1413_v37 = vpop.f32.mrf.mxu0  ;;  %v1662_v40 = vadd.f32 %v1661_v36, %v1660_v24  ;;  %v1562_v47 = vadd.f32 %v1561_v49, %v1560_v45  ;;  %v1625_v14 = vmul.f32 %v5274_v44, %v5274_v44  ;;  %v1565_v42 = vsel %vm660_vm5, %v5274_v44, 0.0 }
 0x1e1   : > { %v1563_v22 = vsel %vm660_vm5, %v5277_v46, 0.0  ;;  %v1624_v23 = vmul.f32 %v5277_v46, %v5277_v46  ;;  %v5291_v48 = vadd.f32 %v5196_v56, %v1419_v17  ;;  %v1414_v63 = vadd.f32 %v1413_v37, %v5141_v53  ;;  %v4017_v24 = vpop.f32.mrf.mxu1 }
 0x1e2   : > { %v4057_v57 = vpop.f32.mrf.mxu0  ;;  %v1564_v13 = vadd.f32 %v1563_v22, %v1562_v47  ;;  %v1664_v59 = vadd.f32 %v1663_v34, %v1662_v40  ;;  %v1667_v17 = vsel %vm660_vm5, %v1625_v14, 0.0 }
 0x1e3   : > { %v1665_v32 = vsel %vm660_vm5, %v1624_v23, 0.0  ;;  %v1429_v10 = vadd.f32 %v4057_v57, %v5143_v35  ;;  %v5299_v8 = vadd.f32 %v1414_v63, %v5210_v26  ;;  %v1627_v56 = vmul.f32 %v5291_v48, %v5291_v48 }
 0x1e4   : > { %v1423_v15 = vpop.f32.mrf.mxu0  ;;  %v1666_v0 = vadd.f32 %v1665_v32, %v1664_v59  ;;  %v1566_v53 = vadd.f32 %v1565_v42, %v1564_v13  ;;  %v1569_v47 = vsel %vm660_vm5, %v5291_v48, 0.0  ;;  %v1235_v13 = vpop.f32.mrf.mxu1 }
 0x1e5   : > { %v1424_v45 = vadd.f32 %v1423_v15, %v5145_v50  ;;  %v1567_v35 = vsel %vm660_vm5, %v5299_v8, 0.0  ;;  %v1626_v49 = vmul.f32 %v5299_v8, %v5299_v8  ;;  %v5310_v26 = vadd.f32 %v5221_v38, %v1429_v10 }
 0x1e6   : > { %v4060_v36 = vpop.f32.mrf.mxu0  ;;  %v1568_v37 = vadd.f32 %v1567_v35, %v1566_v53  ;;  %v1668_v40 = vadd.f32 %v1667_v17, %v1666_v0  ;;  %v1671_v14 = vsel %vm660_vm5, %v1627_v56, 0.0  ;;  %v4020_v56 = vpop.f32.mrf.mxu1 }
 0x1e7   : > { %v1669_v50 = vsel %vm660_vm5, %v1626_v49, 0.0  ;;  %v5316_v22 = vadd.f32 %v1424_v45, %v5238_v58  ;;  %v1439_v23 = vadd.f32 %v4060_v36, %v5147_v51  ;;  %v1629_v59 = vmul.f32 %v5310_v26, %v5310_v26 }
 0x1e8   : > { %v1433_v34 = vpop.f32.mrf.mxu0  ;;  %v1670_v63 = vadd.f32 %v1669_v50, %v1668_v40  ;;  %v1570_v57 = vadd.f32 %v1569_v47, %v1568_v37  ;;  %v1573_v53 = vsel %vm660_vm5, %v5310_v26, 0.0 }
 0x1e9   : > { %v1434_v38 = vadd.f32 %v1433_v34, %v5149_v1  ;;  %v1571_v32 = vsel %vm660_vm5, %v5316_v22, 0.0  ;;  %v1628_v58 = vmul.f32 %v5316_v22, %v5316_v22  ;;  %v5328_v10 = vadd.f32 %v5248_v19, %v1439_v23 }
 0x1ea   : > { %v4063_v51 = vpop.f32.mrf.mxu0  ;;  %v1572_v42 = vadd.f32 %v1571_v32, %v1570_v57  ;;  %v1672_v15 = vadd.f32 %v1671_v14, %v1670_v63  ;;  %v1245_v63 = vpop.f32.mrf.mxu1 }
 0x1eb   : > { %v5330_v0 = vadd.f32 %v1434_v38, %v1215_v12  ;;  %v1449_v1 = vadd.f32 %v4063_v51, %v5151_v2  ;;  %v1673_v45 = vsel %vm660_vm5, %v1628_v58, 0.0  ;;  %v1675_v12 = vsel %vm660_vm5, %v1629_v59, 0.0 }
 0x1ec   : > { %v1443_v17 = vpop.f32.mrf.mxu0  ;;  %v1674_v35 = vadd.f32 %v1673_v45, %v1672_v15  ;;  %v1574_v49 = vadd.f32 %v1573_v53, %v1572_v42  ;;  %v1631_v2 = vmul.f32 %v5328_v10, %v5328_v10  ;;  %v1577_v57 = vsel %vm660_vm5, %v5328_v10, 0.0  ;;  %v4023_v51 = vpop.f32.mrf.mxu1 }
 0x1ed   : > { %v1575_v19 = vsel %vm660_vm5, %v5330_v0, 0.0  ;;  %v1630_v36 = vmul.f32 %v5330_v0, %v5330_v0  ;;  %v5343_v37 = vadd.f32 %v4014_v31, %v1449_v1  ;;  %v1444_v40 = vadd.f32 %v1443_v17, %v5153_v16 }
 0x1ee   : > { %v4066_v47 = vpop.f32.mrf.mxu0  ;;  %v1576_v50 = vadd.f32 %v1575_v19, %v1574_v49  ;;  %v1676_v23 = vadd.f32 %v1675_v12, %v1674_v35  ;;  %v1679_v42 = vsel %vm660_vm5, %v1631_v2, 0.0 }
 0x1ef   : > { %v1677_v34 = vsel %vm660_vm5, %v1630_v36, 0.0  ;;  %v1459_v14 = vadd.f32 %v4066_v47, %v5155_v25  ;;  %v5350_v38 = vadd.f32 %v1444_v40, %v1225_v33  ;;  %v1633_v31 = vmul.f32 %v5343_v37, %v5343_v37  ;;  %v1255_v40 = vpop.f32.mrf.mxu1 }
 0x1f0   : > { %v1453_v59 = vpop.f32.mrf.mxu0  ;;  %v1678_v32 = vadd.f32 %v1677_v34, %v1676_v23  ;;  %v1578_v58 = vadd.f32 %v1577_v57, %v1576_v50  ;;  %v1581_v17 = vsel %vm660_vm5, %v5343_v37, 0.0 }
 0x1f1   : > { %v1454_v16 = vadd.f32 %v1453_v59, %v5157_v41  ;;  %v1579_v25 = vsel %vm660_vm5, %v5350_v38, 0.0  ;;  %v1632_v15 = vmul.f32 %v5350_v38, %v5350_v38  ;;  %v5360_v1 = vadd.f32 %v4017_v24, %v1459_v14 }
 0x1f2   : > { %v4069_v33 = vpop.f32.mrf.mxu0  ;;  %v1580_v53 = vadd.f32 %v1579_v25, %v1578_v58  ;;  %v1680_v45 = vadd.f32 %v1679_v42, %v1678_v32  ;;  %v1683_v36 = vsel %vm660_vm5, %v1633_v31, 0.0 }
 0x1f3   : > { %v1681_v35 = vsel %vm660_vm5, %v1632_v15, 0.0  ;;  %v5365_v41 = vadd.f32 %v1454_v16, %v1235_v13  ;;  %v1469_v49 = vadd.f32 %v4069_v33, %v5159_v43  ;;  %v1635_v47 = vmul.f32 %v5360_v1, %v5360_v1 }
 0x1f4   : > { %v1463_v19 = vpop.f32.mrf.mxu0  ;;  %v1682_v12 = vadd.f32 %v1681_v35, %v1680_v45  ;;  %v1582_v2 = vadd.f32 %v1581_v17, %v1580_v53  ;;  %v1585_v32 = vsel %vm660_vm5, %v5360_v1, 0.0 }
 0x1f5   : > { %v1464_v24 = vadd.f32 %v1463_v19, %v5161_v54  ;;  %v1583_v50 = vsel %vm660_vm5, %v5365_v41, 0.0  ;;  %v1634_v13 = vmul.f32 %v5365_v41, %v5365_v41  ;;  %v5376_v23 = vadd.f32 %v4020_v56, %v1469_v49  ;;  %v4026_v54 = vpop.f32.mrf.mxu1 }
 0x1f6   : > { %v4072_v43 = vpop.f32.mrf.mxu0  ;;  %v1584_v34 = vadd.f32 %v1583_v50, %v1582_v2  ;;  %v1684_v14 = vadd.f32 %v1683_v36, %v1682_v12 }
 0x1f7   : > { %v5378_v57 = vadd.f32 %v1464_v24, %v1245_v63  ;;  %v1479_v59 = vadd.f32 %v4072_v43, %v5163_v7  ;;  %v1685_v31 = vsel %vm660_vm5, %v1634_v13, 0.0  ;;  %v1687_v63 = vsel %vm660_vm5, %v1635_v47, 0.0  ;;  %v1265_v19 = vpop.f32.mrf.mxu1 }
 0x1f8   : > { %v1473_v58 = vpop.f32.mrf.mxu0  ;;  %v1686_v16 = vadd.f32 %v1685_v31, %v1684_v14  ;;  %v1586_v42 = vadd.f32 %v1585_v32, %v1584_v34  ;;  %v1637_v7 = vmul.f32 %v5376_v23, %v5376_v23  ;;  %v1589_v36 = vsel %vm660_vm5, %v5376_v23, 0.0 }
 0x1f9   : > { %v1587_v56 = vsel %vm660_vm5, %v5378_v57, 0.0  ;;  %v1636_v25 = vmul.f32 %v5378_v57, %v5378_v57  ;;  %v5391_v15 = vadd.f32 %v4023_v51, %v1479_v59  ;;  %v1474_v33 = vadd.f32 %v1473_v58, %v5165_v62  ;;  %v4029_v50 = vpop.f32.mrf.mxu1 }
 0x1fa   : > { %v4075_v53 = vpop.f32.mrf.mxu0  ;;  %v1588_v45 = vadd.f32 %v1587_v56, %v1586_v42  ;;  %v1688_v17 = vadd.f32 %v1687_v63, %v1686_v16  ;;  %v1691_v13 = vsel %vm660_vm5, %v1637_v7, 0.0 }
 0x1fb   : > { %v1689_v35 = vsel %vm660_vm5, %v1636_v25, 0.0  ;;  %v1489_v49 = vadd.f32 %v4075_v53, %v5167_v20  ;;  %v5398_v12 = vadd.f32 %v1474_v33, %v1255_v40  ;;  %v1639_v51 = vmul.f32 %v5391_v15, %v5391_v15  ;;  %v1275_v7 = vpop.f32.mrf.mxu1 }
 0x1fc   : > { %v1483_v2 = vpop.f32.mrf.mxu0  ;;  %v1690_v24 = vadd.f32 %v1689_v35, %v1688_v17  ;;  %v1590_v47 = vadd.f32 %v1589_v36, %v1588_v45  ;;  %v1593_v32 = vsel %vm660_vm5, %v5391_v15, 0.0 }
 0x1fd   : > { %v1484_v62 = vadd.f32 %v1483_v2, %v5169_v9  ;;  %v1591_v20 = vsel %vm660_vm5, %v5398_v12, 0.0  ;;  %v1638_v43 = vmul.f32 %v5398_v12, %v5398_v12  ;;  %v5408_v34 = vadd.f32 %v4026_v54, %v1489_v49 }
 0x1fe   : > { %v4078_v40 = vpop.f32.mrf.mxu0  ;;  %v1592_v14 = vadd.f32 %v1591_v20, %v1590_v47  ;;  %v1692_v59 = vadd.f32 %v1691_v13, %v1690_v24  ;;  %v1695_v42 = vsel %vm660_vm5, %v1639_v51, 0.0 }
 0x1ff   : > { %v1693_v31 = vsel %vm660_vm5, %v1638_v43, 0.0  ;;  %v5413_v9 = vadd.f32 %v1484_v62, %v1265_v19  ;;  %v1499_v58 = vadd.f32 %v4078_v40, %v5171_v3  ;;  %v1641_v33 = vmul.f32 %v5408_v34, %v5408_v34 }
 0x200   : > { %v1493_v16 = vpop.f32.mrf.mxu0  ;;  %v1694_v56 = vadd.f32 %v1693_v31, %v1692_v59  ;;  %v1594_v25 = vadd.f32 %v1593_v32, %v1592_v14 }
 0x201   : > { %v1494_v63 = vadd.f32 %v1493_v16, %v5173_v11  ;;  %v1595_v53 = vsel %vm660_vm5, %v5413_v9, 0.0  ;;  %v1640_v45 = vmul.f32 %v5413_v9, %v5413_v9  ;;  %v5424_v17 = vadd.f32 %v4029_v50, %v1499_v58 }
 0x202   : > { %v4081_v3 = vpop.f32.mrf.mxu0  ;;  %v1596_v35 = vadd.f32 %v1595_v53, %v1594_v25  ;;  %v1696_v49 = vadd.f32 %v1695_v42, %v1694_v56  ;;  %v1597_v11 = vsel %vm660_vm5, %v5408_v34, 0.0  ;;  %v1699_v20 = vsel %vm660_vm5, %v1641_v33, 0.0 }
 0x203   : > { %v5426_v36 = vadd.f32 %v1494_v63, %v1275_v7  ;;  %v1509_v2 = vadd.f32 %v4081_v3, %v5175_v29  ;;  %v1697_v24 = vsel %vm660_vm5, %v1640_v45, 0.0  ;;  %v1643_v43 = vmul.f32 %v5424_v17, %v5424_v17 }
 0x204   : > { %v1503_v51 = vpop.f32.mrf.mxu0  ;;  %v1698_v47 = vadd.f32 %v1697_v24, %v1696_v49  ;;  %v1598_v62 = vadd.f32 %v1597_v11, %v1596_v35  ;;  %v1601_v31 = vsel %vm660_vm5, %v5424_v17, 0.0 }
 0x205   : > { %v1599_v13 = vsel %vm660_vm5, %v5426_v36, 0.0  ;;  %v1642_v50 = vmul.f32 %v5426_v36, %v5426_v36  ;;  %v5439_v29 = vadd.f32 %v4026_v54, %v1509_v2  ;;  %v1504_v40 = vadd.f32 %v1503_v51, %v5177_v28 }
 0x206   : > { %v1600_v14 = vadd.f32 %v1599_v13, %v1598_v62  ;;  %v1700_v59 = vadd.f32 %v1699_v20, %v1698_v47  ;;  %v1703_v56 = vsel %vm660_vm5, %v1643_v43, 0.0 }
 0x207   : > { %v1701_v32 = vsel %vm660_vm5, %v1642_v50, 0.0  ;;  %v5445_v58 = vadd.f32 %v1504_v40, %v1265_v19  ;;  %v1645_v25 = vmul.f32 %v5439_v29, %v5439_v29  ;;  %v1605_v33 = vsel %vm660_vm5, %v5439_v29, 0.0 }
 0x208   : > { %v1702_v16 = vadd.f32 %v1701_v32, %v1700_v59  ;;  %v1602_v42 = vadd.f32 %v1601_v31, %v1600_v14 }
 0x209   : > { %v1603_v54 = vsel %vm660_vm5, %v5445_v58, 0.0  ;;  %v1644_v28 = vmul.f32 %v5445_v58, %v5445_v58  ;;  %v1707_v3 = vsel %vm660_vm5, %v1645_v25, 0.0 }
 0x20a   : > { %v1604_v63 = vadd.f32 %v1603_v54, %v1602_v42  ;;  %v1704_v7 = vadd.f32 %v1703_v56, %v1702_v16 }
 0x20b   : > { %v1705_v19 = vsel %vm660_vm5, %v1644_v28, 0.0 }
 0x20c   : > { %v1606_v53 = vadd.f32 %v1605_v33, %v1604_v63  ;;  %v1706_v45 = vadd.f32 %v1705_v19, %v1704_v7  ;;  %v2329_v19 = vld [vmem:[%s7340_s2 + $0x8] sm:$0xf] }
 0x20d   : > { %4082 = vmatprep.subr.msk.mxu1 %vm825_vm0, %v2329_v19 }
 0x20e   : > { %v1607_v35 = vrot.slane %v1606_v53, 4  ;;  %v1708_v49 = vadd.f32 %v1707_v3, %v1706_v45  ;;  %4083 = vmatpush3.msk.msra.mxu1 %vm825_vm0, %v2329_v19 }
 0x210   : > { %v1608_v2 = vadd.f32 %v1607_v35, %v1606_v53  ;;  %v1709_v11 = vrot.slane %v1708_v49, 4 }
 0x212   : > { %v1609_v24 = vrot.slane %v1608_v2, 2  ;;  %v1710_v51 = vadd.f32 %v1709_v11, %v1708_v49 }
 0x214   : > { %v1610_v47 = vadd.f32 %v1609_v24, %v1608_v2  ;;  %v1711_v62 = vrot.slane %v1710_v51, 2 }
 0x216   : > { %v1611_v13 = vrot.slane %v1610_v47, 1  ;;  %v1712_v50 = vadd.f32 %v1711_v62, %v1710_v51 }
 0x218   : > { %v1612_v20 = vadd.f32 %v1611_v13, %v1610_v47  ;;  %v1713_v43 = vrot.slane %v1712_v50, 1 }
 0x21a   : > { %v5458_v40 = vmul.f32 0.00390625, %v1612_v20  ;;  %v1714_v14 = vadd.f32 %v1713_v43, %v1712_v50 }
 0x21c   : > { %v1715_v59 = vmul.f32 0.00390625, %v1714_v14  ;;  %v1716_v32 = vmul.f32 %v5458_v40, %v5458_v40  ;;  %v1743_v42 = vsub.f32 %v5391_v15, %v5458_v40  ;;  %v1742_v56 = vsub.f32 %v5398_v12, %v5458_v40 }
 0x21d   : > { %v1745_v25 = vsub.f32 %v5408_v34, %v5458_v40  ;;  %v1744_v54 = vsub.f32 %v5413_v9, %v5458_v40  ;;  %v1747_v28 = vsub.f32 %v5424_v17, %v5458_v40  ;;  %v1746_v63 = vsub.f32 %v5426_v36, %v5458_v40 }
 0x21e   : > { %v1717_v31 = vsub.f32 %v1715_v59, %v1716_v32  ;;  %v1749_v7 = vsub.f32 %v5439_v29, %v5458_v40  ;;  %v1748_v33 = vsub.f32 %v5445_v58, %v5458_v40  ;;  %v1719_v53 = vsub.f32 %v5186_v21, %v5458_v40 }
 0x21f   : > { %v1718_v45 = vsub.f32 %v5188_v27, %v5458_v40  ;;  %v1721_v35 = vsub.f32 %v5194_v39, %v5458_v40  ;;  %v1720_v11 = vsub.f32 %v5205_v55, %v5458_v40  ;;  %v1723_v24 = vsub.f32 %v5217_v18, %v5458_v40 }
 0x220   : > { %v1750_v16 = vadd.f32 1e-05, %v1717_v31  ;;  %v1722_v21 = vsub.f32 %v5219_v30, %v5458_v40  ;;  %v1725_v27 = vsub.f32 %v5234_v61, %v5458_v40  ;;  %v1724_v51 = vsub.f32 %v5243_v52, %v5458_v40 }
 0x221   : > { %v1727_v39 = vsub.f32 %v5256_v5, %v5458_v40  ;;  %v1726_v30 = vsub.f32 %v5262_v60, %v5458_v40  ;;  %v1729_v61 = vsub.f32 %v5274_v44, %v5458_v40  ;;  %v1728_v52 = vsub.f32 %v5277_v46, %v5458_v40 }
 0x222   : > { %4248 = vrsqrt.f32 %v1750_v16  ;;  %v1731_v5 = vsub.f32 %v5291_v48, %v5458_v40  ;;  %v1730_v13 = vsub.f32 %v5299_v8, %v5458_v40  ;;  %v1733_v60 = vsub.f32 %v5310_v26, %v5458_v40 }
 0x223   : > { %v1732_v44 = vsub.f32 %v5316_v22, %v5458_v40  ;;  %v1735_v26 = vsub.f32 %v5328_v10, %v5458_v40  ;;  %v1734_v22 = vsub.f32 %v5330_v0, %v5458_v40  ;;  %v1737_v32 = vsub.f32 %v5343_v37, %v5458_v40 }
 0x224   : > { %v1736_v31 = vsub.f32 %v5350_v38, %v5458_v40  ;;  %v1739_v16 = vsub.f32 %v5360_v1, %v5458_v40  ;;  %v1738_v10 = vsub.f32 %v5365_v41, %v5458_v40  ;;  %v1741_v0 = vsub.f32 %v5376_v23, %v5458_v40 }
 0x22f   : > { %v5487_v3 = vpop.eup %4248 }
 0x230   : > { %v1753_v49 = vmul.f32 %v5487_v3, %v1719_v53  ;;  %v1752_v2 = vmul.f32 %v5487_v3, %v1718_v45  ;;  %v1755_v55 = vmul.f32 %v5487_v3, %v1721_v35  ;;  %v1754_v18 = vmul.f32 %v5487_v3, %v1720_v11 }
 0x231   : > { %v1757_v46 = vmul.f32 %v5487_v3, %v1723_v24  ;;  %v1756_v50 = vmul.f32 %v5487_v3, %v1722_v21  ;;  %v1759_v48 = vmul.f32 %v5487_v3, %v1725_v27  ;;  %v1758_v20 = vmul.f32 %v5487_v3, %v1724_v51 }
 0x232   : > { %v5505_v47 = vmax.f32 %v1753_v49, 0.0  ;;  %v5507_v62 = vmax.f32 %v1752_v2, 0.0  ;;  %v5533_v43 = vmax.f32 %v1755_v55, 0.0  ;;  %v5535_v14 = vmax.f32 %v1754_v18, 0.0 }
 0x233   : > { %v1761_v8 = vmul.f32 %v5487_v3, %v1727_v39  ;;  %v1760_v59 = vmul.f32 %v5487_v3, %v1726_v30  ;;  %v5557_v19 = vmax.f32 %v1757_v46, 0.0  ;;  %v5559_v37 = vmax.f32 %v1756_v50, 0.0 }
 0x234   : > { %2042 = vrot.lane.b32.xlu1 %v5505_v47, %s4292_s26  ;;  %2040 = vrot.lane.b32.xlu0 %v5507_v62, %s4292_s26  ;;  %v5561_v38 = vmax.f32 %v1759_v48, 0.0  ;;  %v1740_v53 = vsub.f32 %v5378_v57, %v5458_v40  ;;  %v5565_v45 = vmax.f32 %v1758_v20, 0.0  ;;  %v1763_v41 = vmul.f32 %v5487_v3, %v1729_v61 }
 0x235   : > { %v5567_v35 = vmax.f32 %v1761_v8, 0.0  ;;  %v5569_v1 = vmax.f32 %v1760_v59, 0.0  ;;  %v1762_v49 = vmul.f32 %v5487_v3, %v1728_v52  ;;  %v1765_v23 = vmul.f32 %v5487_v3, %v1731_v5 }
 0x236   : > { %v1764_v2 = vmul.f32 %v5487_v3, %v1730_v13  ;;  %v1767_v11 = vmul.f32 %v5487_v3, %v1733_v60  ;;  %v1766_v57 = vmul.f32 %v5487_v3, %v1732_v44  ;;  %v1769_v24 = vmul.f32 %v5487_v3, %v1735_v26 }
 0x237   : > { %v1768_v21 = vmul.f32 %v5487_v3, %v1734_v22  ;;  %v5591_v5 = vmax.f32 %v1763_v41, 0.0  ;;  %v5593_v13 = vmax.f32 %v1762_v49, 0.0  ;;  %v5595_v60 = vmax.f32 %v1765_v23, 0.0 }
 0x238   : > { %2046 = vrot.lane.b32.xlu1 %v5533_v43, %s4292_s26  ;;  %2044 = vrot.lane.b32.xlu0 %v5535_v14, %s4292_s26  ;;  %v5597_v44 = vmax.f32 %v1764_v2, 0.0  ;;  %v5603_v46 = vmax.f32 %v1767_v11, 0.0  ;;  %v5605_v50 = vmax.f32 %v1766_v57, 0.0  ;;  %v5607_v48 = vmax.f32 %v1769_v24, 0.0 }
 0x239   : > { %v5609_v20 = vmax.f32 %v1768_v21, 0.0  ;;  %v1771_v8 = vmul.f32 %v5487_v3, %v1737_v32  ;;  %v1770_v59 = vmul.f32 %v5487_v3, %v1736_v31  ;;  %v1773_v26 = vmul.f32 %v5487_v3, %v1739_v16 }
 0x23a   : > { %v1772_v22 = vmul.f32 %v5487_v3, %v1738_v10  ;;  %v1775_v41 = vmul.f32 %v5487_v3, %v1741_v0  ;;  %v1774_v49 = vmul.f32 %v5487_v3, %v1740_v53  ;;  %v1779_v23 = vmul.f32 %v5487_v3, %v1745_v25 }
 0x23b   : > { %v1778_v32 = vmul.f32 %v5487_v3, %v1744_v54  ;;  %v1781_v31 = vmul.f32 %v5487_v3, %v1747_v28  ;;  %v1780_v16 = vmul.f32 %v5487_v3, %v1746_v63  ;;  %v1783_v34 = vmul.f32 %v5487_v3, %v1749_v7 }
 0x23c   : > { %2050 = vrot.lane.b32.xlu1 %v5557_v19, %s4292_s26  ;;  %2048 = vrot.lane.b32.xlu0 %v5559_v37, %s4292_s26  ;;  %v1782_v9 = vmul.f32 %v5487_v3, %v1748_v33  ;;  %v7344_v17 = vrot.slane %v5591_v5, 7  ;;  %v7345_v36 = vrot.slane %v5593_v13, 7  ;;  %v1777_v29 = vmul.f32 %v5487_v3, %v1743_v42 }
 0x23d   : > { %v1776_v58 = vmul.f32 %v5487_v3, %v1742_v56  ;;  %v7346_v25 = vrot.slane %v5595_v60, 7  ;;  %v7347_v54 = vrot.slane %v5597_v44, 7  ;;  %v7348_v28 = vrot.slane %v5603_v46, 7  ;;  %v2328_v3 = vld [vmem:[%s7340_s2] sm:$0xff] }
 0x23e   : > { %v7349_v63 = vrot.slane %v5605_v50, 7  ;;  %v7350_v7 = vrot.slane %v5607_v48, 7  ;;  %v7351_v33 = vrot.slane %v5609_v20, 7  ;;  %v5661_v15 = vmax.f32 %v1771_v8, 0.0  ;;  %4084 = vmatprep.subr.mxu1 %v2328_v3 }
 0x23f   : > { %v5663_v42 = vmax.f32 %v1770_v59, 0.0  ;;  %v5665_v10 = vmax.f32 %v1773_v26, 0.0  ;;  %v5667_v12 = vmax.f32 %v1772_v22, 0.0  ;;  %v5669_v40 = vmax.f32 %v1775_v41, 0.0  ;;  %4085 = vmatpush3.msra.mxu1 %v2328_v3 }
 0x240   : > { %2054 = vrot.lane.b32.xlu1 %v5561_v38, %s4292_s26  ;;  %2052 = vrot.lane.b32.xlu0 %v5565_v45, %s4292_s26  ;;  %v5671_v56 = vmax.f32 %v1774_v49, 0.0  ;;  %v5680_v0 = vmax.f32 %v1777_v29, 0.0  ;;  %v5682_v53 = vmax.f32 %v1776_v58, 0.0  ;;  %v5684_v2 = vmax.f32 %v1779_v23, 0.0 }
 0x241   : > { %v5686_v11 = vmax.f32 %v1778_v32, 0.0  ;;  %v5688_v57 = vmax.f32 %v1781_v31, 0.0  ;;  %v5690_v24 = vmax.f32 %v1780_v16, 0.0  ;;  %v5692_v21 = vmax.f32 %v1783_v34, 0.0 }
 0x242   : > { %v5694_v8 = vmax.f32 %v1782_v9, 0.0  ;;  %v7354_v59 = vrot.slane %v5661_v15, 7  ;;  %v7359_v26 = vrot.slane %v5663_v42, 7  ;;  %v7343_v22 = vrot.slane %v5507_v62, 1 }
 0x243   : > { %v7342_v41 = vrot.slane %v5505_v47, 1  ;;  %v7357_v49 = vrot.slane %v5665_v10, 7  ;;  %v7358_v23 = vrot.slane %v5667_v12, 7  ;;  %v7362_v32 = vrot.slane %v5669_v40, 7 }
 0x244   : > { %2058 = vrot.lane.b32.xlu1 %v5567_v35, %s4292_s26  ;;  %2056 = vrot.lane.b32.xlu0 %v5569_v1, %s4292_s26  ;;  %v7363_v31 = vrot.slane %v5671_v56, 7  ;;  %v1885_v55 = vrot.slane %v5593_v13, 1  ;;  %v1901_v3 = vrot.slane %v5591_v5, 1  ;;  %v5734_v52 = vsel %vm242_vm1, %v7345_v36, %v7344_v17 }
 0x245   : > { %v5722_v18 = vsel %vm307_vm2, %v7343_v22, %v7342_v41  ;;  %v1886_v61 = vrot.slane %v5597_v44, 1  ;;  %v1902_v41 = vrot.slane %v5595_v60, 1  ;;  %v7353_v22 = vrot.slane %v5535_v14, 1 }
 0x246   : > { %v7352_v58 = vrot.slane %v5533_v43, 1  ;;  %v5750_v17 = vsel %vm242_vm1, %v7347_v54, %v7346_v25  ;;  %v1887_v36 = vrot.slane %v5605_v50, 1  ;;  %v7356_v27 = vrot.slane %v5559_v37, 1 }
 0x247   : > { %v5756_v51 = vsel %vm307_vm2, %v1885_v55, %v1901_v3  ;;  %v5760_v29 = vsel %vm307_vm2, %v1901_v3, %v1885_v55  ;;  %v5764_v9 = vsel %vm307_vm2, %v1886_v61, %v1902_v41  ;;  %v7355_v39 = vrot.slane %v5557_v19, 1 }
 0x248   : > { %2062 = vrot.lane.b32.xlu1 %v5591_v5, %s4292_s26  ;;  %2060 = vrot.lane.b32.xlu0 %v5593_v13, %s4292_s26  ;;  %v5769_v25 = vsel %vm307_vm2, %v1902_v41, %v1886_v61  ;;  %v1903_v54 = vrot.slane %v5603_v46, 1  ;;  %v5778_v55 = vsel %vm242_vm1, %v7349_v63, %v7348_v28  ;;  %v1888_v30 = vrot.slane %v5609_v20, 1 }
 0x249   : > { %7374 = vst [vmem:[#allocation2_spill] sm:$0xff] %v5778_v55  ;;  %v1904_v34 = vrot.slane %v5607_v48, 1  ;;  %v5789_v61 = vsel %vm242_vm1, %v7351_v33, %v7350_v7  ;;  %v1889_v63 = vrot.slane %v5663_v42, 1  ;;  %v1905_v3 = vrot.slane %v5661_v15, 1 }
 0x24a   : > { %7375 = vst [vmem:[#allocation3_spill] sm:$0xff] %v5789_v61  ;;  %v5797_v41 = vsel %vm307_vm2, %v1887_v36, %v1903_v54  ;;  %v5801_v28 = vsel %vm307_vm2, %v1903_v54, %v1887_v36  ;;  %v5811_v7 = vsel %vm307_vm2, %v7353_v22, %v7352_v58  ;;  %v5827_v54 = vsel %vm242_vm1, %v7359_v26, %v7354_v59 }
 0x24b   : > { %v5815_v33 = vsel %vm307_vm2, %v1888_v30, %v1904_v34  ;;  %v5819_v36 = vsel %vm307_vm2, %v1904_v34, %v1888_v30  ;;  %7377 = vst [vmem:[#allocation5_spill] sm:$0xff] %v5827_v54  ;;  %v5832_v58 = vsel %vm307_vm2, %v1889_v63, %v1905_v3  ;;  %v5836_v22 = vsel %vm307_vm2, %v1905_v3, %v1889_v63 }
 0x24c   : > { %2066 = vrot.lane.b32.xlu1 %v5595_v60, %s4292_s26  ;;  %2064 = vrot.lane.b32.xlu0 %v5597_v44, %s4292_s26  ;;  %7376 = vst [vmem:[#allocation4_spill] sm:$0xff] %v5819_v36  ;;  %7378 = vst [vmem:[#allocation6_spill] sm:$0xff] %v5836_v22  ;;  %v1890_v30 = vrot.slane %v5667_v12, 1  ;;  %v5845_v34 = vsel %vm307_vm2, %v7356_v27, %v7355_v39  ;;  %v1906_v59 = vrot.slane %v5665_v10, 1  ;;  %v1891_v3 = vrot.slane %v5671_v56, 1 }
 0x24d   : > { %v5854_v63 = vsel %vm242_vm1, %v7358_v23, %v7357_v49  ;;  %v1907_v39 = vrot.slane %v5669_v40, 1  ;;  %v5868_v27 = vsel %vm242_vm1, %v7363_v31, %v7362_v32  ;;  %v1892_v49 = vrot.slane %v5682_v53, 1 }
 0x24e   : > { %7379 = vst [vmem:[#allocation7_spill] sm:$0xff] %v5854_v63  ;;  %7380 = vst [vmem:[#allocation8_spill] sm:$0xff] %v5868_v27  ;;  %v1908_v23 = vrot.slane %v5680_v0, 1  ;;  %v5874_v26 = vsel %vm307_vm2, %v1890_v30, %v1906_v59  ;;  %v5878_v16 = vsel %vm307_vm2, %v1906_v59, %v1890_v30  ;;  %v7382_v63 = vrot.slane %v5680_v0, 7 }
 0x24f   : > { %7381 = vst [vmem:[#allocation9_spill] sm:$0xff] %v5878_v16  ;;  %v7383_v54 = vrot.slane %v5682_v53, 7  ;;  %v7385_v31 = vrot.slane %v5507_v62, 7  ;;  %v7386_v27 = vrot.slane %v5505_v47, 7  ;;  %v5897_v59 = vsel %vm307_vm2, %v1891_v3, %v1907_v39 }
 0x250   : > { %2070 = vrot.lane.b32.xlu1 %v5603_v46, %s4292_s26  ;;  %2068 = vrot.lane.b32.xlu0 %v5605_v50, %s4292_s26  ;;  %v5901_v30 = vsel %vm307_vm2, %v1907_v39, %v1891_v3  ;;  %v7390_v39 = vrot.slane %v5561_v38, 1  ;;  %v7391_v3 = vrot.slane %v5565_v45, 1  ;;  %v7393_v61 = vrot.slane %v5686_v11, 7 }
 0x251   : > { %v5886_v32 = vsel %vm242_vm1, %v7383_v54, %v7382_v63  ;;  %v1864_v22 = vsel %vm242_vm1, %v7386_v27, %v7385_v31  ;;  %7387 = vst [vmem:[#allocation11_spill] sm:$0xff] %v5901_v30  ;;  %v5905_v54 = vsel %vm307_vm2, %v1892_v49, %v1908_v23  ;;  %v1893_v31 = vrot.slane %v5686_v11, 1 }
 0x252   : > { %7384 = vst [vmem:[#allocation10_spill] sm:$0xff] %v5886_v32  ;;  %v5910_v32 = vsel %vm307_vm2, %v1908_v23, %v1892_v49  ;;  %v5915_v27 = vsel %vm174_vm4, %v5722_v18, %v1864_v22  ;;  %v5928_v49 = vsel %vm307_vm2, %v7391_v3, %v7390_v39  ;;  %v1909_v23 = vrot.slane %v5684_v2, 1 }
 0x253   : > { %7388 = vst [vmem:[#allocation12_spill] sm:$0xff] %v5910_v32  ;;  %7389 = vst [vmem:[#allocation13_spill] sm:$0xff] %v5915_v27  ;;  %v7392_v22 = vrot.slane %v5684_v2, 7  ;;  %v7395_v27 = vrot.slane %v5535_v14, 7  ;;  %v7396_v32 = vrot.slane %v5533_v43, 7  ;;  %v1894_v3 = vrot.slane %v5690_v24, 1 }
 0x254   : > { %2074 = vrot.lane.b32.xlu1 %v5607_v48, %s4292_s26  ;;  %2072 = vrot.lane.b32.xlu0 %v5609_v20, %s4292_s26  ;;  %v1910_v16 = vrot.slane %v5688_v57, 1  ;;  %v7398_v36 = vrot.slane %v5688_v57, 7  ;;  %v1895_v55 = vrot.slane %v5694_v8, 1 }
 0x255   : > { %v5937_v63 = vsel %vm242_vm1, %v7393_v61, %v7392_v22  ;;  %v1865_v30 = vsel %vm242_vm1, %v7396_v32, %v7395_v27  ;;  %v7399_v61 = vrot.slane %v5690_v24, 7  ;;  %v5962_v32 = vsel %vm307_vm2, %v1893_v31, %v1909_v23 }
 0x256   : > { %7394 = vst [vmem:[#allocation14_spill] sm:$0xff] %v5937_v63  ;;  %v5948_v39 = vsel %vm174_vm4, %v5811_v7, %v1865_v30  ;;  %7401 = vst [vmem:[#allocation17_spill] sm:$0xff] %v5962_v32  ;;  %v5966_v30 = vsel %vm307_vm2, %v1909_v23, %v1893_v31  ;;  %v7403_v27 = vrot.slane %v5559_v37, 7  ;;  %v5985_v31 = vsel %vm307_vm2, %v1894_v3, %v1910_v16 }
 0x257   : > { %7397 = vst [vmem:[#allocation15_spill] sm:$0xff] %v5948_v39  ;;  %v5958_v22 = vsel %vm242_vm1, %v7399_v61, %v7398_v36  ;;  %7402 = vst [vmem:[#allocation18_spill] sm:$0xff] %v5966_v30  ;;  %v7404_v39 = vrot.slane %v5557_v19, 7  ;;  %v7405_v36 = vrot.slane %v5567_v35, 1  ;;  %v7406_v61 = vrot.slane %v5569_v1, 1 }
 0x258   : > { %2078 = vrot.lane.b32.xlu1 %v5661_v15, %s4292_s26  ;;  %2076 = vrot.lane.b32.xlu0 %v5663_v42, %s4292_s26  ;;  %7400 = vst [vmem:[#allocation16_spill] sm:$0xff] %v5958_v22  ;;  %7407 = vst [vmem:[#allocation19_spill] sm:$0xff] %v5985_v31  ;;  %v5989_v23 = vsel %vm307_vm2, %v1910_v16, %v1894_v3  ;;  %v7413_v3 = vrot.slane %v5565_v45, 7  ;;  %v7417_v32 = vrot.slane %v5567_v35, 7 }
 0x259   : > { %v1866_v63 = vsel %vm242_vm1, %v7404_v39, %v7403_v27  ;;  %v5981_v22 = vsel %vm307_vm2, %v7406_v61, %v7405_v36  ;;  %7408 = vst [vmem:[#allocation20_spill] sm:$0xff] %v5989_v23  ;;  %v1911_v27 = vrot.slane %v5692_v21, 1  ;;  %v7410_v36 = vrot.slane %v5692_v21, 7 }
 0x25a   : > { %v5994_v39 = vsel %vm174_vm4, %v5845_v34, %v1866_v63  ;;  %v7411_v61 = vrot.slane %v5694_v8, 7  ;;  %v7414_v63 = vrot.slane %v5561_v38, 7  ;;  %v7416_v23 = vrot.slane %v5569_v1, 7 }
 0x25b   : > { %7409 = vst [vmem:[#allocation21_spill] sm:$0xff] %v5994_v39 }
 0x25c   : > { %2082 = vrot.lane.b32.xlu1 %v5665_v10, %s4292_s26  ;;  %2080 = vrot.lane.b32.xlu0 %v5667_v12, %s4292_s26  ;;  %v6007_v16 = vsel %vm242_vm1, %v7411_v61, %v7410_v36  ;;  %v1867_v39 = vsel %vm242_vm1, %v7414_v63, %v7413_v3  ;;  %v1868_v36 = vsel %vm242_vm1, %v7417_v32, %v7416_v23  ;;  %v7418_v61 = vrot.slane %v5593_v13, 7 }
 0x25d   : > { %7412 = vst [vmem:[#allocation22_spill] sm:$0xff] %v6007_v16  ;;  %v6018_v31 = vsel %vm174_vm4, %v5928_v49, %v1867_v39  ;;  %v7419_v16 = vrot.slane %v5591_v5, 7  ;;  %v7420_v3 = vrot.slane %v5597_v44, 7  ;;  %v7421_v63 = vrot.slane %v5595_v60, 7 }
 0x25e   : > { %7415 = vst [vmem:[#allocation23_spill] sm:$0xff] %v6018_v31  ;;  %v6040_v31 = vsel %vm307_vm2, %v1895_v55, %v1911_v27  ;;  %v6044_v32 = vsel %vm307_vm2, %v1911_v27, %v1895_v55  ;;  %v6049_v5 = vsel %vm174_vm4, %v5981_v22, %v1868_v36  ;;  %v7423_v44 = vrot.slane %v5605_v50, 7  ;;  %v3651_v36 = vld [vmem:[%s7340_s2 + $0x28] sm:$0xf] }
 0x25f   : > { %v1869_v30 = vsel %vm242_vm1, %v7419_v16, %v7418_v61  ;;  %v1870_v39 = vsel %vm242_vm1, %v7421_v63, %v7420_v3  ;;  %7422 = vst [vmem:[#allocation24_spill] sm:$0xff] %v6040_v31  ;;  %v7424_v55 = vrot.slane %v5603_v46, 7  ;;  %v7425_v27 = vrot.slane %v5609_v20, 7  ;;  %4134 = vmatprep.subr.msk.mxu0 %vm825_vm0, %v3651_v36 }
 0x260   : > { %2086 = vrot.lane.b32.xlu1 %v5669_v40, %s4292_s26  ;;  %2084 = vrot.lane.b32.xlu0 %v5671_v56, %s4292_s26  ;;  %v6054_v13 = vsel %vm174_vm4, %v5756_v51, %v1869_v30  ;;  %v6059_v60 = vsel %vm174_vm4, %v5764_v9, %v1870_v39  ;;  %v7426_v16 = vrot.slane %v5607_v48, 7  ;;  %v7427_v48 = vrot.slane %v5663_v42, 7 }
 0x261   : > { %v1871_v23 = vsel %vm242_vm1, %v7424_v55, %v7423_v44  ;;  %v7428_v20 = vrot.slane %v5661_v15, 7  ;;  %v7429_v63 = vrot.slane %v5667_v12, 7  ;;  %v7430_v39 = vrot.slane %v5665_v10, 7  ;;  %4135 = vmatpush3.msk.msra.mxu0 %vm825_vm0, %v3651_v36  ;;  %v3650_v36 = vld [vmem:[%s7340_s2 + $0x20] sm:$0xff] }
 0x262   : > { %v1872_v30 = vsel %vm242_vm1, %v7426_v16, %v7425_v27  ;;  %v6083_v46 = vsel %vm174_vm4, %v5797_v41, %v1871_v23  ;;  %v7431_v55 = vrot.slane %v5671_v56, 7  ;;  %v7432_v42 = vrot.slane %v5669_v40, 7  ;;  %4136 = vmatprep.subr.mxu0 %v3650_v36 }
 0x263   : > { %v6088_v50 = vsel %vm174_vm4, %v5815_v33, %v1872_v30  ;;  %v1873_v61 = vsel %vm242_vm1, %v7428_v20, %v7427_v48  ;;  %v1874_v44 = vsel %vm242_vm1, %v7430_v39, %v7429_v63  ;;  %v7433_v23 = vrot.slane %v5682_v53, 7  ;;  %4137 = vmatpush3.msra.mxu0 %v3650_v36 }
 0x264   : > { %2090 = vrot.lane.b32.xlu1 %v5680_v0, %s4292_s26  ;;  %2088 = vrot.lane.b32.xlu0 %v5682_v53, %s4292_s26  ;;  %v6099_v3 = vsel %vm174_vm4, %v5832_v58, %v1873_v61  ;;  %v1875_v15 = vsel %vm242_vm1, %v7432_v42, %v7431_v55  ;;  %v7434_v27 = vrot.slane %v5680_v0, 7  ;;  %v6123_v10 = vsel %vm174_vm4, %v5874_v26, %v1874_v44  ;;  %v6170_v44 = vld [vmem:[%s7340_s2 + $0x18] sm:$0xf] }
 0x265   : > { %v6128_v12 = vsel %vm174_vm4, %v5897_v59, %v1875_v15  ;;  %v7435_v56 = vrot.slane %v5686_v11, 7  ;;  %v7436_v0 = vrot.slane %v5684_v2, 7  ;;  %v7437_v30 = vrot.slane %v5690_v24, 7  ;;  %4186 = vmatprep.subr.msk.mxu1 %vm825_vm0, %v6170_v44 }
 0x266   : > { %v1876_v16 = vsel %vm242_vm1, %v7434_v27, %v7433_v23  ;;  %v7438_v48 = vrot.slane %v5688_v57, 7  ;;  %v7440_v61 = vrot.slane %v5694_v8, 7  ;;  %v7441_v63 = vrot.slane %v5692_v21, 7 }
 0x267   : > { %v6133_v40 = vsel %vm174_vm4, %v5905_v54, %v1876_v16  ;;  %v6141_v53 = vsel %vm242_vm1, %v7436_v0, %v7435_v56  ;;  %v7445_v42 = vrot.slane %v5507_v62, 1  ;;  %v7448_v15 = vrot.slane %v5535_v14, 7 }
 0x268   : > { %v6150_v20 = vsel %vm242_vm1, %v7438_v48, %v7437_v30  ;;  %v6158_v39 = vsel %vm242_vm1, %v7441_v63, %v7440_v61  ;;  %2094 = vrot.lane.b32.xlu1 %v5684_v2, %s4292_s26  ;;  %2092 = vrot.lane.b32.xlu0 %v5686_v11, %s4292_s26  ;;  %v7443_v2 = vrot.slane %v5505_v47, 7  ;;  %v7444_v11 = vrot.slane %v5507_v62, 7 }
 0x269   : > { %7439 = vst [vmem:[#allocation25_spill] sm:$0xff] %v6150_v20  ;;  %7442 = vst [vmem:[#allocation26_spill] sm:$0xff] %v6158_v39  ;;  %v7450_v23 = vrot.slane %v5533_v43, 1  ;;  %v7451_v16 = vrot.slane %v5557_v19, 7  ;;  %v7452_v56 = vrot.slane %v5559_v37, 7  ;;  %v7454_v0 = vrot.slane %v5557_v19, 1 }
 0x26a   : > { %v6188_v55 = vsel %vm242_vm1, %v7444_v11, %v7443_v2  ;;  %v7455_v48 = vrot.slane %v5561_v38, 7  ;;  %v7456_v61 = vrot.slane %v5565_v45, 7  ;;  %v7457_v19 = vrot.slane %v5565_v45, 1  ;;  %v7482_v39 = vld [vmem:[#allocation13_spill] sm:$0xff] }
 0x26b   : > { %v7458_v63 = vrot.slane %v5561_v38, 1  ;;  %v7459_v2 = vrot.slane %v5567_v35, 7  ;;  %v7460_v11 = vrot.slane %v5569_v1, 7  ;;  %v7461_v38 = vrot.slane %v5569_v1, 1  ;;  %v7463_v1 = vld [vmem:[#allocation2_spill] sm:$0xff] }
 0x26c   : > { %2098 = vrot.lane.b32.xlu1 %v5688_v57, %s4292_s26  ;;  %2096 = vrot.lane.b32.xlu0 %v5690_v24, %s4292_s26  ;;  %v7446_v57 = vrot.slane %v5505_v47, 1  ;;  %v7449_v47 = vrot.slane %v5535_v14, 1  ;;  %v6228_v14 = vsel %vm242_vm1, %v7452_v56, %v7451_v16  ;;  %v7474_v56 = vld [vmem:[#allocation18_spill] sm:$0xff] }
 0x26d   : > { %v1931_v36 = vsel %vm307_vm2, %v7458_v63, %v7457_v19  ;;  %v6268_v45 = vsel %vm242_vm1, %v7460_v11, %v7459_v2  ;;  %v7479_v19 = vld [vmem:[#allocation19_spill] sm:$0xff] }
 0x26e   : > { %v1928_v24 = vsel %vm307_vm2, %v7446_v57, %v7445_v42  ;;  %v1929_v27 = vsel %vm307_vm2, %v7450_v23, %v7449_v47  ;;  %v7462_v42 = vrot.slane %v5567_v35, 1  ;;  %v1989_v35 = vsel %vm177_vm3, %v5750_v17, %v5769_v25  ;;  %v7471_v47 = vld [vmem:[#allocation8_spill] sm:$0xff] }
 0x270   : > { %2102 = vrot.lane.b32.xlu1 %v5692_v21, %s4292_s26  ;;  %2100 = vrot.lane.b32.xlu0 %v5694_v8, %s4292_s26  ;;  %v1977_v21 = vsel %vm177_vm3, %v6188_v55, %v1928_v24  ;;  %v7447_v8 = vrot.slane %v5533_v43, 7  ;;  %v7453_v43 = vrot.slane %v5559_v37, 1  ;;  %v6248_v37 = vsel %vm242_vm1, %v7456_v61, %v7455_v48  ;;  %v7477_v48 = vld [vmem:[#allocation20_spill] sm:$0xff] }
 0x271   : > { %v1932_v57 = vsel %vm307_vm2, %v7462_v42, %v7461_v38  ;;  %v1987_v24 = vsel %vm177_vm3, %v5734_v52, %v5760_v29  ;;  %v1991_v29 = vsel %vm177_vm3, %v7463_v1, %v5801_v28  ;;  %v7478_v61 = vld [vmem:[#allocation16_spill] sm:$0xff] }
 0x272   : > { %v6208_v62 = vsel %vm242_vm1, %v7448_v15, %v7447_v8  ;;  %v1930_v30 = vsel %vm307_vm2, %v7454_v0, %v7453_v43  ;;  %v7469_v8 = vld [vmem:[#allocation7_spill] sm:$0xff]  ;;  %v7475_v43 = vld [vmem:[#allocation14_spill] sm:$0xff] }
 0x273   : > { %v2003_v0 = vsel %vm177_vm3, %v7475_v43, %v7474_v56 }
 0x274   : > { %2168 = vrot.lane.b32.xlu0 %v5722_v18, %s4293_s27  ;;  %2170 = vrot.lane.b32.xlu1 %v1977_v21, %s4293_s27  ;;  %v1979_v18 = vsel %vm177_vm3, %v6208_v62, %v1929_v27  ;;  %v7467_v21 = vld [vmem:[#allocation5_spill] sm:$0xff]  ;;  %v7473_v27 = vld [vmem:[#allocation10_spill] sm:$0xff] }
 0x278   : > { %2172 = vrot.lane.b32.xlu0 %v5811_v7, %s4293_s27  ;;  %2174 = vrot.lane.b32.xlu1 %v1979_v18, %s4293_s27  ;;  %v1981_v7 = vsel %vm177_vm3, %v6228_v14, %v1930_v30 }
 0x27c   : > { %2176 = vrot.lane.b32.xlu0 %v5845_v34, %s4293_s27  ;;  %2178 = vrot.lane.b32.xlu1 %v1981_v7, %s4293_s27  ;;  %v1983_v34 = vsel %vm177_vm3, %v6248_v37, %v1931_v36 }
 0x280   : > { %2180 = vrot.lane.b32.xlu0 %v5928_v49, %s4293_s27  ;;  %2182 = vrot.lane.b32.xlu1 %v1983_v34, %s4293_s27  ;;  %v1985_v49 = vsel %vm177_vm3, %v6268_v45, %v1932_v57  ;;  %v7480_v34 = vld [vmem:[#allocation22_spill] sm:$0xff] }
 0x281   : > { %v2007_v2 = vsel %vm177_vm3, %v7480_v34, %v6044_v32 }
 0x284   : > { %2184 = vrot.lane.b32.xlu0 %v5981_v22, %s4293_s27  ;;  %2186 = vrot.lane.b32.xlu1 %v1985_v49, %s4293_s27  ;;  %v7465_v22 = vld [vmem:[#allocation3_spill] sm:$0xff] }
 0x288   : > { %2188 = vrot.lane.b32.xlu0 %v5756_v51, %s4293_s27  ;;  %2190 = vrot.lane.b32.xlu1 %v1987_v24, %s4293_s27  ;;  %v7464_v51 = vld [vmem:[#allocation4_spill] sm:$0xff] }
 0x289   : > { %v1993_v25 = vsel %vm177_vm3, %v7465_v22, %v7464_v51 }
 0x28c   : > { %2192 = vrot.lane.b32.xlu0 %v5764_v9, %s4293_s27  ;;  %2194 = vrot.lane.b32.xlu1 %v1989_v35, %s4293_s27  ;;  %v7466_v9 = vld [vmem:[#allocation6_spill] sm:$0xff] }
 0x28d   : > { %v1995_v28 = vsel %vm177_vm3, %v7467_v21, %v7466_v9 }
 0x290   : > { %2196 = vrot.lane.b32.xlu0 %v5797_v41, %s4293_s27  ;;  %2198 = vrot.lane.b32.xlu1 %v1991_v29, %s4293_s27  ;;  %v7468_v41 = vld [vmem:[#allocation9_spill] sm:$0xff] }
 0x291   : > { %v1997_v15 = vsel %vm177_vm3, %v7469_v8, %v7468_v41 }
 0x294   : > { %2200 = vrot.lane.b32.xlu0 %v5815_v33, %s4293_s27  ;;  %2202 = vrot.lane.b32.xlu1 %v1993_v25, %s4293_s27  ;;  %v7470_v33 = vld [vmem:[#allocation11_spill] sm:$0xff] }
 0x295   : > { %v1999_v23 = vsel %vm177_vm3, %v7471_v47, %v7470_v33 }
 0x298   : > { %2204 = vrot.lane.b32.xlu0 %v5832_v58, %s4293_s27  ;;  %2206 = vrot.lane.b32.xlu1 %v1995_v28, %s4293_s27  ;;  %v7472_v58 = vld [vmem:[#allocation12_spill] sm:$0xff] }
 0x299   : > { %v2001_v18 = vsel %vm177_vm3, %v7473_v27, %v7472_v58 }
 0x29c   : > { %2208 = vrot.lane.b32.xlu0 %v5874_v26, %s4293_s27  ;;  %2210 = vrot.lane.b32.xlu1 %v1997_v15, %s4293_s27 }
 0x2a0   : > { %2212 = vrot.lane.b32.xlu0 %v5897_v59, %s4293_s27  ;;  %2214 = vrot.lane.b32.xlu1 %v1999_v23, %s4293_s27  ;;  %v7476_v59 = vld [vmem:[#allocation17_spill] sm:$0xff] }
 0x2a4   : > { %2216 = vrot.lane.b32.xlu0 %v5905_v54, %s4293_s27  ;;  %2218 = vrot.lane.b32.xlu1 %v2001_v18, %s4293_s27  ;;  %v2005_v54 = vsel %vm177_vm3, %v7478_v61, %v7477_v48 }
 0x2a6   : > { %v2043_v26 = vpop.permute.xlu1 %2042  ;;  %v2041_v16 = vpop.permute.xlu0 %2040 }
 0x2a7   : > { %v2264_v61 = vsel %vm660_vm5, %v7482_v39, %v2041_v16 }
 0x2a8   : > { %2220 = vrot.lane.b32.xlu0 %v7476_v59, %s4293_s27  ;;  %2222 = vrot.lane.b32.xlu1 %v2003_v0, %s4293_s27 }
 0x2aa   : > { %v2047_v30 = vpop.permute.xlu1 %2046  ;;  %v2045_v7 = vpop.permute.xlu0 %2044 }
 0x2ac   : > { %2224 = vrot.lane.b32.xlu0 %v7479_v19, %s4293_s27  ;;  %2226 = vrot.lane.b32.xlu1 %v2005_v54, %s4293_s27 }
 0x2ae   : > { %v2051_v63 = vpop.permute.xlu1 %2050  ;;  %v2049_v36 = vpop.permute.xlu0 %2048 }
 0x2b0   : > { %2228 = vrot.lane.b32.xlu0 %v6040_v31, %s4293_s27  ;;  %2230 = vrot.lane.b32.xlu1 %v2007_v2, %s4293_s27  ;;  %v2265_v31 = vsel %vm660_vm5, %v6188_v55, %v2043_v26  ;;  %v3648_v55 = vld [vmem:[%s7340_s2 + $0x10] sm:$0xff] }
 0x2b2   : > { %v2055_v11 = vpop.permute.xlu1 %2054  ;;  %v2053_v38 = vpop.permute.xlu0 %2052 }
 0x2b6   : > { %v6359_v42 = vpop.permute.xlu1 %2058  ;;  %v6361_v57 = vpop.permute.xlu0 %2056 }
 0x2ba   : > { %v6363_v49 = vpop.permute.xlu1 %2062  ;;  %v6365_v24 = vpop.permute.xlu0 %2060 }
 0x2be   : > { %v6367_v35 = vpop.permute.xlu1 %2066  ;;  %v6369_v29 = vpop.permute.xlu0 %2064 }
 0x2c2   : > { %v6371_v6 = vpop.permute.xlu1 %2070  ;;  %v6373_v32 = vpop.permute.xlu0 %2068 }
 0x2c6   : > { %v6375_v51 = vpop.permute.xlu1 %2074  ;;  %v6377_v25 = vpop.permute.xlu0 %2072 }
 0x2ca   : > { %v6379_v9 = vpop.permute.xlu1 %2078  ;;  %v6381_v28 = vpop.permute.xlu0 %2076 }
 0x2ce   : > { %v6383_v41 = vpop.permute.xlu1 %2082  ;;  %v6385_v15 = vpop.permute.xlu0 %2080 }
 0x2d2   : > { %v6387_v33 = vpop.permute.xlu1 %2086  ;;  %v6389_v23 = vpop.permute.xlu0 %2084 }
 0x2d6   : > { %v6391_v58 = vpop.permute.xlu1 %2090  ;;  %v6393_v18 = vpop.permute.xlu0 %2088 }
 0x2da   : > { %v6395_v56 = vpop.permute.xlu1 %2094  ;;  %v6397_v0 = vpop.permute.xlu0 %2092 }
 0x2db   : > { %7481 = vst [vmem:[#allocation2_spill] sm:$0xff] %v6397_v0 }
 0x2de   : > { %v6399_v48 = vpop.permute.xlu1 %2098  ;;  %v6401_v54 = vpop.permute.xlu0 %2096 }
 0x2e2   : > { %v6403_v2 = vpop.permute.xlu1 %2102  ;;  %v6405_v34 = vpop.permute.xlu0 %2100 }
 0x2e6   : > { %v2169_v19 = vpop.permute.xlu0 %2168  ;;  %v2171_v20 = vpop.permute.xlu1 %2170 }
 0x2e7   : > { %v6412_v43 = vsel %vm693_vm6, %v2264_v61, %v2169_v19  ;;  %v6415_v0 = vsel %vm693_vm6, %v2265_v31, %v2171_v20  ;;  %v2267_v31 = vsel %vm660_vm5, %v6208_v62, %v2047_v30  ;;  %v7483_v20 = vld [vmem:[#allocation15_spill] sm:$0xff]  ;;  %v7484_v62 = vld [vmem:[#allocation21_spill] sm:$0xff] }
 0x2e8   : > { %4086 = vmatprep.mubr.msk.f32.mxu1 %vm728_vm7, %v6412_v43  ;;  %4138 = vmatprep.mubr.msk.f32.mxu0 %vm728_vm7, %v6412_v43  ;;  %v2266_v39 = vsel %vm660_vm5, %v7483_v20, %v2045_v7  ;;  %v2268_v30 = vsel %vm660_vm5, %v7484_v62, %v2049_v36 }
 0x2e9   : > { %4087 = vmatmul.mubr.msk.f32.vlgmr.msra.gmra.mxu1 %vm728_vm7, %v6415_v0  ;;  %4139 = vmatmul.mubr.msk.f32.vlgmr.msra.gmra.mxu0 %vm728_vm7, %v6415_v0 }
 0x2ea   : > { %4187 = vmatpush3.msk.msra.mxu1 %vm825_vm0, %v6170_v44  ;;  %v2173_v26 = vpop.permute.xlu0 %2172  ;;  %v2175_v16 = vpop.permute.xlu1 %2174  ;;  %v2269_v44 = vsel %vm660_vm5, %v6228_v14, %v2051_v63  ;;  %v2271_v14 = vsel %vm660_vm5, %v6248_v37, %v2055_v11  ;;  %v7485_v63 = vld [vmem:[#allocation23_spill] sm:$0xff]  ;;  %v2273_v37 = vsel %vm660_vm5, %v6268_v45, %v6359_v42  ;;  %v2272_v11 = vsel %vm660_vm5, %v6049_v5, %v6361_v57 }
 0x2eb   : > { %v6435_v61 = vsel %vm693_vm6, %v2266_v39, %v2173_v26  ;;  %v6438_v19 = vsel %vm693_vm6, %v2267_v31, %v2175_v16  ;;  %4188 = vmatprep.subr.mxu1 %v3648_v55  ;;  %v2270_v36 = vsel %vm660_vm5, %v7485_v63, %v2053_v38  ;;  %v2275_v5 = vsel %vm660_vm5, %v5734_v52, %v6363_v49 }
 0x2ec   : > { %4089 = vmatprep.mubr.msk.f32.mxu1 %vm728_vm7, %v6435_v61  ;;  %4141 = vmatprep.mubr.msk.f32.mxu0 %vm728_vm7, %v6435_v61  ;;  %v2274_v45 = vsel %vm660_vm5, %v6054_v13, %v6365_v24  ;;  %v2277_v52 = vsel %vm660_vm5, %v5750_v17, %v6367_v35  ;;  %v2276_v13 = vsel %vm660_vm5, %v6059_v60, %v6369_v29 }
 0x2ed   : > { %4090 = vmatmul.mubr.msk.f32.gmra.mxu1 %vm728_vm7, %v6438_v19  ;;  %4142 = vmatmul.mubr.msk.f32.gmra.mxu0 %vm728_vm7, %v6438_v19  ;;  %v2279_v17 = vsel %vm660_vm5, %v7463_v1, %v6371_v6  ;;  %v2278_v60 = vsel %vm660_vm5, %v6083_v46, %v6373_v32  ;;  %v2281_v46 = vsel %vm660_vm5, %v7465_v22, %v6375_v51 }
 0x2ee   : > { %v2177_v7 = vpop.permute.xlu0 %2176  ;;  %v2179_v31 = vpop.permute.xlu1 %2178  ;;  %4189 = vmatpush3.msra.mxu1 %v3648_v55  ;;  %v2280_v1 = vsel %vm660_vm5, %v6088_v50, %v6377_v25  ;;  %v2283_v50 = vsel %vm660_vm5, %v7467_v21, %v6379_v9  ;;  %v2282_v22 = vsel %vm660_vm5, %v6099_v3, %v6381_v28  ;;  %v2285_v3 = vsel %vm660_vm5, %v7469_v8, %v6383_v41 }
 0x2ef   : > { %v6453_v20 = vsel %vm693_vm6, %v2268_v30, %v2177_v7  ;;  %v6456_v39 = vsel %vm693_vm6, %v2269_v44, %v2179_v31  ;;  %v2284_v21 = vsel %vm660_vm5, %v6123_v10, %v6385_v15  ;;  %v2287_v10 = vsel %vm660_vm5, %v7471_v47, %v6387_v33 }
 0x2f0   : > { %4092 = vmatprep.mubr.msk.f32.mxu1 %vm728_vm7, %v6453_v20  ;;  %4144 = vmatprep.mubr.msk.f32.mxu0 %vm728_vm7, %v6453_v20  ;;  %v2286_v8 = vsel %vm660_vm5, %v6128_v12, %v6389_v23  ;;  %v2289_v12 = vsel %vm660_vm5, %v7473_v27, %v6391_v58  ;;  %v2288_v47 = vsel %vm660_vm5, %v6133_v40, %v6393_v18  ;;  %v7486_v40 = vld [vmem:[#allocation14_spill] sm:$0xff] }
 0x2f1   : > { %4093 = vmatmul.mubr.msk.f32.gmra.mxu1 %vm728_vm7, %v6456_v39  ;;  %4145 = vmatmul.mubr.msk.f32.gmra.mxu0 %vm728_vm7, %v6456_v39  ;;  %v1970_v27 = vsel %vm174_vm4, %v7476_v59, %v6141_v53  ;;  %v2291_v58 = vsel %vm660_vm5, %v7486_v40, %v6395_v56  ;;  %v7487_v18 = vld [vmem:[#allocation2_spill] sm:$0xff]  ;;  %v7488_v53 = vld [vmem:[#allocation25_spill] sm:$0xff]  ;;  %v7489_v59 = vld [vmem:[#allocation19_spill] sm:$0xff] }
 0x2f2   : > { %v2181_v55 = vpop.permute.xlu0 %2180  ;;  %v2183_v26 = vpop.permute.xlu1 %2182  ;;  %v7490_v56 = vld [vmem:[#allocation16_spill] sm:$0xff] }
 0x2f3   : > { %v6471_v16 = vsel %vm693_vm6, %v2270_v36, %v2181_v55  ;;  %v6474_v44 = vsel %vm693_vm6, %v2271_v14, %v2183_v26 }
 0x2f4   : > { %4095 = vmatprep.mubr.msk.f32.mxu1 %vm728_vm7, %v6471_v16  ;;  %4147 = vmatprep.mubr.msk.f32.mxu0 %vm728_vm7, %v6471_v16 }
 0x2f5   : > { %4096 = vmatmul.mubr.msk.f32.gmra.mxu1 %vm728_vm7, %v6474_v44  ;;  %4148 = vmatmul.mubr.msk.f32.gmra.mxu0 %vm728_vm7, %v6474_v44 }
 0x2f6   : > { %v2185_v38 = vpop.permute.xlu0 %2184  ;;  %v2187_v62 = vpop.permute.xlu1 %2186 }
 0x2f7   : > { %v6491_v30 = vsel %vm693_vm6, %v2272_v11, %v2185_v38  ;;  %v6494_v7 = vsel %vm693_vm6, %v2273_v37, %v2187_v62 }
 0x2f8   : > { %4098 = vmatprep.mubr.msk.f32.mxu1 %vm728_vm7, %v6491_v30  ;;  %4150 = vmatprep.mubr.msk.f32.mxu0 %vm728_vm7, %v6491_v30 }
 0x2f9   : > { %4099 = vmatmul.mubr.msk.f32.gmra.mxu1 %vm728_vm7, %v6494_v7  ;;  %4151 = vmatmul.mubr.msk.f32.gmra.mxu0 %vm728_vm7, %v6494_v7 }
 0x2fa   : > { %v2189_v42 = vpop.permute.xlu0 %2188  ;;  %v2191_v57 = vpop.permute.xlu1 %2190 }
 0x2fb   : > { %v6511_v31 = vsel %vm693_vm6, %v2274_v45, %v2189_v42  ;;  %v6514_v14 = vsel %vm693_vm6, %v2275_v5, %v2191_v57 }
 0x2fc   : > { %4101 = vmatprep.mubr.msk.f32.mxu1 %vm728_vm7, %v6511_v31  ;;  %4153 = vmatprep.mubr.msk.f32.mxu0 %vm728_vm7, %v6511_v31 }
 0x2fd   : > { %4102 = vmatmul.mubr.msk.f32.gmra.mxu1 %vm728_vm7, %v6514_v14  ;;  %4154 = vmatmul.mubr.msk.f32.gmra.mxu0 %vm728_vm7, %v6514_v14 }
 0x2fe   : > { %v2193_v49 = vpop.permute.xlu0 %2192  ;;  %v2195_v24 = vpop.permute.xlu1 %2194 }
 0x2ff   : > { %v6531_v63 = vsel %vm693_vm6, %v2276_v13, %v2193_v49  ;;  %v6534_v36 = vsel %vm693_vm6, %v2277_v52, %v2195_v24  ;;  %v2290_v49 = vsel %vm660_vm5, %v1970_v27, %v7487_v18 }
 0x300   : > { %4104 = vmatprep.mubr.msk.f32.mxu1 %vm728_vm7, %v6531_v63  ;;  %4156 = vmatprep.mubr.msk.f32.mxu0 %vm728_vm7, %v6531_v63 }
 0x301   : > { %4105 = vmatmul.mubr.msk.f32.gmra.mxu1 %vm728_vm7, %v6534_v36  ;;  %4157 = vmatmul.mubr.msk.f32.gmra.mxu0 %vm728_vm7, %v6534_v36 }
 0x302   : > { %v2197_v35 = vpop.permute.xlu0 %2196  ;;  %v2199_v29 = vpop.permute.xlu1 %2198 }
 0x303   : > { %v6551_v55 = vsel %vm693_vm6, %v2278_v60, %v2197_v35  ;;  %v6554_v26 = vsel %vm693_vm6, %v2279_v17, %v2199_v29  ;;  %v1972_v29 = vsel %vm174_vm4, %v7489_v59, %v7488_v53 }
 0x304   : > { %4107 = vmatprep.mubr.msk.f32.mxu1 %vm728_vm7, %v6551_v55  ;;  %4159 = vmatprep.mubr.msk.f32.mxu0 %vm728_vm7, %v6551_v55 }
 0x305   : > { %4108 = vmatmul.mubr.msk.f32.gmra.mxu1 %vm728_vm7, %v6554_v26  ;;  %4160 = vmatmul.mubr.msk.f32.gmra.mxu0 %vm728_vm7, %v6554_v26 }
 0x306   : > { %v2201_v6 = vpop.permute.xlu0 %2200  ;;  %v2203_v32 = vpop.permute.xlu1 %2202 }
 0x307   : > { %v6571_v37 = vsel %vm693_vm6, %v2280_v1, %v2201_v6  ;;  %v6574_v11 = vsel %vm693_vm6, %v2281_v46, %v2203_v32  ;;  %v2293_v46 = vsel %vm660_vm5, %v7490_v56, %v6399_v48  ;;  %v2292_v1 = vsel %vm660_vm5, %v1972_v29, %v6401_v54  ;;  %v7493_v48 = vld [vmem:[#allocation22_spill] sm:$0xff] }
 0x308   : > { %4110 = vmatprep.mubr.msk.f32.mxu1 %vm728_vm7, %v6571_v37  ;;  %4162 = vmatprep.mubr.msk.f32.mxu0 %vm728_vm7, %v6571_v37  ;;  %v2295_v54 = vsel %vm660_vm5, %v7493_v48, %v6403_v2 }
 0x309   : > { %4111 = vmatmul.mubr.msk.f32.gmra.mxu1 %vm728_vm7, %v6574_v11  ;;  %4163 = vmatmul.mubr.msk.f32.gmra.mxu0 %vm728_vm7, %v6574_v11 }
 0x30a   : > { %v2205_v51 = vpop.permute.xlu0 %2204  ;;  %v2207_v25 = vpop.permute.xlu1 %2206 }
 0x30b   : > { %v6591_v38 = vsel %vm693_vm6, %v2282_v22, %v2205_v51  ;;  %v6594_v62 = vsel %vm693_vm6, %v2283_v50, %v2207_v25  ;;  %v7491_v51 = vld [vmem:[#allocation26_spill] sm:$0xff]  ;;  %v7492_v25 = vld [vmem:[#allocation24_spill] sm:$0xff] }
 0x30c   : > { %4113 = vmatprep.mubr.msk.f32.mxu1 %vm728_vm7, %v6591_v38  ;;  %4165 = vmatprep.mubr.msk.f32.mxu0 %vm728_vm7, %v6591_v38 }
 0x30d   : > { %4114 = vmatmul.mubr.msk.f32.gmra.mxu1 %vm728_vm7, %v6594_v62  ;;  %4166 = vmatmul.mubr.msk.f32.gmra.mxu0 %vm728_vm7, %v6594_v62 }
 0x30e   : > { %v2209_v9 = vpop.permute.xlu0 %2208  ;;  %v2211_v28 = vpop.permute.xlu1 %2210 }
 0x30f   : > { %v6611_v5 = vsel %vm693_vm6, %v2284_v21, %v2209_v9  ;;  %v6614_v45 = vsel %vm693_vm6, %v2285_v3, %v2211_v28  ;;  %v1974_v3 = vsel %vm174_vm4, %v7492_v25, %v7491_v51 }
 0x310   : > { %4116 = vmatprep.mubr.msk.f32.mxu1 %vm728_vm7, %v6611_v5  ;;  %4168 = vmatprep.mubr.msk.f32.mxu0 %vm728_vm7, %v6611_v5  ;;  %v2294_v21 = vsel %vm660_vm5, %v1974_v3, %v6405_v34 }
 0x311   : > { %4117 = vmatmul.mubr.msk.f32.gmra.mxu1 %vm728_vm7, %v6614_v45  ;;  %4169 = vmatmul.mubr.msk.f32.gmra.mxu0 %vm728_vm7, %v6614_v45 }
 0x312   : > { %v2213_v41 = vpop.permute.xlu0 %2212  ;;  %v2215_v15 = vpop.permute.xlu1 %2214 }
 0x313   : > { %v6631_v42 = vsel %vm693_vm6, %v2286_v8, %v2213_v41  ;;  %v6634_v57 = vsel %vm693_vm6, %v2287_v10, %v2215_v15 }
 0x314   : > { %4119 = vmatprep.mubr.msk.f32.mxu1 %vm728_vm7, %v6631_v42  ;;  %4171 = vmatprep.mubr.msk.f32.mxu0 %vm728_vm7, %v6631_v42 }
 0x315   : > { %4120 = vmatmul.mubr.msk.f32.gmra.mxu1 %vm728_vm7, %v6634_v57  ;;  %4172 = vmatmul.mubr.msk.f32.gmra.mxu0 %vm728_vm7, %v6634_v57 }
 0x316   : > { %v2217_v33 = vpop.permute.xlu0 %2216  ;;  %v2219_v23 = vpop.permute.xlu1 %2218 }
 0x317   : > { %v6651_v52 = vsel %vm693_vm6, %v2288_v47, %v2217_v33  ;;  %v6654_v13 = vsel %vm693_vm6, %v2289_v12, %v2219_v23 }
 0x318   : > { %4122 = vmatprep.mubr.msk.f32.mxu1 %vm728_vm7, %v6651_v52  ;;  %4174 = vmatprep.mubr.msk.f32.mxu0 %vm728_vm7, %v6651_v52 }
 0x319   : > { %4123 = vmatmul.mubr.msk.f32.gmra.mxu1 %vm728_vm7, %v6654_v13  ;;  %4175 = vmatmul.mubr.msk.f32.gmra.mxu0 %vm728_vm7, %v6654_v13 }
 0x31a   : > { %v2221_v24 = vpop.permute.xlu0 %2220  ;;  %v2223_v17 = vpop.permute.xlu1 %2222 }
 0x31b   : > { %v2322_v60 = vsel %vm693_vm6, %v2290_v49, %v2221_v24  ;;  %v2323_v35 = vsel %vm693_vm6, %v2291_v58, %v2223_v17 }
 0x31c   : > { %4125 = vmatprep.mubr.msk.f32.mxu1 %vm728_vm7, %v2322_v60  ;;  %4177 = vmatprep.mubr.msk.f32.mxu0 %vm728_vm7, %v2322_v60 }
 0x31d   : > { %4126 = vmatmul.mubr.msk.f32.gmra.mxu1 %vm728_vm7, %v2323_v35  ;;  %4178 = vmatmul.mubr.msk.f32.gmra.mxu0 %vm728_vm7, %v2323_v35 }
 0x31e   : > { %v2225_v6 = vpop.permute.xlu0 %2224  ;;  %v2227_v32 = vpop.permute.xlu1 %2226 }
 0x31f   : > { %v2324_v50 = vsel %vm693_vm6, %v2292_v1, %v2225_v6  ;;  %v2325_v22 = vsel %vm693_vm6, %v2293_v46, %v2227_v32 }
 0x320   : > { %4128 = vmatprep.mubr.msk.f32.mxu1 %vm728_vm7, %v2324_v50  ;;  %4180 = vmatprep.mubr.msk.f32.mxu0 %vm728_vm7, %v2324_v50 }
 0x321   : > { %4129 = vmatmul.mubr.msk.f32.gmra.mxu1 %vm728_vm7, %v2325_v22  ;;  %4181 = vmatmul.mubr.msk.f32.gmra.mxu0 %vm728_vm7, %v2325_v22 }
 0x322   : > { %v2229_v9 = vpop.permute.xlu0 %2228  ;;  %v2231_v28 = vpop.permute.xlu1 %2230 }
 0x323   : > { %v2326_v10 = vsel %vm693_vm6, %v2294_v21, %v2229_v9  ;;  %v2327_v8 = vsel %vm693_vm6, %v2295_v54, %v2231_v28 }
 0x324   : > { %4131 = vmatprep.mubr.msk.f32.mxu1 %vm728_vm7, %v2326_v10  ;;  %4183 = vmatprep.mubr.msk.f32.mxu0 %vm728_vm7, %v2326_v10 }
 0x325   : > { %4132 = vmatmul.mubr.msk.f32.gmra.mxu1 %vm728_vm7, %v2327_v8  ;;  %4184 = vmatmul.mubr.msk.f32.gmra.mxu0 %vm728_vm7, %v2327_v8 }
 0x326   : > { %4190 = vmatprep.mubr.msk.f32.mxu1 %vm728_vm7, %v6412_v43 }
 0x329   : > { %4191 = vmatmul.mubr.msk.f32.vlgmr.msra.gmra.mxu1 %vm728_vm7, %v6415_v0 }
 0x32a   : > { %4193 = vmatprep.mubr.msk.f32.mxu1 %vm728_vm7, %v6435_v61 }
 0x32d   : > { %4194 = vmatmul.mubr.msk.f32.gmra.mxu1 %vm728_vm7, %v6438_v19 }
 0x32e   : > { %4196 = vmatprep.mubr.msk.f32.mxu1 %vm728_vm7, %v6453_v20 }
 0x331   : > { %4197 = vmatmul.mubr.msk.f32.gmra.mxu1 %vm728_vm7, %v6456_v39 }
 0x332   : > { %4199 = vmatprep.mubr.msk.f32.mxu1 %vm728_vm7, %v6471_v16 }
 0x335   : > { %4200 = vmatmul.mubr.msk.f32.gmra.mxu1 %vm728_vm7, %v6474_v44 }
 0x336   : > { %4202 = vmatprep.mubr.msk.f32.mxu1 %vm728_vm7, %v6491_v30 }
 0x339   : > { %4203 = vmatmul.mubr.msk.f32.gmra.mxu1 %vm728_vm7, %v6494_v7 }
 0x33a   : > { %4205 = vmatprep.mubr.msk.f32.mxu1 %vm728_vm7, %v6511_v31 }
 0x33d   : > { %4206 = vmatmul.mubr.msk.f32.gmra.mxu1 %vm728_vm7, %v6514_v14 }
 0x33e   : > { %4208 = vmatprep.mubr.msk.f32.mxu1 %vm728_vm7, %v6531_v63 }
 0x341   : > { %4209 = vmatmul.mubr.msk.f32.gmra.mxu1 %vm728_vm7, %v6534_v36 }
 0x342   : > { %4211 = vmatprep.mubr.msk.f32.mxu1 %vm728_vm7, %v6551_v55 }
 0x345   : > { %4212 = vmatmul.mubr.msk.f32.gmra.mxu1 %vm728_vm7, %v6554_v26 }
 0x346   : > { %4214 = vmatprep.mubr.msk.f32.mxu1 %vm728_vm7, %v6571_v37 }
 0x349   : > { %4215 = vmatmul.mubr.msk.f32.gmra.mxu1 %vm728_vm7, %v6574_v11 }
 0x34a   : > { %4217 = vmatprep.mubr.msk.f32.mxu1 %vm728_vm7, %v6591_v38 }
 0x34d   : > { %4218 = vmatmul.mubr.msk.f32.gmra.mxu1 %vm728_vm7, %v6594_v62 }
 0x34e   : > { %4220 = vmatprep.mubr.msk.f32.mxu1 %vm728_vm7, %v6611_v5 }
 0x351   : > { %4221 = vmatmul.mubr.msk.f32.gmra.mxu1 %vm728_vm7, %v6614_v45 }
 0x352   : > { %4223 = vmatprep.mubr.msk.f32.mxu1 %vm728_vm7, %v6631_v42 }
 0x355   : > { %4224 = vmatmul.mubr.msk.f32.gmra.mxu1 %vm728_vm7, %v6634_v57 }
 0x356   : > { %4226 = vmatprep.mubr.msk.f32.mxu1 %vm728_vm7, %v6651_v52 }
 0x359   : > { %4227 = vmatmul.mubr.msk.f32.gmra.mxu1 %vm728_vm7, %v6654_v13 }
 0x35a   : > { %4229 = vmatprep.mubr.msk.f32.mxu1 %vm728_vm7, %v2322_v60 }
 0x35d   : > { %4230 = vmatmul.mubr.msk.f32.gmra.mxu1 %vm728_vm7, %v2323_v35 }
 0x35e   : > { %4232 = vmatprep.mubr.msk.f32.mxu1 %vm728_vm7, %v2324_v50 }
 0x361   : > { %4233 = vmatmul.mubr.msk.f32.gmra.mxu1 %vm728_vm7, %v2325_v22 }
 0x362   : > { %4235 = vmatprep.mubr.msk.f32.mxu1 %vm728_vm7, %v2326_v10 }
 0x365   : > { %4236 = vmatmul.mubr.msk.f32.gmra.mxu1 %vm728_vm7, %v2327_v8 }
 0x3a9   : > { %v4088_v4 = vpop.f32.mrf.mxu1  ;;  %v4140_v43 = vpop.f32.mrf.mxu0 }
 0x3ab   : > { %v2495_v34 = vpop.f32.mrf.mxu1  ;;  %v2727_v0 = vpop.f32.mrf.mxu0 }
 0x3ad   : > { %v4091_v2 = vpop.f32.mrf.mxu1  ;;  %v4143_v19 = vpop.f32.mrf.mxu0 }
 0x3af   : > { %v6767_v61 = vpop.f32.mrf.mxu1  ;;  %v2735_v16 = vpop.f32.mrf.mxu0 }
 0x3b1   : > { %v6769_v20 = vpop.f32.mrf.mxu1  ;;  %v4146_v7 = vpop.f32.mrf.mxu0 }
 0x3b3   : > { %v6771_v39 = vpop.f32.mrf.mxu1  ;;  %v2745_v63 = vpop.f32.mrf.mxu0 }
 0x3b5   : > { %v6773_v44 = vpop.f32.mrf.mxu1  ;;  %v4149_v26 = vpop.f32.mrf.mxu0 }
 0x3b7   : > { %v6775_v30 = vpop.f32.mrf.mxu1  ;;  %v2755_v38 = vpop.f32.mrf.mxu0 }
 0x3b9   : > { %v6777_v31 = vpop.f32.mrf.mxu1  ;;  %v6793_v45 = vpop.f32.mrf.mxu0 }
 0x3bb   : > { %v6779_v14 = vpop.f32.mrf.mxu1  ;;  %v6799_v42 = vpop.f32.mrf.mxu0 }
 0x3bd   : > { %v6781_v36 = vpop.f32.mrf.mxu1  ;;  %v6805_v47 = vpop.f32.mrf.mxu0 }
 0x3bf   : > { %v6783_v55 = vpop.f32.mrf.mxu1  ;;  %v6811_v52 = vpop.f32.mrf.mxu0 }
 0x3c1   : > { %v6785_v37 = vpop.f32.mrf.mxu1  ;;  %v6817_v40 = vpop.f32.mrf.mxu0 }
 0x3c3   : > { %v6787_v11 = vpop.f32.mrf.mxu1  ;;  %v6823_v49 = vpop.f32.mrf.mxu0 }
 0x3c5   : > { %v6789_v62 = vpop.f32.mrf.mxu1  ;;  %v6829_v60 = vpop.f32.mrf.mxu0 }
 0x3c7   : > { %v6791_v5 = vpop.f32.mrf.mxu1  ;;  %v6835_v59 = vpop.f32.mrf.mxu0 }
 0x3c9   : > { %v6795_v41 = vpop.f32.mrf.mxu1  ;;  %v6837_v46 = vpop.f32.mrf.mxu0 }
 0x3cb   : > { %v6797_v15 = vpop.f32.mrf.mxu1  ;;  %v6840_v22 = vpop.f32.mrf.mxu0 }
 0x3cd   : > { %v6801_v57 = vpop.f32.mrf.mxu1  ;;  %v6850_v28 = vpop.f32.mrf.mxu0 }
 0x3cf   : > { %v6803_v12 = vpop.f32.mrf.mxu1 }
 0x3d1   : > { %v6807_v33 = vpop.f32.mrf.mxu1 }
 0x3d3   : > { %v6809_v23 = vpop.f32.mrf.mxu1 }
 0x3d5   : > { %v6813_v13 = vpop.f32.mrf.mxu1 }
 0x3d7   : > { %v6815_v27 = vpop.f32.mrf.mxu1 }
 0x3d9   : > { %v6819_v58 = vpop.f32.mrf.mxu1 }
 0x3db   : > { %v6821_v18 = vpop.f32.mrf.mxu1 }
 0x3dd   : > { %v6825_v24 = vpop.f32.mrf.mxu1 }
 0x3df   : > { %v6827_v17 = vpop.f32.mrf.mxu1 }
 0x3e1   : > { %v6831_v35 = vpop.f32.mrf.mxu1 }
 0x3e3   : > { %v6833_v53 = vpop.f32.mrf.mxu1 }
 0x3e5   : > { %v4133_v29 = vpop.f32.mrf.mxu1 }
 0x3e7   : > { %v2645_v56 = vpop.f32.mrf.mxu1 }
 0x3e9   : > { %v4192_v1 = vpop.f32.mrf.mxu1 }
 0x3ea   : > { %v2959_v6 = vadd.f32 %v4192_v1, %v4091_v2 }
 0x3eb   : > { %v2953_v32 = vpop.f32.mrf.mxu1 }
 0x3ec   : > { %v2954_v50 = vadd.f32 %v2953_v32, %v6767_v61  ;;  %v6842_v51 = vadd.f32 %v4143_v19, %v2959_v6  ;;  %v6864_v32 = vpop.f32.mrf.mxu0 }
 0x3ed   : > { %v4195_v25 = vpop.f32.mrf.mxu1 }
 0x3ee   : > { %v6844_v3 = vadd.f32 %v2954_v50, %v2735_v16  ;;  %v2969_v48 = vadd.f32 %v4195_v25, %v4088_v4  ;;  %v3215_v10 = vmul.f32 %v6842_v51, %v6842_v51  ;;  %v3145_v4 = vsel %vm660_vm5, %v6842_v51, 0.0 }
 0x3ef   : > { %v2963_v54 = vpop.f32.mrf.mxu1 }
 0x3f0   : > { %v3214_v21 = vmul.f32 %v6844_v3, %v6844_v3  ;;  %v6848_v9 = vadd.f32 %v4146_v7, %v2969_v48  ;;  %v3144_v8 = vsel %vm660_vm5, %v6844_v3, 0.0  ;;  %v2964_v43 = vadd.f32 %v2963_v54, %v2495_v34 }
 0x3f1   : > { %v4198_v0 = vpop.f32.mrf.mxu1  ;;  %v3146_v56 = vadd.f32 %v3145_v4, %v3144_v8  ;;  %v3247_v34 = vsel %vm660_vm5, %v3215_v10, 0.0 }
 0x3f2   : > { %v2979_v19 = vadd.f32 %v4198_v0, %v4091_v2  ;;  %v3246_v16 = vsel %vm660_vm5, %v3214_v21, 0.0  ;;  %v6859_v29 = vadd.f32 %v2964_v43, %v2745_v63  ;;  %v3217_v1 = vmul.f32 %v6848_v9, %v6848_v9 }
 0x3f3   : > { %v2973_v7 = vpop.f32.mrf.mxu1  ;;  %v3248_v48 = vadd.f32 %v3247_v34, %v3246_v16 }
 0x3f4   : > { %v2974_v6 = vadd.f32 %v2973_v7, %v6767_v61  ;;  %v3147_v2 = vsel %vm660_vm5, %v6859_v29, 0.0  ;;  %v3216_v50 = vmul.f32 %v6859_v29, %v6859_v29  ;;  %v6871_v25 = vadd.f32 %v4149_v26, %v2979_v19  ;;  %v6882_v19 = vpop.f32.mrf.mxu0 }
 0x3f5   : > { %v4201_v63 = vpop.f32.mrf.mxu1  ;;  %v3148_v54 = vadd.f32 %v3147_v2, %v3146_v56  ;;  %v3149_v61 = vsel %vm660_vm5, %v6848_v9, 0.0  ;;  %v3251_v0 = vsel %vm660_vm5, %v3217_v1, 0.0 }
 0x3f6   : > { %v6873_v21 = vadd.f32 %v2974_v6, %v2755_v38  ;;  %v3249_v8 = vsel %vm660_vm5, %v3216_v50, 0.0  ;;  %v2989_v10 = vadd.f32 %v4201_v63, %v6769_v20  ;;  %v3219_v38 = vmul.f32 %v6871_v25, %v6871_v25 }
 0x3f7   : > { %v2983_v43 = vpop.f32.mrf.mxu1  ;;  %v3250_v4 = vadd.f32 %v3249_v8, %v3248_v48  ;;  %v3150_v7 = vadd.f32 %v3149_v61, %v3148_v54  ;;  %v3153_v50 = vsel %vm660_vm5, %v6871_v25, 0.0 }
 0x3f8   : > { %v3151_v26 = vsel %vm660_vm5, %v6873_v21, 0.0  ;;  %v3218_v16 = vmul.f32 %v6873_v21, %v6873_v21  ;;  %v6889_v56 = vadd.f32 %v6793_v45, %v2989_v10  ;;  %v2984_v20 = vadd.f32 %v2983_v43, %v6771_v39  ;;  %v6902_v10 = vpop.f32.mrf.mxu0 }
 0x3f9   : > { %v4204_v6 = vpop.f32.mrf.mxu1  ;;  %v3152_v1 = vadd.f32 %v3151_v26, %v3150_v7  ;;  %v3252_v34 = vadd.f32 %v3251_v0, %v3250_v4 }
 0x3fa   : > { %v2999_v2 = vadd.f32 %v4204_v6, %v6773_v44  ;;  %v3253_v63 = vsel %vm660_vm5, %v3218_v16, 0.0  ;;  %v6897_v48 = vadd.f32 %v2984_v20, %v6799_v42  ;;  %v3221_v45 = vmul.f32 %v6889_v56, %v6889_v56 }
 0x3fb   : > { %v2993_v54 = vpop.f32.mrf.mxu1  ;;  %v3254_v61 = vadd.f32 %v3253_v63, %v3252_v34  ;;  %v3154_v8 = vadd.f32 %v3153_v50, %v3152_v1  ;;  %v3255_v44 = vsel %vm660_vm5, %v3219_v38, 0.0  ;;  %v3157_v16 = vsel %vm660_vm5, %v6889_v56, 0.0 }
 0x3fc   : > { %v2994_v39 = vadd.f32 %v2993_v54, %v6775_v30  ;;  %v3155_v43 = vsel %vm660_vm5, %v6897_v48, 0.0  ;;  %v3220_v0 = vmul.f32 %v6897_v48, %v6897_v48  ;;  %v6910_v42 = vadd.f32 %v6805_v47, %v2999_v2  ;;  %v6921_v2 = vpop.f32.mrf.mxu0 }
 0x3fd   : > { %v4207_v4 = vpop.f32.mrf.mxu1  ;;  %v3156_v7 = vadd.f32 %v3155_v43, %v3154_v8  ;;  %v3256_v26 = vadd.f32 %v3255_v44, %v3254_v61  ;;  %v3259_v1 = vsel %vm660_vm5, %v3221_v45, 0.0 }
 0x3fe   : > { %v3257_v30 = vsel %vm660_vm5, %v3220_v0, 0.0  ;;  %v6916_v20 = vadd.f32 %v2994_v39, %v6811_v52  ;;  %v3009_v38 = vadd.f32 %v4207_v4, %v6777_v31  ;;  %v3223_v63 = vmul.f32 %v6910_v42, %v6910_v42 }
 0x3ff   : > { %v3003_v6 = vpop.f32.mrf.mxu1  ;;  %v3258_v34 = vadd.f32 %v3257_v30, %v3256_v26  ;;  %v3158_v50 = vadd.f32 %v3157_v16, %v3156_v7  ;;  %v3161_v44 = vsel %vm660_vm5, %v6910_v42, 0.0  ;;  %v6943_v16 = vpop.f32.mrf.mxu0 }
 0x400   : > { %v3004_v47 = vadd.f32 %v3003_v6, %v6779_v14  ;;  %v3159_v54 = vsel %vm660_vm5, %v6916_v20, 0.0  ;;  %v3222_v52 = vmul.f32 %v6916_v20, %v6916_v20  ;;  %v6930_v31 = vadd.f32 %v6817_v40, %v3009_v38 }
 0x401   : > { %v4210_v61 = vpop.f32.mrf.mxu1  ;;  %v3160_v45 = vadd.f32 %v3159_v54, %v3158_v50  ;;  %v3260_v8 = vadd.f32 %v3259_v1, %v3258_v34 }
 0x402   : > { %v6933_v39 = vadd.f32 %v3004_v47, %v6823_v49  ;;  %v3019_v14 = vadd.f32 %v4210_v61, %v6781_v36  ;;  %v3261_v43 = vsel %vm660_vm5, %v3222_v52, 0.0  ;;  %v3263_v49 = vsel %vm660_vm5, %v3223_v63, 0.0 }
 0x403   : > { %v3013_v0 = vpop.f32.mrf.mxu1  ;;  %v3262_v4 = vadd.f32 %v3261_v43, %v3260_v8  ;;  %v3162_v7 = vadd.f32 %v3161_v44, %v3160_v45  ;;  %v3225_v36 = vmul.f32 %v6930_v31, %v6930_v31  ;;  %v3165_v54 = vsel %vm660_vm5, %v6930_v31, 0.0  ;;  %v6962_v8 = vpop.f32.mrf.mxu0 }
 0x404   : > { %v3163_v40 = vsel %vm660_vm5, %v6933_v39, 0.0  ;;  %v3224_v26 = vmul.f32 %v6933_v39, %v6933_v39  ;;  %v6949_v30 = vadd.f32 %v6829_v60, %v3019_v14  ;;  %v3014_v38 = vadd.f32 %v3013_v0, %v6783_v55 }
 0x405   : > { %v4213_v6 = vpop.f32.mrf.mxu1  ;;  %v3164_v1 = vadd.f32 %v3163_v40, %v3162_v7  ;;  %v3264_v34 = vadd.f32 %v3263_v49, %v3262_v4  ;;  %v3267_v14 = vsel %vm660_vm5, %v3225_v36, 0.0 }
 0x406   : > { %v3265_v50 = vsel %vm660_vm5, %v3224_v26, 0.0  ;;  %v3029_v47 = vadd.f32 %v4213_v6, %v6785_v37  ;;  %v6957_v63 = vadd.f32 %v3014_v38, %v6835_v59  ;;  %v3227_v60 = vmul.f32 %v6949_v30, %v6949_v30 }
 0x407   : > { %v3023_v52 = vpop.f32.mrf.mxu1  ;;  %v3266_v61 = vadd.f32 %v3265_v50, %v3264_v34  ;;  %v3166_v45 = vadd.f32 %v3165_v54, %v3164_v1  ;;  %v3169_v7 = vsel %vm660_vm5, %v6949_v30, 0.0  ;;  %v2845_v1 = vpop.f32.mrf.mxu0 }
 0x408   : > { %v3024_v55 = vadd.f32 %v3023_v52, %v6787_v11  ;;  %v3167_v37 = vsel %vm660_vm5, %v6957_v63, 0.0  ;;  %v3226_v44 = vmul.f32 %v6957_v63, %v6957_v63  ;;  %v6970_v59 = vadd.f32 %v6837_v46, %v3029_v47 }
 0x409   : > { %v4216_v43 = vpop.f32.mrf.mxu1  ;;  %v3168_v0 = vadd.f32 %v3167_v37, %v3166_v45  ;;  %v3268_v4 = vadd.f32 %v3267_v14, %v3266_v61  ;;  %v3271_v36 = vsel %vm660_vm5, %v3227_v60, 0.0 }
 0x40a   : > { %v3269_v11 = vsel %vm660_vm5, %v3226_v44, 0.0  ;;  %v6976_v40 = vadd.f32 %v3024_v55, %v6840_v22  ;;  %v3039_v26 = vadd.f32 %v4216_v43, %v6789_v62  ;;  %v3229_v34 = vmul.f32 %v6970_v59, %v6970_v59  ;;  %v4179_v43 = vpop.f32.mrf.mxu0 }
 0x40b   : > { %v3033_v49 = vpop.f32.mrf.mxu1  ;;  %v3270_v38 = vadd.f32 %v3269_v11, %v3268_v4  ;;  %v3170_v6 = vadd.f32 %v3169_v7, %v3168_v0  ;;  %v3173_v60 = vsel %vm660_vm5, %v6970_v59, 0.0 }
 0x40c   : > { %v3034_v46 = vadd.f32 %v3033_v49, %v6791_v5  ;;  %v3171_v50 = vsel %vm660_vm5, %v6976_v40, 0.0  ;;  %v3228_v22 = vmul.f32 %v6976_v40, %v6976_v40  ;;  %v6988_v47 = vadd.f32 %v6850_v28, %v3039_v26 }
 0x40d   : > { %v4219_v62 = vpop.f32.mrf.mxu1  ;;  %v3172_v54 = vadd.f32 %v3171_v50, %v3170_v6  ;;  %v3272_v52 = vadd.f32 %v3271_v36, %v3270_v38 }
 0x40e   : > { %v6991_v61 = vadd.f32 %v3034_v46, %v6864_v32  ;;  %v3049_v5 = vadd.f32 %v4219_v62, %v6795_v41  ;;  %v3273_v45 = vsel %vm660_vm5, %v3228_v22, 0.0  ;;  %v3275_v32 = vsel %vm660_vm5, %v3229_v34, 0.0  ;;  %v2855_v22 = vpop.f32.mrf.mxu0 }
 0x40f   : > { %v3043_v55 = vpop.f32.mrf.mxu1  ;;  %v3274_v14 = vadd.f32 %v3273_v45, %v3272_v52  ;;  %v3174_v37 = vadd.f32 %v3173_v60, %v3172_v54  ;;  %v3231_v41 = vmul.f32 %v6988_v47, %v6988_v47  ;;  %v3177_v38 = vsel %vm660_vm5, %v6988_v47, 0.0 }
 0x410   : > { %v3175_v28 = vsel %vm660_vm5, %v6991_v61, 0.0  ;;  %v3230_v44 = vmul.f32 %v6991_v61, %v6991_v61  ;;  %v7005_v0 = vadd.f32 %v6882_v19, %v3049_v5  ;;  %v3044_v4 = vadd.f32 %v3043_v55, %v6797_v15 }
 0x411   : > { %v4222_v7 = vpop.f32.mrf.mxu1  ;;  %v3176_v11 = vadd.f32 %v3175_v28, %v3174_v37  ;;  %v3276_v26 = vadd.f32 %v3275_v32, %v3274_v14  ;;  %v3279_v62 = vsel %vm660_vm5, %v3231_v41, 0.0  ;;  %v7035_v41 = vpop.f32.mrf.mxu0 }
 0x412   : > { %v3277_v49 = vsel %vm660_vm5, %v3230_v44, 0.0  ;;  %v3059_v36 = vadd.f32 %v4222_v7, %v6801_v57  ;;  %v7013_v6 = vadd.f32 %v3044_v4, %v6902_v10  ;;  %v3233_v19 = vmul.f32 %v7005_v0, %v7005_v0 }
 0x413   : > { %v3053_v46 = vpop.f32.mrf.mxu1  ;;  %v3278_v34 = vadd.f32 %v3277_v49, %v3276_v26  ;;  %v3178_v50 = vadd.f32 %v3177_v38, %v3176_v11  ;;  %v3181_v45 = vsel %vm660_vm5, %v7005_v0, 0.0 }
 0x414   : > { %v3054_v15 = vadd.f32 %v3053_v46, %v6803_v12  ;;  %v3179_v57 = vsel %vm660_vm5, %v7013_v6, 0.0  ;;  %v3232_v54 = vmul.f32 %v7013_v6, %v7013_v6  ;;  %v7024_v10 = vadd.f32 %v6921_v2, %v3059_v36 }
 0x415   : > { %v4225_v52 = vpop.f32.mrf.mxu1  ;;  %v3180_v5 = vadd.f32 %v3179_v57, %v3178_v50  ;;  %v3280_v60 = vadd.f32 %v3279_v62, %v3278_v34  ;;  %v3283_v28 = vsel %vm660_vm5, %v3233_v19, 0.0  ;;  %v2865_v62 = vpop.f32.mrf.mxu0 }
 0x416   : > { %v3281_v12 = vsel %vm660_vm5, %v3232_v54, 0.0  ;;  %v7030_v55 = vadd.f32 %v3054_v15, %v6943_v16  ;;  %v3069_v14 = vadd.f32 %v4225_v52, %v6807_v33  ;;  %v3235_v4 = vmul.f32 %v7024_v10, %v7024_v10 }
 0x417   : > { %v3063_v37 = vpop.f32.mrf.mxu1  ;;  %v3282_v44 = vadd.f32 %v3281_v12, %v3280_v60  ;;  %v3182_v32 = vadd.f32 %v3181_v45, %v3180_v5  ;;  %v3185_v38 = vsel %vm660_vm5, %v7024_v10, 0.0 }
 0x418   : > { %v3064_v2 = vadd.f32 %v3063_v37, %v6809_v23  ;;  %v3183_v7 = vsel %vm660_vm5, %v7030_v55, 0.0  ;;  %v3234_v16 = vmul.f32 %v7030_v55, %v7030_v55  ;;  %v7044_v33 = vadd.f32 %v6962_v8, %v3069_v14 }
 0x419   : > { %v4228_v11 = vpop.f32.mrf.mxu1  ;;  %v3184_v26 = vadd.f32 %v3183_v7, %v3182_v32  ;;  %v3284_v49 = vadd.f32 %v3283_v28, %v3282_v44 }
 0x41a   : > { %v7046_v36 = vadd.f32 %v3064_v2, %v2845_v1  ;;  %v3079_v23 = vadd.f32 %v4228_v11, %v6813_v13  ;;  %v3285_v46 = vsel %vm660_vm5, %v3234_v16, 0.0  ;;  %v3287_v1 = vsel %vm660_vm5, %v3235_v4, 0.0  ;;  %v4185_v2 = vpop.f32.mrf.mxu0 }
 0x41b   : > { %v3073_v34 = vpop.f32.mrf.mxu1  ;;  %v3286_v19 = vadd.f32 %v3285_v46, %v3284_v49  ;;  %v3186_v50 = vadd.f32 %v3185_v38, %v3184_v26  ;;  %v3237_v13 = vmul.f32 %v7044_v33, %v7044_v33  ;;  %v3189_v14 = vsel %vm660_vm5, %v7044_v33, 0.0 }
 0x41c   : > { %v3187_v15 = vsel %vm660_vm5, %v7046_v36, 0.0  ;;  %v3236_v8 = vmul.f32 %v7046_v36, %v7046_v36  ;;  %v7059_v57 = vadd.f32 %v4179_v43, %v3079_v23  ;;  %v3074_v54 = vadd.f32 %v3073_v34, %v6815_v27 }
 0x41d   : > { %v4231_v52 = vpop.f32.mrf.mxu1  ;;  %v3188_v5 = vadd.f32 %v3187_v15, %v3186_v50  ;;  %v3288_v60 = vadd.f32 %v3287_v1, %v3286_v19  ;;  %v3291_v4 = vsel %vm660_vm5, %v3237_v13, 0.0 }
 0x41e   : > { %v3289_v45 = vsel %vm660_vm5, %v3236_v8, 0.0  ;;  %v3089_v12 = vadd.f32 %v4231_v52, %v6819_v58  ;;  %v7066_v37 = vadd.f32 %v3074_v54, %v2855_v22  ;;  %v3239_v43 = vmul.f32 %v7059_v57, %v7059_v57  ;;  %v2875_v8 = vpop.f32.mrf.mxu0 }
 0x41f   : > { %v3083_v28 = vpop.f32.mrf.mxu1  ;;  %v3290_v44 = vadd.f32 %v3289_v45, %v3288_v60  ;;  %v3190_v32 = vadd.f32 %v3189_v14, %v3188_v5  ;;  %v3193_v49 = vsel %vm660_vm5, %v7059_v57, 0.0 }
 0x420   : > { %v3084_v27 = vadd.f32 %v3083_v28, %v6821_v18  ;;  %v3191_v7 = vsel %vm660_vm5, %v7066_v37, 0.0  ;;  %v3238_v58 = vmul.f32 %v7066_v37, %v7066_v37  ;;  %v7077_v22 = vadd.f32 %v7035_v41, %v3089_v12 }
 0x421   : > { %v4234_v16 = vpop.f32.mrf.mxu1  ;;  %v3192_v11 = vadd.f32 %v3191_v7, %v3190_v32  ;;  %v3292_v26 = vadd.f32 %v3291_v4, %v3290_v44  ;;  %v3295_v34 = vsel %vm660_vm5, %v3239_v43, 0.0 }
 0x422   : > { %v3293_v18 = vsel %vm660_vm5, %v3238_v58, 0.0  ;;  %v7082_v23 = vadd.f32 %v3084_v27, %v2865_v62  ;;  %v3099_v38 = vadd.f32 %v4234_v16, %v6825_v24  ;;  %v3241_v1 = vmul.f32 %v7077_v22, %v7077_v22 }
 0x423   : > { %v3093_v46 = vpop.f32.mrf.mxu1  ;;  %v3294_v19 = vadd.f32 %v3293_v18, %v3292_v26  ;;  %v3194_v50 = vadd.f32 %v3193_v49, %v3192_v11 }
 0x424   : > { %v3094_v15 = vadd.f32 %v3093_v46, %v6827_v17  ;;  %v3195_v13 = vsel %vm660_vm5, %v7082_v23, 0.0  ;;  %v3240_v54 = vmul.f32 %v7082_v23, %v7082_v23  ;;  %v7093_v52 = vadd.f32 %v4185_v2, %v3099_v38 }
 0x425   : > { %v4237_v24 = vpop.f32.mrf.mxu1  ;;  %v3196_v5 = vadd.f32 %v3195_v13, %v3194_v50  ;;  %v3296_v60 = vadd.f32 %v3295_v34, %v3294_v19  ;;  %v3197_v17 = vsel %vm660_vm5, %v7077_v22, 0.0  ;;  %v3299_v2 = vsel %vm660_vm5, %v3241_v1, 0.0 }
 0x426   : > { %v7095_v45 = vadd.f32 %v3094_v15, %v2875_v8  ;;  %v3109_v12 = vadd.f32 %v4237_v24, %v6831_v35  ;;  %v3297_v14 = vsel %vm660_vm5, %v3240_v54, 0.0  ;;  %v3243_v4 = vmul.f32 %v7093_v52, %v7093_v52 }
 0x427   : > { %v3103_v28 = vpop.f32.mrf.mxu1  ;;  %v3298_v44 = vadd.f32 %v3297_v14, %v3296_v60  ;;  %v3198_v43 = vadd.f32 %v3197_v17, %v3196_v5  ;;  %v3201_v26 = vsel %vm660_vm5, %v7093_v52, 0.0 }
 0x428   : > { %v3199_v32 = vsel %vm660_vm5, %v7095_v45, 0.0  ;;  %v3242_v27 = vmul.f32 %v7095_v45, %v7095_v45  ;;  %v7109_v35 = vadd.f32 %v7035_v41, %v3109_v12  ;;  %v3104_v7 = vadd.f32 %v3103_v28, %v6833_v53 }
 0x429   : > { %v3200_v58 = vadd.f32 %v3199_v32, %v3198_v43  ;;  %v3300_v16 = vadd.f32 %v3299_v2, %v3298_v44  ;;  %v3303_v46 = vsel %vm660_vm5, %v3243_v4, 0.0 }
 0x42a   : > { %v3301_v11 = vsel %vm660_vm5, %v3242_v27, 0.0  ;;  %v7115_v49 = vadd.f32 %v3104_v7, %v2865_v62  ;;  %v3245_v34 = vmul.f32 %v7109_v35, %v7109_v35  ;;  %v3205_v15 = vsel %vm660_vm5, %v7109_v35, 0.0 }
 0x42b   : > { %v3302_v18 = vadd.f32 %v3301_v11, %v3300_v16  ;;  %v3202_v38 = vadd.f32 %v3201_v26, %v3200_v58 }
 0x42c   : > { %v3203_v41 = vsel %vm660_vm5, %v7115_v49, 0.0  ;;  %v3244_v53 = vmul.f32 %v7115_v49, %v7115_v49  ;;  %v3307_v13 = vsel %vm660_vm5, %v3245_v34, 0.0 }
 0x42d   : > { %v3204_v19 = vadd.f32 %v3203_v41, %v3202_v38  ;;  %v3304_v50 = vadd.f32 %v3303_v46, %v3302_v18 }
 0x42e   : > { %v3305_v62 = vsel %vm660_vm5, %v3244_v53, 0.0 }
 0x42f   : > { %v3206_v8 = vadd.f32 %v3205_v15, %v3204_v19  ;;  %v3306_v1 = vadd.f32 %v3305_v62, %v3304_v50 }
 0x431   : > { %v3207_v54 = vrot.slane %v3206_v8, 4  ;;  %v3308_v24 = vadd.f32 %v3307_v13, %v3306_v1 }
 0x433   : > { %v3208_v5 = vadd.f32 %v3207_v54, %v3206_v8  ;;  %v3309_v60 = vrot.slane %v3308_v24, 4 }
 0x435   : > { %v3209_v12 = vrot.slane %v3208_v5, 2  ;;  %v3310_v17 = vadd.f32 %v3309_v60, %v3308_v24 }
 0x437   : > { %v3210_v14 = vadd.f32 %v3209_v12, %v3208_v5  ;;  %v3311_v28 = vrot.slane %v3310_v17, 2 }
 0x439   : > { %v3211_v44 = vrot.slane %v3210_v14, 1  ;;  %v3312_v43 = vadd.f32 %v3311_v28, %v3310_v17 }
 0x43b   : > { %v3212_v32 = vadd.f32 %v3211_v44, %v3210_v14  ;;  %v3313_v27 = vrot.slane %v3312_v43, 1 }
 0x43d   : > { %v7128_v2 = vmul.f32 0.00390625, %v3212_v32  ;;  %v3314_v4 = vadd.f32 %v3313_v27, %v3312_v43 }
 0x43f   : > { %v3315_v7 = vmul.f32 0.00390625, %v3314_v4  ;;  %v3316_v58 = vmul.f32 %v7128_v2, %v7128_v2  ;;  %v3318_v26 = vsub.f32 %v6844_v3, %v7128_v2  ;;  %v3319_v18 = vsub.f32 %v6842_v51, %v7128_v2 }
 0x440   : > { %v3320_v38 = vsub.f32 %v6859_v29, %v7128_v2  ;;  %v3321_v46 = vsub.f32 %v6848_v9, %v7128_v2  ;;  %v3322_v34 = vsub.f32 %v6873_v21, %v7128_v2  ;;  %v3323_v41 = vsub.f32 %v6871_v25, %v7128_v2 }
 0x441   : > { %v3317_v16 = vsub.f32 %v3315_v7, %v3316_v58  ;;  %v3324_v53 = vsub.f32 %v6897_v48, %v7128_v2  ;;  %v3325_v3 = vsub.f32 %v6889_v56, %v7128_v2  ;;  %v3326_v51 = vsub.f32 %v6916_v20, %v7128_v2 }
 0x442   : > { %v3327_v29 = vsub.f32 %v6910_v42, %v7128_v2  ;;  %v3328_v9 = vsub.f32 %v6933_v39, %v7128_v2  ;;  %v3329_v21 = vsub.f32 %v6930_v31, %v7128_v2  ;;  %v3330_v25 = vsub.f32 %v6957_v63, %v7128_v2 }
 0x443   : > { %v3350_v11 = vadd.f32 1e-05, %v3317_v16  ;;  %v3331_v48 = vsub.f32 %v6949_v30, %v7128_v2  ;;  %v3332_v56 = vsub.f32 %v6976_v40, %v7128_v2  ;;  %v3333_v20 = vsub.f32 %v6970_v59, %v7128_v2 }
 0x444   : > { %v3334_v42 = vsub.f32 %v6991_v61, %v7128_v2  ;;  %v3335_v39 = vsub.f32 %v6988_v47, %v7128_v2  ;;  %v3336_v31 = vsub.f32 %v7013_v6, %v7128_v2  ;;  %v3337_v63 = vsub.f32 %v7005_v0, %v7128_v2 }
 0x445   : > { %4250 = vrsqrt.f32 %v3350_v11  ;;  %v3338_v30 = vsub.f32 %v7030_v55, %v7128_v2  ;;  %v3339_v40 = vsub.f32 %v7024_v10, %v7128_v2  ;;  %v3340_v59 = vsub.f32 %v7046_v36, %v7128_v2 }
 0x446   : > { %v3341_v61 = vsub.f32 %v7044_v33, %v7128_v2  ;;  %v3342_v47 = vsub.f32 %v7066_v37, %v7128_v2  ;;  %v3343_v6 = vsub.f32 %v7059_v57, %v7128_v2  ;;  %v3344_v0 = vsub.f32 %v7082_v23, %v7128_v2 }
 0x447   : > { %v3345_v55 = vsub.f32 %v7077_v22, %v7128_v2  ;;  %v3346_v10 = vsub.f32 %v7095_v45, %v7128_v2  ;;  %v3347_v36 = vsub.f32 %v7093_v52, %v7128_v2  ;;  %v3348_v33 = vsub.f32 %v7115_v49, %v7128_v2 }
 0x448   : > { %v3349_v37 = vsub.f32 %v7109_v35, %v7128_v2 }
 0x452   : > { %v4251_v19 = vpop.eup %4250 }
 0x453   : > { %v3352_v57 = vmul.f32 %v4251_v19, %v3318_v26  ;;  %v3353_v50 = vmul.f32 %v4251_v19, %v3319_v18  ;;  %v3354_v15 = vmul.f32 %v4251_v19, %v3320_v38  ;;  %v3355_v23 = vmul.f32 %v4251_v19, %v3321_v46  ;;  %v4252_v18 = vld [vmem:[%s4351_s25] sm:$0xff]  ;;  %v4253_v46 = vld [vmem:[%s4351_s25 + $0x8] sm:$0xff] }
 0x454   : > { %v3356_v62 = vmul.f32 %v4251_v19, %v3322_v34  ;;  %v3357_v8 = vmul.f32 %v4251_v19, %v3323_v41  ;;  %v3358_v22 = vmul.f32 %v4251_v19, %v3324_v53  ;;  %v3359_v1 = vmul.f32 %v4251_v19, %v3325_v3  ;;  %v4254_v41 = vld [vmem:[%s4351_s25 + $0x10] sm:$0xff]  ;;  %v4255_v3 = vld [vmem:[%s4351_s25 + $0x18] sm:$0xff] }
 0x455   : > { %v3360_v13 = vmul.f32 %v4251_v19, %v3326_v51  ;;  %v3361_v54 = vmul.f32 %v4251_v19, %v3327_v29  ;;  %v3362_v45 = vmul.f32 %v4251_v19, %v3328_v9  ;;  %v3363_v24 = vmul.f32 %v4251_v19, %v3329_v21  ;;  %v4256_v29 = vld [vmem:[%s4351_s25 + $0x20] sm:$0xff]  ;;  %v4257_v21 = vld [vmem:[%s4351_s25 + $0x28] sm:$0xff] }
 0x456   : > { %v3364_v5 = vmul.f32 %v4251_v19, %v3330_v25  ;;  %v3365_v52 = vmul.f32 %v4251_v19, %v3331_v48  ;;  %v3366_v60 = vmul.f32 %v4251_v19, %v3332_v56  ;;  %v3367_v49 = vmul.f32 %v4251_v19, %v3333_v20  ;;  %v4258_v48 = vld [vmem:[%s4351_s25 + $0x30] sm:$0xff]  ;;  %v4259_v20 = vld [vmem:[%s4351_s25 + $0x38] sm:$0xff] }
 0x457   : > { %v3368_v12 = vmul.f32 %v4251_v19, %v3334_v42  ;;  %v3369_v17 = vmul.f32 %v4251_v19, %v3335_v39  ;;  %v3370_v35 = vmul.f32 %v4251_v19, %v3336_v31  ;;  %v3371_v14 = vmul.f32 %v4251_v19, %v3337_v63  ;;  %v4260_v39 = vld [vmem:[%s4351_s25 + $0x40] sm:$0xff]  ;;  %v4261_v63 = vld [vmem:[%s4351_s25 + $0x48] sm:$0xff] }
 0x458   : > { %v7196_v28 = vmul.f32 %v4251_v19, %v3338_v30  ;;  %v7198_v44 = vmul.f32 %v4251_v19, %v3339_v40  ;;  %v7200_v43 = vmul.f32 %v4251_v19, %v3340_v59  ;;  %v7202_v32 = vmul.f32 %v4251_v19, %v3341_v61  ;;  %v4262_v40 = vld [vmem:[%s4351_s25 + $0x50] sm:$0xff]  ;;  %v4263_v61 = vld [vmem:[%s4351_s25 + $0x58] sm:$0xff] }
 0x459   : > { %v7204_v27 = vmul.f32 %v4251_v19, %v3342_v47  ;;  %v7206_v2 = vmul.f32 %v4251_v19, %v3343_v6  ;;  %v7208_v4 = vmul.f32 %v4251_v19, %v3344_v0  ;;  %v7210_v7 = vmul.f32 %v4251_v19, %v3345_v55  ;;  %v4264_v6 = vld [vmem:[%s4351_s25 + $0x60] sm:$0xff]  ;;  %v4265_v55 = vld [vmem:[%s4351_s25 + $0x68] sm:$0xff] }
 0x45a   : > { %v7219_v58 = vmul.f32 %v4251_v19, %v3346_v10  ;;  %v7221_v16 = vmul.f32 %v4251_v19, %v3347_v36  ;;  %v7223_v11 = vmul.f32 %v4251_v19, %v3348_v33  ;;  %v7225_v26 = vmul.f32 %v4251_v19, %v3349_v37  ;;  %v4266_v10 = vld [vmem:[%s4351_s25 + $0x70] sm:$0xff]  ;;  %v4267_v33 = vld [vmem:[%s4351_s25 + $0x78] sm:$0xff] }
 0x45b   : > { %v3384_v38 = vadd.f32 %v4252_v18, %v3352_v57  ;;  %v3385_v34 = vadd.f32 %v4253_v46, %v3353_v50  ;;  %v3386_v53 = vadd.f32 %v4254_v41, %v3354_v15  ;;  %v3387_v51 = vadd.f32 %v4255_v3, %v3355_v23  ;;  %v4268_v57 = vld [vmem:[%s4351_s25 + $0x80] sm:$0xff]  ;;  %v4269_v15 = vld [vmem:[%s4351_s25 + $0x88] sm:$0xff]  ;;  %v4282_v18 = vld [vmem:[%s4351_s25 + $0xf0] sm:$0xff] }
 0x45c   : > { %v3388_v9 = vadd.f32 %v4256_v29, %v3356_v62  ;;  %v3389_v25 = vadd.f32 %v4257_v21, %v3357_v8  ;;  %v3390_v56 = vadd.f32 %v4258_v48, %v3358_v22  ;;  %v3391_v42 = vadd.f32 %v4259_v20, %v3359_v1  ;;  %v4270_v62 = vld [vmem:[%s4351_s25 + $0x90] sm:$0xff]  ;;  %v4271_v22 = vld [vmem:[%s4351_s25 + $0x98] sm:$0xff] }
 0x45d   : > { %v3392_v31 = vadd.f32 %v4260_v39, %v3360_v13  ;;  %v3393_v30 = vadd.f32 %v4261_v63, %v3361_v54  ;;  %v3394_v59 = vadd.f32 %v4262_v40, %v3362_v45  ;;  %v3395_v47 = vadd.f32 %v4263_v61, %v3363_v24  ;;  %3416 = vst.msk [vmem:[%s7217_s21] sm:$0xff] %vm660_vm5, %v3384_v38  ;;  %v4272_v13 = vld [vmem:[%s4351_s25 + $0xa0] sm:$0xff]  ;;  %v4273_v45 = vld [vmem:[%s4351_s25 + $0xa8] sm:$0xff]  ;;  %v4283_v46 = vld [vmem:[%s4351_s25 + $0xf8] sm:$0xff] }
 0x45e   : > { %3417 = vst.msk [vmem:[%s7217_s21 + $0x8] sm:$0xff] %vm660_vm5, %v3385_v34  ;;  %3418 = vst.msk [vmem:[%s7217_s21 + $0x10] sm:$0xff] %vm660_vm5, %v3386_v53  ;;  %v3396_v0 = vadd.f32 %v4264_v6, %v3364_v5  ;;  %v3397_v19 = vadd.f32 %v4265_v55, %v3365_v52  ;;  %v3398_v36 = vadd.f32 %v4266_v10, %v3366_v60  ;;  %v4274_v5 = vld [vmem:[%s4351_s25 + $0xb0] sm:$0xff]  ;;  %v4275_v60 = vld [vmem:[%s4351_s25 + $0xb8] sm:$0xff] }
 0x45f   : > { %3419 = vst.msk [vmem:[%s7217_s21 + $0x18] sm:$0xff] %vm660_vm5, %v3387_v51  ;;  %v3399_v37 = vadd.f32 %v4267_v33, %v3367_v49  ;;  %3420 = vst.msk [vmem:[%s7217_s21 + $0x20] sm:$0xff] %vm660_vm5, %v3388_v9  ;;  %v3400_v50 = vadd.f32 %v4268_v57, %v3368_v12  ;;  %v3401_v23 = vadd.f32 %v4269_v15, %v3369_v17  ;;  %v4276_v12 = vld [vmem:[%s4351_s25 + $0xc0] sm:$0xff] }
 0x460   : > { %3421 = vst.msk [vmem:[%s7217_s21 + $0x28] sm:$0xff] %vm660_vm5, %v3389_v25  ;;  %3422 = vst.msk [vmem:[%s7217_s21 + $0x30] sm:$0xff] %vm660_vm5, %v3390_v56  ;;  %v3402_v8 = vadd.f32 %v4270_v62, %v3370_v35  ;;  %v3403_v1 = vadd.f32 %v4271_v22, %v3371_v14  ;;  %v3404_v54 = vadd.f32 %v4272_v13, %v7196_v28  ;;  %v4277_v35 = vld [vmem:[%s4351_s25 + $0xc8] sm:$0xff]  ;;  %v4278_v28 = vld [vmem:[%s4351_s25 + $0xd0] sm:$0xff] }
 0x461   : > { %3423 = vst.msk [vmem:[%s7217_s21 + $0x38] sm:$0xff] %vm660_vm5, %v3391_v42  ;;  %3424 = vst.msk [vmem:[%s7217_s21 + $0x40] sm:$0xff] %vm660_vm5, %v3392_v31  ;;  %v3405_v24 = vadd.f32 %v4273_v45, %v7198_v44  ;;  %v3406_v52 = vadd.f32 %v4274_v5, %v7200_v43  ;;  %v3407_v49 = vadd.f32 %v4275_v60, %v7202_v32  ;;  %v4279_v43 = vld [vmem:[%s4351_s25 + $0xd8] sm:$0xff] }
 0x462   : > { %3425 = vst.msk [vmem:[%s7217_s21 + $0x48] sm:$0xff] %vm660_vm5, %v3393_v30  ;;  %3426 = vst.msk [vmem:[%s7217_s21 + $0x50] sm:$0xff] %vm660_vm5, %v3394_v59  ;;  %v3408_v17 = vadd.f32 %v4276_v12, %v7204_v27  ;;  %v3409_v14 = vadd.f32 %v4277_v35, %v7206_v2  ;;  %v3410_v44 = vadd.f32 %v4278_v28, %v7208_v4  ;;  %v4280_v27 = vld [vmem:[%s4351_s25 + $0xe0] sm:$0xff]  ;;  %v4281_v4 = vld [vmem:[%s4351_s25 + $0xe8] sm:$0xff] }
 0x463   : > { %3427 = vst.msk [vmem:[%s7217_s21 + $0x58] sm:$0xff] %vm660_vm5, %v3395_v47  ;;  %3428 = vst.msk [vmem:[%s7217_s21 + $0x60] sm:$0xff] %vm660_vm5, %v3396_v0  ;;  %v3411_v32 = vadd.f32 %v4279_v43, %v7210_v7  ;;  %v3412_v2 = vadd.f32 %v4280_v27, %v7219_v58  ;;  %v3413_v7 = vadd.f32 %v4281_v4, %v7221_v16 }
 0x464   : > { %3429 = vst.msk [vmem:[%s7217_s21 + $0x68] sm:$0xff] %vm660_vm5, %v3397_v19  ;;  %3430 = vst.msk [vmem:[%s7217_s21 + $0x70] sm:$0xff] %vm660_vm5, %v3398_v36  ;;  %v3414_v38 = vadd.f32 %v4282_v18, %v7223_v11  ;;  %v3415_v34 = vadd.f32 %v4283_v46, %v7225_v26 }
 0x465   : > { %3431 = vst.msk [vmem:[%s7217_s21 + $0x78] sm:$0xff] %vm660_vm5, %v3399_v37  ;;  %3432 = vst.msk [vmem:[%s7217_s21 + $0x80] sm:$0xff] %vm660_vm5, %v3400_v50 }
 0x466   : > { %3433 = vst.msk [vmem:[%s7217_s21 + $0x88] sm:$0xff] %vm660_vm5, %v3401_v23  ;;  %3434 = vst.msk [vmem:[%s7217_s21 + $0x90] sm:$0xff] %vm660_vm5, %v3402_v8 }
 0x467   : > { %3435 = vst.msk [vmem:[%s7217_s21 + $0x98] sm:$0xff] %vm660_vm5, %v3403_v1  ;;  %3436 = vst.msk [vmem:[%s7217_s21 + $0xa0] sm:$0xff] %vm660_vm5, %v3404_v54 }
 0x468   : > { %3437 = vst.msk [vmem:[%s7217_s21 + $0xa8] sm:$0xff] %vm660_vm5, %v3405_v24  ;;  %3438 = vst.msk [vmem:[%s7217_s21 + $0xb0] sm:$0xff] %vm660_vm5, %v3406_v52 }
 0x469   : > { %3439 = vst.msk [vmem:[%s7217_s21 + $0xb8] sm:$0xff] %vm660_vm5, %v3407_v49  ;;  %3440 = vst.msk [vmem:[%s7217_s21 + $0xc0] sm:$0xff] %vm660_vm5, %v3408_v17 }
 0x46a   : > { %3441 = vst.msk [vmem:[%s7217_s21 + $0xc8] sm:$0xff] %vm660_vm5, %v3409_v14  ;;  %3442 = vst.msk [vmem:[%s7217_s21 + $0xd0] sm:$0xff] %vm660_vm5, %v3410_v44 }
 0x46b   : > { %3443 = vst.msk [vmem:[%s7217_s21 + $0xd8] sm:$0xff] %vm660_vm5, %v3411_v32  ;;  %3444 = vst.msk [vmem:[%s7217_s21 + $0xe0] sm:$0xff] %vm660_vm5, %v3412_v2 }
 0x46c   : > { %3445 = vst.msk [vmem:[%s7217_s21 + $0xe8] sm:$0xff] %vm660_vm5, %v3413_v7  ;;  %3446 = vst.msk [vmem:[%s7217_s21 + $0xf0] sm:$0xff] %vm660_vm5, %v3414_v38 }
 0x46d   : > { %3447 = vst.msk [vmem:[%s7217_s21 + $0xf8] sm:$0xff] %vm660_vm5, %v3415_v34 }
 0x46e PF: > { %s13_s12 = sadd.s32 1, %s4290_s12  }
 0x46f   : > { %p10_p4 = scmp.ge.s32.totalorder %s13_s12, 4  }
 0x471   :  { %12 = sbr.rel (!%p10_p4) target bundleno = 1 (0x1), region = 66 }

</bundles_post_ra>
